<compile_context>
chip_gen: v5e
topology: v5e:2x2
jax: 0.10.0
libtpu: 0.0.40
codegen_flags: <defaults>
</compile_context>

<pallas_src>
import jax
import jax.numpy as jnp
from jax.experimental import pallas as pl
from jax.experimental.pallas import tpu as pltpu

# ---- model sizes (hidden=512, latent_dim=128 are fixed by the module;
#      input_dim is data-dependent -> small synthetic value) -------------------
BATCH = 256          # per-call batch (>=128 to fill the MXU M dimension)
INPUT_DIM = 64       # "max SELFIES length" stand-in
HIDDEN = 512
LATENT_DIM = 128
TM = 128             # batch-tile rows per grid step
LANE = 128


def _round_up(n, m):
    return (n + m - 1) // m * m


def _vae_kernel(x_ref, w1_ref, b1_ref, w2mu_ref, b2mu_ref, w2lv_ref, b2lv_ref,
                eps_ref, w3_ref, b3_ref, w4_ref, b4_ref,
                recon_ref, mu_ref, logvar_ref):
    bf16 = jnp.bfloat16

    # ---------------- encoder: Linear -> ReLU -> (mu, log_var) ----------------
    x = x_ref[...].astype(bf16)                                        # (TM, Dp)
    h = jnp.dot(x, w1_ref[...], preferred_element_type=jnp.float32)    # (TM, 512)
    h = jnp.maximum(h + b1_ref[...], 0.0)
    hb = h.astype(bf16)

    mu = jnp.dot(hb, w2mu_ref[...], preferred_element_type=jnp.float32) + b2mu_ref[...]
    log_var = jnp.dot(hb, w2lv_ref[...], preferred_element_type=jnp.float32) + b2lv_ref[...]

    # ---------------- reparametrize: z = mu + eps * exp(0.5*log_var) ----------
    # TODO(synk): eps could be drawn in-kernel via pltpu.prng_* once bitwise
    # reproducibility against the host reference is not required.
    std = jnp.exp(0.5 * log_var)
    z = mu + eps_ref[...] * std                                        # (TM, L)

    # ---------------- decoder: Linear -> ReLU -> Linear -> Softmax ------------
    h2 = jnp.dot(z.astype(bf16), w3_ref[...], preferred_element_type=jnp.float32)
    h2 = jnp.maximum(h2 + b3_ref[...], 0.0)
    logits = jnp.dot(h2.astype(bf16), w4_ref[...],
                     preferred_element_type=jnp.float32) + b4_ref[...]  # (TM, Dp)

    m = jnp.max(logits, axis=-1, keepdims=True)
    e = jnp.exp(logits - m)
    s = jnp.sum(e, axis=-1, keepdims=True)
    inv = pl.reciprocal(s, approx=True)        # EUP
    inv = inv * (2.0 - s * inv)                # one Newton step -> ~f32 accuracy
    recon_ref[...] = e * inv                   # softmax(dim=-1), padded lanes -> 0

    mu_ref[...] = mu
    logvar_ref[...] = log_var


def vae_forward(x, eps, params, *, tm=TM):
    """Full VAE forward in a single batch-tiled Pallas kernel.

    Returns (recon, mu, log_var) matching the PyTorch module's forward().
    """
    b, d = x.shape
    latent = LATENT_DIM
    d_pad = _round_up(max(d, LANE), LANE)
    b_pad = _round_up(b, tm)
    bf16 = jnp.bfloat16

    # ---- pad activations (zero rows/cols contribute nothing) -----------------
    x_p = jnp.zeros((b_pad, d_pad), jnp.float32).at[:b, :d].set(x)
    eps_p = jnp.zeros((b_pad, latent), jnp.float32).at[:b].set(eps)

    # ---- prepare weights: bf16, input-dim padded, mu/logvar split ------------
    w1 = jnp.zeros((d_pad, HIDDEN), bf16).at[:d].set(params["w1"].astype(bf16))
    b1 = params["b1"]
    w2 = params["w2"].astype(bf16)
    w2mu, w2lv = w2[:, :latent], w2[:, latent:]
    b2mu, b2lv = params["b2"][:, :latent], params["b2"][:, latent:]
    w3 = params["w3"].astype(bf16)
    b3 = params["b3"]
    w4 = jnp.zeros((HIDDEN, d_pad), bf16).at[:, :d].set(params["w4"].astype(bf16))
    # padded logit lanes get a huge negative bias -> exp() == 0 under softmax
    b4 = jnp.full((1, d_pad), -1e30, jnp.float32).at[:, :d].set(params["b4"])

    grid = (b_pad // tm,)

    def act(cols):       # batch-tiled activation / output spec
        return pl.BlockSpec((tm, cols), lambda i: (i, 0))

    def resident(shape):  # weights/biases: constant block -> stay in VMEM
        return pl.BlockSpec(shape, lambda i: (0, 0))

    out_shapes = (
        jax.ShapeDtypeStruct((b_pad, d_pad), jnp.float32),   # reconstruction (padded)
        jax.ShapeDtypeStruct((b_pad, latent), jnp.float32),  # mu
        jax.ShapeDtypeStruct((b_pad, latent), jnp.float32),  # log_var
    )

    recon_p, mu, log_var = pl.pallas_call(
        _vae_kernel,
        out_shape=out_shapes,
        grid=grid,
        in_specs=[
            act(d_pad),                       # x
            resident((d_pad, HIDDEN)),        # w1
            resident((1, HIDDEN)),            # b1
            resident((HIDDEN, latent)),       # w2 (mu half)
            resident((1, latent)),            # b2 (mu half)
            resident((HIDDEN, latent)),       # w2 (log_var half)
            resident((1, latent)),            # b2 (log_var half)
            act(latent),                      # eps
            resident((latent, HIDDEN)),       # w3
            resident((1, HIDDEN)),            # b3
            resident((HIDDEN, d_pad)),        # w4
            resident((1, d_pad)),             # b4
        ],
        out_specs=(act(d_pad), act(latent), act(latent)),
        compiler_params=pltpu.CompilerParams(
            dimension_semantics=("parallel",)),
    )(x_p, w1, b1, w2mu, b2mu, w2lv, b2lv, eps_p, w3, b3, w4, b4)

    return recon_p[:b, :d], mu[:b], log_var[:b]


def init_params(key, input_dim, hidden, latent_dim):
    """Deterministic synthetic parameter init (shapes match the nn.Linear layers)."""
    ks = jax.random.split(key, 8)

    def lin(kw, kb, fan_in, fan_out):
        scale = 1.0 / jnp.sqrt(jnp.float32(fan_in))
        w = jax.random.uniform(kw, (fan_in, fan_out), jnp.float32, -scale, scale)
        b = jax.random.uniform(kb, (1, fan_out), jnp.float32, -scale, scale)
        return w, b

    w1, b1 = lin(ks[0], ks[1], input_dim, hidden)            # encoder[0]
    w2, b2 = lin(ks[2], ks[3], hidden, 2 * latent_dim)       # encoder[2]
    w3, b3 = lin(ks[4], ks[5], latent_dim, hidden)           # decoder[0]
    w4, b4 = lin(ks[6], ks[7], hidden, input_dim)            # decoder[2]
    return dict(w1=w1, b1=b1, w2=w2, b2=b2, w3=w3, b3=b3, w4=w4, b4=b4)


def vae_reference(x, eps, params):
    """Pure-JAX reference with the same bf16-weight / f32-accumulate math."""
    bf16 = jnp.bfloat16
    w1 = params["w1"].astype(bf16)
    w2 = params["w2"].astype(bf16)
    w3 = params["w3"].astype(bf16)
    w4 = params["w4"].astype(bf16)

    h = jnp.maximum(
        jnp.dot(x.astype(bf16), w1, preferred_element_type=jnp.float32) + params["b1"], 0.0)
    enc = jnp.dot(h.astype(bf16), w2, preferred_element_type=jnp.float32) + params["b2"]
    mu, log_var = enc[:, :LATENT_DIM], enc[:, LATENT_DIM:]
    z = mu + eps * jnp.exp(0.5 * log_var)
    h2 = jnp.maximum(
        jnp.dot(z.astype(bf16), w3, preferred_element_type=jnp.float32) + params["b3"], 0.0)
    logits = jnp.dot(h2.astype(bf16), w4, preferred_element_type=jnp.float32) + params["b4"]
    return jax.nn.softmax(logits, axis=-1), mu, log_var


if __name__ == "__main__":
    key = jax.random.PRNGKey(0)
    k_param, k_x, k_eps = jax.random.split(key, 3)

    params = init_params(k_param, INPUT_DIM, HIDDEN, LATENT_DIM)
    x = jax.random.normal(k_x, (BATCH, INPUT_DIM), jnp.float32)
    # eps replaces torch.randn_like(std); drawn deterministically in JAX
    eps = jax.random.normal(k_eps, (BATCH, LATENT_DIM), jnp.float32)

    recon, mu, log_var = vae_forward(x, eps, params)
    jax.block_until_ready((recon, mu, log_var))

    # sanity check against pure-JAX reference (same bf16/f32 mixed precision)
    r_ref, mu_ref, lv_ref = vae_reference(x, eps, params)
    assert recon.shape == (BATCH, INPUT_DIM)
    assert jnp.allclose(recon, r_ref, atol=1e-4, rtol=1e-4)
    assert jnp.allclose(mu, mu_ref, atol=1e-4, rtol=1e-4)
    assert jnp.allclose(log_var, lv_ref, atol=1e-4, rtol=1e-4)
    assert jnp.allclose(jnp.sum(recon, axis=-1), 1.0, atol=1e-4)

    print("KERNEL_OK")
</pallas_src>

<mosaic_0001>
module attributes {stable_mosaic.version = 11 : i64} {
  func.func @_vae_kernel(%arg0: i32, %arg1: memref<128x128xf32, #tpu.memory_space<vmem>>, %arg2: memref<128x512xbf16, #tpu.memory_space<vmem>>, %arg3: memref<1x512xf32, #tpu.memory_space<vmem>>, %arg4: memref<512x128xbf16, #tpu.memory_space<vmem>>, %arg5: memref<1x128xf32, #tpu.memory_space<vmem>>, %arg6: memref<512x128xbf16, #tpu.memory_space<vmem>>, %arg7: memref<1x128xf32, #tpu.memory_space<vmem>>, %arg8: memref<128x128xf32, #tpu.memory_space<vmem>>, %arg9: memref<128x512xbf16, #tpu.memory_space<vmem>>, %arg10: memref<1x512xf32, #tpu.memory_space<vmem>>, %arg11: memref<512x128xbf16, #tpu.memory_space<vmem>>, %arg12: memref<1x128xf32, #tpu.memory_space<vmem>>, %arg13: memref<128x128xf32, #tpu.memory_space<vmem>>, %arg14: memref<128x128xf32, #tpu.memory_space<vmem>>, %arg15: memref<128x128xf32, #tpu.memory_space<vmem>>) attributes {dimension_semantics = [#tpu.dimension_semantics<parallel>], iteration_bounds = array<i64: 2>, scalar_prefetch = 0 : i64, scratch_operands = 0 : i64, tpu.core_type = #tpu.core_type<tc>, window_params = [{transform_indices = @transform_0, window_bounds = array<i64: 128, 128>}, {pipeline_mode = #tpu.pipeline_mode<synchronous>, transform_indices = @transform_1, window_bounds = array<i64: 128, 512>}, {pipeline_mode = #tpu.pipeline_mode<synchronous>, transform_indices = @transform_2, window_bounds = array<i64: 1, 512>}, {pipeline_mode = #tpu.pipeline_mode<synchronous>, transform_indices = @transform_3, window_bounds = array<i64: 512, 128>}, {pipeline_mode = #tpu.pipeline_mode<synchronous>, transform_indices = @transform_4, window_bounds = array<i64: 1, 128>}, {pipeline_mode = #tpu.pipeline_mode<synchronous>, transform_indices = @transform_5, window_bounds = array<i64: 512, 128>}, {pipeline_mode = #tpu.pipeline_mode<synchronous>, transform_indices = @transform_6, window_bounds = array<i64: 1, 128>}, {transform_indices = @transform_7, window_bounds = array<i64: 128, 128>}, {pipeline_mode = #tpu.pipeline_mode<synchronous>, transform_indices = @transform_8, window_bounds = array<i64: 128, 512>}, {pipeline_mode = #tpu.pipeline_mode<synchronous>, transform_indices = @transform_9, window_bounds = array<i64: 1, 512>}, {pipeline_mode = #tpu.pipeline_mode<synchronous>, transform_indices = @transform_10, window_bounds = array<i64: 512, 128>}, {pipeline_mode = #tpu.pipeline_mode<synchronous>, transform_indices = @transform_11, window_bounds = array<i64: 1, 128>}, {transform_indices = @transform_12, window_bounds = array<i64: 128, 128>}, {transform_indices = @transform_13, window_bounds = array<i64: 128, 128>}, {transform_indices = @transform_14, window_bounds = array<i64: 128, 128>}]} {
    %c0 = arith.constant 0 : index
    %c0_0 = arith.constant 0 : index
    %0 = vector.load %arg1[%c0, %c0_0] : memref<128x128xf32, #tpu.memory_space<vmem>>, vector<128x128xf32>
    %1 = arith.truncf %0 : vector<128x128xf32> to vector<128x128xbf16>
    %c0_1 = arith.constant 0 : index
    %c0_2 = arith.constant 0 : index
    %2 = vector.load %arg2[%c0_1, %c0_2] : memref<128x512xbf16, #tpu.memory_space<vmem>>, vector<128x512xbf16>
    %cst = arith.constant dense<0.000000e+00> : vector<128x512xf32>
    %3 = tpu.matmul %1, %2, %cst {dimension_numbers = #tpu.dot_dimension_numbers<[1], [0], [0], [1], [0, 0, 1, 1], [], []>} : vector<128x128xbf16>, vector<128x512xbf16>, vector<128x512xf32> -> vector<128x512xf32>
    %c0_3 = arith.constant 0 : index
    %c0_4 = arith.constant 0 : index
    %4 = vector.load %arg3[%c0_3, %c0_4] : memref<1x512xf32, #tpu.memory_space<vmem>>, vector<1x512xf32>
    %5 = vector.broadcast %4 : vector<1x512xf32> to vector<128x512xf32>
    %6 = arith.addf %3, %5 : vector<128x512xf32>
    %cst_5 = arith.constant 0.000000e+00 : f32
    %7 = vector.broadcast %cst_5 : f32 to vector<128x512xf32>
    %8 = arith.maximumf %6, %7 : vector<128x512xf32>
    %9 = arith.truncf %8 : vector<128x512xf32> to vector<128x512xbf16>
    %c0_6 = arith.constant 0 : index
    %c0_7 = arith.constant 0 : index
    %10 = vector.load %arg4[%c0_6, %c0_7] : memref<512x128xbf16, #tpu.memory_space<vmem>>, vector<512x128xbf16>
    %cst_8 = arith.constant dense<0.000000e+00> : vector<128x128xf32>
    %11 = tpu.matmul %9, %10, %cst_8 {dimension_numbers = #tpu.dot_dimension_numbers<[1], [0], [0], [1], [0, 0, 1, 1], [], []>} : vector<128x512xbf16>, vector<512x128xbf16>, vector<128x128xf32> -> vector<128x128xf32>
    %c0_9 = arith.constant 0 : index
    %c0_10 = arith.constant 0 : index
    %12 = vector.load %arg5[%c0_9, %c0_10] : memref<1x128xf32, #tpu.memory_space<vmem>>, vector<1x128xf32>
    %13 = vector.broadcast %12 : vector<1x128xf32> to vector<128x128xf32>
    %14 = arith.addf %11, %13 : vector<128x128xf32>
    %c0_11 = arith.constant 0 : index
    %c0_12 = arith.constant 0 : index
    %15 = vector.load %arg6[%c0_11, %c0_12] : memref<512x128xbf16, #tpu.memory_space<vmem>>, vector<512x128xbf16>
    %cst_13 = arith.constant dense<0.000000e+00> : vector<128x128xf32>
    %16 = tpu.matmul %9, %15, %cst_13 {dimension_numbers = #tpu.dot_dimension_numbers<[1], [0], [0], [1], [0, 0, 1, 1], [], []>} : vector<128x512xbf16>, vector<512x128xbf16>, vector<128x128xf32> -> vector<128x128xf32>
    %c0_14 = arith.constant 0 : index
    %c0_15 = arith.constant 0 : index
    %17 = vector.load %arg7[%c0_14, %c0_15] : memref<1x128xf32, #tpu.memory_space<vmem>>, vector<1x128xf32>
    %18 = vector.broadcast %17 : vector<1x128xf32> to vector<128x128xf32>
    %19 = arith.addf %16, %18 : vector<128x128xf32>
    %cst_16 = arith.constant 5.000000e-01 : f32
    %20 = vector.broadcast %cst_16 : f32 to vector<128x128xf32>
    %21 = arith.mulf %20, %19 : vector<128x128xf32>
    %22 = math.exp %21 : vector<128x128xf32>
    %c0_17 = arith.constant 0 : index
    %c0_18 = arith.constant 0 : index
    %23 = vector.load %arg8[%c0_17, %c0_18] : memref<128x128xf32, #tpu.memory_space<vmem>>, vector<128x128xf32>
    %24 = arith.mulf %23, %22 : vector<128x128xf32>
    %25 = arith.addf %14, %24 : vector<128x128xf32>
    %26 = arith.truncf %25 : vector<128x128xf32> to vector<128x128xbf16>
    %c0_19 = arith.constant 0 : index
    %c0_20 = arith.constant 0 : index
    %27 = vector.load %arg9[%c0_19, %c0_20] : memref<128x512xbf16, #tpu.memory_space<vmem>>, vector<128x512xbf16>
    %cst_21 = arith.constant dense<0.000000e+00> : vector<128x512xf32>
    %28 = tpu.matmul %26, %27, %cst_21 {dimension_numbers = #tpu.dot_dimension_numbers<[1], [0], [0], [1], [0, 0, 1, 1], [], []>} : vector<128x128xbf16>, vector<128x512xbf16>, vector<128x512xf32> -> vector<128x512xf32>
    %c0_22 = arith.constant 0 : index
    %c0_23 = arith.constant 0 : index
    %29 = vector.load %arg10[%c0_22, %c0_23] : memref<1x512xf32, #tpu.memory_space<vmem>>, vector<1x512xf32>
    %30 = vector.broadcast %29 : vector<1x512xf32> to vector<128x512xf32>
    %31 = arith.addf %28, %30 : vector<128x512xf32>
    %cst_24 = arith.constant 0.000000e+00 : f32
    %32 = vector.broadcast %cst_24 : f32 to vector<128x512xf32>
    %33 = arith.maximumf %31, %32 : vector<128x512xf32>
    %34 = arith.truncf %33 : vector<128x512xf32> to vector<128x512xbf16>
    %c0_25 = arith.constant 0 : index
    %c0_26 = arith.constant 0 : index
    %35 = vector.load %arg11[%c0_25, %c0_26] : memref<512x128xbf16, #tpu.memory_space<vmem>>, vector<512x128xbf16>
    %cst_27 = arith.constant dense<0.000000e+00> : vector<128x128xf32>
    %36 = tpu.matmul %34, %35, %cst_27 {dimension_numbers = #tpu.dot_dimension_numbers<[1], [0], [0], [1], [0, 0, 1, 1], [], []>} : vector<128x512xbf16>, vector<512x128xbf16>, vector<128x128xf32> -> vector<128x128xf32>
    %c0_28 = arith.constant 0 : index
    %c0_29 = arith.constant 0 : index
    %37 = vector.load %arg12[%c0_28, %c0_29] : memref<1x128xf32, #tpu.memory_space<vmem>>, vector<1x128xf32>
    %38 = vector.broadcast %37 : vector<1x128xf32> to vector<128x128xf32>
    %39 = arith.addf %36, %38 : vector<128x128xf32>
    %cst_30 = arith.constant dense<0xFF800000> : vector<128xf32>
    %40 = vector.multi_reduction <maximumf>, %39, %cst_30 [1] : vector<128x128xf32> to vector<128xf32>
    %41 = vector.shape_cast %40 : vector<128xf32> to vector<128x1xf32>
    %42 = vector.broadcast %41 : vector<128x1xf32> to vector<128x128xf32>
    %43 = arith.subf %39, %42 : vector<128x128xf32>
    %44 = math.exp %43 : vector<128x128xf32>
    %cst_31 = arith.constant dense<0.000000e+00> : vector<128xf32>
    %45 = vector.multi_reduction <add>, %44, %cst_31 [1] : vector<128x128xf32> to vector<128xf32>
    %46 = vector.shape_cast %45 : vector<128xf32> to vector<128x1xf32>
    %47 = tpu.reciprocal %46 {approx = true} : vector<128x1xf32> -> vector<128x1xf32>
    %48 = arith.mulf %46, %47 : vector<128x1xf32>
    %cst_32 = arith.constant 2.000000e+00 : f32
    %49 = vector.broadcast %cst_32 : f32 to vector<128x1xf32>
    %50 = arith.subf %49, %48 : vector<128x1xf32>
    %51 = arith.mulf %47, %50 : vector<128x1xf32>
    %52 = vector.broadcast %51 : vector<128x1xf32> to vector<128x128xf32>
    %53 = arith.mulf %44, %52 : vector<128x128xf32>
    %c0_33 = arith.constant 0 : index
    %c0_34 = arith.constant 0 : index
    %54 = vector.load %arg13[%c0_33, %c0_34] : memref<128x128xf32, #tpu.memory_space<vmem>>, vector<128x128xf32>
    tpu.vector_store %arg13[%c0_33, %c0_34], %53 {strides = array<i32>} : memref<128x128xf32, #tpu.memory_space<vmem>>, vector<128x128xf32>,
    %c0_35 = arith.constant 0 : index
    %c0_36 = arith.constant 0 : index
    %55 = vector.load %arg14[%c0_35, %c0_36] : memref<128x128xf32, #tpu.memory_space<vmem>>, vector<128x128xf32>
    tpu.vector_store %arg14[%c0_35, %c0_36], %14 {strides = array<i32>} : memref<128x128xf32, #tpu.memory_space<vmem>>, vector<128x128xf32>,
    %c0_37 = arith.constant 0 : index
    %c0_38 = arith.constant 0 : index
    %56 = vector.load %arg15[%c0_37, %c0_38] : memref<128x128xf32, #tpu.memory_space<vmem>>, vector<128x128xf32>
    tpu.vector_store %arg15[%c0_37, %c0_38], %19 {strides = array<i32>} : memref<128x128xf32, #tpu.memory_space<vmem>>, vector<128x128xf32>,
    return
  }
  func.func @transform_0(%arg0: i32) -> (i32, i32) {
    %c0_i32 = arith.constant 0 : i32
    %c0_i32_0 = arith.constant 0 : i32
    return %arg0, %c0_i32 : i32, i32
  }
  func.func @transform_1(%arg0: i32) -> (i32, i32) {
    %c0_i32 = arith.constant 0 : i32
    %c0_i32_0 = arith.constant 0 : i32
    %c0_i32_1 = arith.constant 0 : i32
    return %c0_i32, %c0_i32_0 : i32, i32
  }
  func.func @transform_2(%arg0: i32) -> (i32, i32) {
    %c0_i32 = arith.constant 0 : i32
    %c0_i32_0 = arith.constant 0 : i32
    %c0_i32_1 = arith.constant 0 : i32
    return %c0_i32, %c0_i32_0 : i32, i32
  }
  func.func @transform_3(%arg0: i32) -> (i32, i32) {
    %c0_i32 = arith.constant 0 : i32
    %c0_i32_0 = arith.constant 0 : i32
    %c0_i32_1 = arith.constant 0 : i32
    return %c0_i32, %c0_i32_0 : i32, i32
  }
  func.func @transform_4(%arg0: i32) -> (i32, i32) {
    %c0_i32 = arith.constant 0 : i32
    %c0_i32_0 = arith.constant 0 : i32
    %c0_i32_1 = arith.constant 0 : i32
    return %c0_i32, %c0_i32_0 : i32, i32
  }
  func.func @transform_5(%arg0: i32) -> (i32, i32) {
    %c0_i32 = arith.constant 0 : i32
    %c0_i32_0 = arith.constant 0 : i32
    %c0_i32_1 = arith.constant 0 : i32
    return %c0_i32, %c0_i32_0 : i32, i32
  }
  func.func @transform_6(%arg0: i32) -> (i32, i32) {
    %c0_i32 = arith.constant 0 : i32
    %c0_i32_0 = arith.constant 0 : i32
    %c0_i32_1 = arith.constant 0 : i32
    return %c0_i32, %c0_i32_0 : i32, i32
  }
  func.func @transform_7(%arg0: i32) -> (i32, i32) {
    %c0_i32 = arith.constant 0 : i32
    %c0_i32_0 = arith.constant 0 : i32
    return %arg0, %c0_i32 : i32, i32
  }
  func.func @transform_8(%arg0: i32) -> (i32, i32) {
    %c0_i32 = arith.constant 0 : i32
    %c0_i32_0 = arith.constant 0 : i32
    %c0_i32_1 = arith.constant 0 : i32
    return %c0_i32, %c0_i32_0 : i32, i32
  }
  func.func @transform_9(%arg0: i32) -> (i32, i32) {
    %c0_i32 = arith.constant 0 : i32
    %c0_i32_0 = arith.constant 0 : i32
    %c0_i32_1 = arith.constant 0 : i32
    return %c0_i32, %c0_i32_0 : i32, i32
  }
  func.func @transform_10(%arg0: i32) -> (i32, i32) {
    %c0_i32 = arith.constant 0 : i32
    %c0_i32_0 = arith.constant 0 : i32
    %c0_i32_1 = arith.constant 0 : i32
    return %c0_i32, %c0_i32_0 : i32, i32
  }
  func.func @transform_11(%arg0: i32) -> (i32, i32) {
    %c0_i32 = arith.constant 0 : i32
    %c0_i32_0 = arith.constant 0 : i32
    %c0_i32_1 = arith.constant 0 : i32
    return %c0_i32, %c0_i32_0 : i32, i32
  }
  func.func @transform_12(%arg0: i32) -> (i32, i32) {
    %c0_i32 = arith.constant 0 : i32
    %c0_i32_0 = arith.constant 0 : i32
    return %arg0, %c0_i32 : i32, i32
  }
  func.func @transform_13(%arg0: i32) -> (i32, i32) {
    %c0_i32 = arith.constant 0 : i32
    %c0_i32_0 = arith.constant 0 : i32
    return %arg0, %c0_i32 : i32, i32
  }
  func.func @transform_14(%arg0: i32) -> (i32, i32) {
    %c0_i32 = arith.constant 0 : i32
    %c0_i32_0 = arith.constant 0 : i32
    return %arg0, %c0_i32 : i32, i32
  }
}

</mosaic_0001>

<bundles_post_ra>
// kernel: tpu_custom_call.1
= control target key start
LH: loop header
LB: loop body
LE: loop exit
PB: predicated region body
PF: predicated region fallthrough
CT: control target
= control target key end

     0   :  { %s6103_s0 = inlined_call_operand.hbm [shape: f32[256,128], index: 0, kind: input, shape index: {}]   ;;  %s6104_s1 = inlined_call_operand.hbm [shape: bf16[128,512], index: 1, kind: input, shape index: {}]   ;;  %s6105_s2 = inlined_call_operand.hbm [shape: f32[1,512], index: 2, kind: input, shape index: {}]   ;;  %s6106_s3 = inlined_call_operand.hbm [shape: bf16[512,128], index: 3, kind: input, shape index: {}]   ;;  %s6107_s4 = inlined_call_operand.vmem [shape: f32[1,128], index: 4, kind: input, shape index: {}]   ;;  %s6108_s5 = inlined_call_operand.hbm [shape: bf16[512,128], index: 5, kind: input, shape index: {}]   ;;  %s6109_s6 = inlined_call_operand.vmem [shape: f32[1,128], index: 6, kind: input, shape index: {}]   ;;  %s6110_s7 = inlined_call_operand.hbm [shape: f32[256,128], index: 7, kind: input, shape index: {}]   ;;  %s6111_s8 = inlined_call_operand.hbm [shape: bf16[128,512], index: 8, kind: input, shape index: {}]   ;;  %s6112_s9 = inlined_call_operand.vmem [shape: f32[1,512], index: 9, kind: input, shape index: {}]   ;;  %s6113_s10 = inlined_call_operand.hbm [shape: bf16[512,128], index: 10, kind: input, shape index: {}]   ;;  %s6114_s11 = inlined_call_operand.vmem [shape: f32[1,128], index: 11, kind: input, shape index: {}]   ;;  %s6115_s12 = inlined_call_operand.hbm [shape: f32[256,128], index: 12, kind: output, shape index: {0}]   ;;  %s6116_s13 = inlined_call_operand.hbm [shape: f32[256,128], index: 13, kind: output, shape index: {1}]   ;;  %s6117_s14 = inlined_call_operand.hbm [shape: f32[256,128], index: 14, kind: output, shape index: {2}]  }
   0x1   :  { %6123 = sst [smem:[#allocation29_spill]] %s6103_s0 }
   0x2   :  { %6124 = sst [smem:[#allocation30_spill]] %s6104_s1 }
   0x3   :  { %6125 = sst [smem:[#allocation31_spill]] %s6105_s2 }
   0x4   :  { %6126 = sst [smem:[#allocation32_spill]] %s6106_s3 }
   0x5   :  { %6127 = sst [smem:[#allocation33_spill]] %s6108_s5 }
   0x6   :  { %6128 = sst [smem:[#allocation34_spill]] %s6111_s8 }
   0x7   :  { %6129 = sst [smem:[#allocation35_spill]] %s6112_s9 }
   0x8   :  { %6130 = sst [smem:[#allocation36_spill]] %s6113_s10 }
   0x9   :  { %6131 = sst [smem:[#allocation37_spill]] %s6114_s11 }
   0xa   :  { %6132 = sst [smem:[#allocation38_spill]] %s6115_s12 }
   0xb   :  { %6133 = sst [smem:[#allocation39_spill]] %s6116_s13 }
   0xc   :  { %6134 = sst [smem:[#allocation40_spill]] %s6117_s14 }
   0xd   :  { %20 = vsyncpa [#allocation3], 0 }
   0xe   :  { %22 = vsyncpa [#allocation3 + $0x1], 0 }
   0xf   :  { %23 = vsyncpa [#allocation6], 0 }
  0x10   :  { %24 = vsyncpa [#allocation9], 0 }
  0x11   :  { %25 = vsyncpa [#allocation12], 0 }
  0x12   :  { %27 = vsyncpa [#allocation12 + $0x1], 0 }
  0x13   :  { %28 = vsyncpa [#allocation15], 0 }
  0x14   :  { %29 = vsyncpa [#allocation4], 0 }
  0x15   :  { %31 = vsyncpa [#allocation4 + $0x1], 0 }
  0x16   :  { %32 = vsyncpa [#allocation18], 0 }
  0x17   :  { %34 = vsyncpa [#allocation18 + $0x1], 0  ;;  %s5199_s29 = smov 0   ;;  %s5201_s30 = smov 0  }
  0x18   :  { %s5203_s15 = smov 0   ;;  %s5205_s16 = smov 0  }
  0x19 LB: > { %s6135_s1 = sld [smem:[#allocation30_spill]]  ;;  %s5223_s20 = sadd.s32 4294967295, %s5108_s16   ;;  %s5108_s16 = sphi %s5205_s16, %s6162_s16   ;;  %s5104_s15 = sphi %s5203_s15, %s6161_s15   ;;  %s5100_s30 = sphi %s5201_s30, %s6160_s30   ;;  %s5096_s29 = sphi %s5199_s29, %s6159_s29  }
  0x1a   : > { %p3651_p0 = scmp.ge.s32.totalorder %s5108_s16, 1  ;;  %p61_p1 = scmp.eq.s32.totalorder %s5223_s20, 0 }
  0x1b   : > { %p385_p2 = scmp.lt.s32.totalorder %s5108_s16, 3  ;;  %s5110_s22 = smov [#allocation5]  }
  0x1c   : > { %s398_s23 = sshll.u32 %s5110_s22, 4  ;;  %s6137_s3 = sld [smem:[#allocation32_spill]]  ;;  %s399_s23 = int_to_ptr.vmem [resolvable:$true] %s398_s23 }
  0x1d   : > { %p5228_p3 = pnand %p3651_p0, %p385_p2  ;;  %s5111_s28 = smov [#allocation8]  }
  0x1e   : > { %s424_s17 = sshll.u32 %s5111_s28, 4  ;;  %s5112_s18 = smov 256   ;;  %s425_s17 = int_to_ptr.vmem [resolvable:$true] %s424_s17 }
  0x1f   : > { %s396_s19 = sshll.u32 %s6135_s1, 4  ;;  %p4527_p4 = pneg %p5228_p3  ;;  %s397_s19 = int_to_ptr.hbm [resolvable:$true] %s396_s19 }
  0x20   : > { %s5113_s22 = smov 16   ;;  %s5114_s1 = smov 64  }
  0x21   : > { %p5240_p6 = pnand %p4527_p4, %p61_p1  ;;  %s5115_s24 = smov 4  }
  0x22   : > { %s422_s26 = sshll.u32 %s6137_s3, 4  ;;  %s6139_s8 = sld [smem:[#allocation34_spill]]  ;;  %s423_s26 = int_to_ptr.hbm [resolvable:$true] %s422_s26 }
  0x23   : > { %4530 = dma.hbm_to_vmem [thread:$0]  (!%p5240_p6), %s397_s19, 4096, %s399_s23, [#allocation6], %s5112_s18, %s5112_s18, %s5113_s22  }
  0x24   : > { %4536 = dma.hbm_to_vmem [thread:$0]  (!%p5240_p6), %s423_s26, 4096, %s425_s17, [#allocation9], %s5114_s1, %s5114_s1, %s5115_s24  }
  0x25   : > { %s5116_s14 = smov [#allocation13]   ;;  %s6140_s2 = sld [smem:[#allocation31_spill]] }
  0x26   : > { %s458_s13 = sshll.u32 %s5116_s14, 4  ;;  %s5117_s19 = smov [#allocation7]   ;;  %s459_s13 = int_to_ptr.vmem [resolvable:$true] %s458_s13 }
  0x27   : > { %s413_s23 = sshll.u32 %s5117_s19, 4  ;;  %s6141_s5 = sld [smem:[#allocation33_spill]]  ;;  %s414_s23 = int_to_ptr.vmem [resolvable:$true] %s413_s23 }
  0x28   : > { %s456_s12 = sshll.u32 %s6139_s8, 4  ;;  %s6142_s10 = sld [smem:[#allocation36_spill]]  ;;  %s457_s12 = int_to_ptr.hbm [resolvable:$true] %s456_s12 }
  0x29   : > { %4542 = dma.hbm_to_vmem [thread:$0]  (!%p5240_p6), %s457_s12, 4096, %s459_s13, [#allocation12], %s5112_s18, %s5112_s18, %s5113_s22  }
  0x2a   : > { %s5118_s13 = smov [#allocation10]   ;;  %s5119_s22 = smov [#allocation14]  }
  0x2b   : > { %s411_s9 = sshll.u32 %s6140_s2, 4  ;;  %s441_s18 = sshll.u32 %s5118_s13, 4  ;;  %s412_s9 = int_to_ptr.hbm [resolvable:$true] %s411_s9  ;;  %s442_s18 = int_to_ptr.vmem [resolvable:$true] %s441_s18 }
  0x2c   : > { %4533 = dma.hbm_to_vmem [thread:$0]  (!%p5240_p6), %s412_s9, 64, %s414_s23, [#allocation6]  }
  0x2d   : > { %s439_s3 = sshll.u32 %s6141_s5, 4  ;;  %s475_s9 = sshll.u32 %s5119_s22, 4  ;;  %s440_s3 = int_to_ptr.hbm [resolvable:$true] %s439_s3  ;;  %s476_s9 = int_to_ptr.vmem [resolvable:$true] %s475_s9 }
  0x2e   : > { %s473_s12 = sshll.u32 %s6142_s10, 4  ;;  %s6121_s25 = sadd.s32 4294967294, %s5108_s16   ;;  %s474_s12 = int_to_ptr.hbm [resolvable:$true] %s473_s12 }
  0x2f   : > { %4539 = dma.hbm_to_vmem [thread:$0]  (!%p5240_p6), %s440_s3, 4096, %s442_s18, [#allocation9], %s5114_s1, %s5114_s1, %s5115_s24  }
  0x30   : > { %4545 = dma.hbm_to_vmem [thread:$0]  (!%p5240_p6), %s474_s12, 4096, %s476_s9, [#allocation15], %s5114_s1, %s5114_s1, %s5115_s24  }
  0x31   : > { %s5270_s28 = sadd.s32 1, %s5108_s16   ;;  %s47_s23 = sadd.s32 1, %s5104_s15 }
  0x32   : > { %s44_s19 = ssub.s32 %s5108_s16, %s5270_s28  ;;  %p54_p8 = scmp.ne.s32.totalorder %s5104_s15, %s5100_s30 }
  0x33   : > { %p45_p7 = scmp.eq.s32.totalorder %s44_s19, 0  ;;  %p55_p9 = scmp.eq.s32.totalorder %s5108_s16, 0 }
  0x34   : > { %p60_p10 = scmp.ne.s32.totalorder %s5100_s30, %s5096_s29  ;;  %p320_p13 = scmp.eq.s32.totalorder %s5223_s20, 1 }
  0x35   : > { %s5281_s26 = scalar_select %p45_p7, %s5104_s15, %s47_s23  }
  0x36   : > { %p5283_p11 = por %p55_p9, %p54_p8  ;;  %p5289_p12 = por %p61_p1, %p60_p10 }
  0x37   : > { %6143 = sst [smem:[#allocation28_spill]] %s5281_s26  ;;  %p326_p0 = scmp.eq.s32.totalorder %s6121_s25, 1 }
  0x38   : > { %p4569_p2 = scmp.lt.s32.totalorder %s5108_s16, 2  ;;  %s492_s27 = sand.u32 1, %s5104_s15  }
  0x39   : > { %p5298_p4 = por %p320_p13, %p54_p8  ;;  %p5302_p6 = por %p326_p0, %p60_p10 }
  0x3a   : > { %s5306_s11 = sshll.u32 %s492_s27, 7  ;;  %s6122_s14 = sshll.u32 %s5108_s16, 7 }
  0x3b   : > { %s6148_s0 = sld [smem:[#allocation29_spill]]  ;;  %s496_s22 = scalar_lea.vmem [#allocation2], %s5306_s11 }
  0x3c   : > { %s504_s9 = sshll.u32 %s496_s22, 4  ;;  %p5317_p7 = pnand %p4569_p2, %p5283_p11  ;;  %s505_s9 = int_to_ptr.vmem [resolvable:$true] %s504_s9 }
  0x3d   : > { %s493_s25 = scalar_lea.sflag [#allocation3], %s492_s27 }
  0x3e   : > { %p4906_p9 = pneg %p5317_p7 }
  0x41   : > { %s501_s18 = scalar_lea.hbm %s6148_s0, %s6122_s14  ;;  %s4909_s17 = scalar_lea.hbm %s6148_s0, 256 }
  0x42   : > { %s502_s19 = sshll.u32 %s501_s18, 4  ;;  %s503_s19 = int_to_ptr.hbm [resolvable:$true] %s502_s19 }
  0x43   : > { %s4902_s2 = sshra.s32 %s503_s19, 4  ;;  %s4903_s2 = int_to_ptr.hbm [resolvable:$true] %s4902_s2 }
  0x44   : > { %s4904_s5 = scalar_lea.hbm %s4903_s2, 128  ;;  %p4910_p11 = scmp.lt.s32.totalorder %s4903_s2, %s6148_s0 }
  0x45   : > { %p4905_p8 = scmp.ne.s32.totalorder %s4903_s2, %s4904_s5  ;;  %p4911_p0 = scmp.lt.s32.totalorder %s4909_s17, %s4904_s5 }
  0x47   : > { %p4907_p10 = pnand %p4906_p9, %p4905_p8  ;;  %p4912_p2 = por %p4911_p0, %p4910_p11 }
  0x49   : > { %p4908_p13 = pneg %p4907_p10 }
  0x4b   : > { %p4913_p5 = pnand %p4912_p2, %p4908_p13 }
  0x4d   : > { %4916 = shalt.err (!%p4913_p5)
}
  0x4e   : > { %s5120_s27 = smov 128   ;;  %s5121_s14 = smov 8  }
  0x4f   : > { %4549 = dma.hbm_to_vmem [thread:$0]  (!%p5317_p7), %s503_s19, 2048, %s505_s9, %s493_s25, %s5120_s27, %s5120_s27, %s5121_s14  }
  0x50   : > { %s6150_s8 = sshll.u32 %s5108_s16, 7  ;;  %s518_s18 = scalar_lea.vmem [#allocation11], %s5306_s11 }
  0x51   : > { %s523_s10 = scalar_lea.hbm %s6110_s7, %s6150_s8  ;;  %s526_s2 = sshll.u32 %s518_s18, 4  ;;  %s527_s2 = int_to_ptr.vmem [resolvable:$true] %s526_s2 }
  0x52   : > { %s524_s5 = sshll.u32 %s523_s10, 4  ;;  %s514_s17 = sand.u32 1, %s5108_s16   ;;  %s525_s5 = int_to_ptr.hbm [resolvable:$true] %s524_s5 }
  0x53   : > { %s515_s22 = scalar_lea.sflag [#allocation12], %s514_s17  ;;  %s4932_s0 = sshra.s32 %s525_s5, 4  ;;  %s4933_s0 = int_to_ptr.hbm [resolvable:$true] %s4932_s0 }
  0x54   : > { %s4934_s26 = scalar_lea.hbm %s4933_s0, 128  ;;  %s4939_s19 = scalar_lea.hbm %s6110_s7, 256 }
  0x55   : > { %p4935_p5 = scmp.ne.s32.totalorder %s4933_s0, %s4934_s26  ;;  %p4940_p13 = scmp.lt.s32.totalorder %s4933_s0, %s6110_s7 }
  0x56   : > { %p4941_p11 = scmp.lt.s32.totalorder %s4939_s19, %s4934_s26 }
  0x57   : > { %p4937_p8 = pnand %p4935_p5, %p4906_p9 }
  0x58   : > { %p4942_p0 = por %p4941_p11, %p4940_p13 }
  0x59   : > { %p4938_p10 = pneg %p4937_p8 }
  0x5b   : > { %p4943_p2 = pnand %p4942_p0, %p4938_p10 }
  0x5d   : > { %4946 = shalt.err (!%p4943_p2)
}
  0x5e   : > { %4552 = dma.hbm_to_vmem [thread:$0]  (!%p5317_p7), %s525_s5, 2048, %s527_s2, %s515_s22, %s5120_s27, %s5120_s27, %s5121_s14  }
  0x5f   : > { %538 = sbr.rel (%p5228_p3) target bundleno = 1247 (0x4df), region = 68  ;;  %s5355_s10 = sand.u32 (!%p5228_p3), 1, %s5100_s30  }
  0x60   : > { %s5358_s12 = sshll.u32 (!%p5228_p3), %s5355_s10, 7  ;;  %s541_s0 = scalar_lea.sflag (!%p5228_p3), [#allocation3], %s5355_s10 }
  0x61   : > { %s5362_s26 = scalar_lea.vmem (!%p5228_p3), [#allocation2], %s5358_s12 }
  0x64   : > { %5063 = dma.done.wait (%p5289_p12), %s541_s0, 2048  }
  0x65   : > { %5065 = vsyncadd (%p5289_p12), %s541_s0, 4294965248 }
  0x66   : > { %5067 = dma.done.wait (%p61_p1), [#allocation6], 4160  }
  0x67   : > { %5069 = vsyncadd (%p61_p1), [#allocation6], 4294963136 }
  0x68   : > { %5071 = dma.done.wait (%p61_p1), [#allocation9], 8192  }
  0x69   : > { %5073 = vsyncadd (%p61_p1), [#allocation9], 4294959104  ;;  %s570_s21 = sand.u32 1, %s5223_s20   ;;  %s5380_s23 = scalar_lea.vmem [#allocation11], %s5358_s12 }
  0x6a   : > { %s571_s14 = scalar_lea.sflag [#allocation12], %s570_s21 }
  0x6b   : > { %5075 = dma.done.wait (%p5289_p12), %s571_s14, 2048  }
  0x6c   : > { %5077 = vsyncadd (%p5289_p12), %s571_s14, 4294965248 }
  0x6d   : > { %5079 = dma.done.wait (%p61_p1), [#allocation12], 4096  }
  0x6e   : > { %5081 = vsyncadd (%p61_p1), [#allocation12], 4294963200 }
  0x6f   : > { %5083 = dma.done.wait (%p61_p1), [#allocation15], 4096  }
  0x70   : > { %5085 = vsyncadd (%p61_p1), [#allocation15], 4294963200  ;;  %v3791_v0 = vld [vmem:[#allocation5 + $0xe0] sm:$0xf]  ;;  %v4360_v1 = vld [vmem:[#allocation5 + $0xec] sm:$0xf0] }
  0x71   : > { %v4358_v2 = vld [vmem:[#allocation5 + $0xe4] sm:$0xf]  ;;  %v3792_v3 = vor.u32 %v4360_v1, %v3791_v0  ;;  %v3793_v4 = vld [vmem:[#allocation5 + $0xf0] sm:$0xf0]  ;;  %v3799_v5 = vld [vmem:[#allocation5 + $0xe8] sm:$0xf] }
  0x72   : > { %v4361_v6 = vld [vmem:[#allocation5 + $0xf4] sm:$0xf0]  ;;  %v3796_v7 = vor.u32 %v4358_v2, %v3793_v4  ;;  %v4359_v9 = vld [vmem:[#allocation5 + $0xec] sm:$0xf]  ;;  %v3801_v10 = vld [vmem:[#allocation5 + $0xf8] sm:$0xf0] }
  0x73   : > { %v3800_v8 = vor.u32 %v4361_v6, %v3799_v5  ;;  %v3775_v11 = vld [vmem:[#allocation5 + $0xc0] sm:$0xf]  ;;  %876 = vmatpush.bf16.msra.mxu0 %v3792_v3  ;;  %v3804_v12 = vor.u32 %v4359_v9, %v3801_v10  ;;  %v4356_v13 = vld [vmem:[#allocation5 + $0xcc] sm:$0xf0]  ;;  %v4354_v14 = vld [vmem:[#allocation5 + $0xc4] sm:$0xf] }
  0x74   : > { %v3777_v15 = vld [vmem:[#allocation5 + $0xd0] sm:$0xf0]  ;;  %925 = vmatpush.bf16.msra.mxu1 %v3796_v7  ;;  %v3776_v16 = vor.u32 %v4356_v13, %v3775_v11  ;;  %v3783_v18 = vld [vmem:[#allocation5 + $0xc8] sm:$0xf]  ;;  %v4357_v19 = vld [vmem:[#allocation5 + $0xd4] sm:$0xf0] }
  0x75   : > { %974 = vmatpush.bf16.msra.mxu2 %v3800_v8  ;;  %v3780_v17 = vor.u32 %v4354_v14, %v3777_v15  ;;  %v4355_v20 = vld [vmem:[#allocation5 + $0xcc] sm:$0xf]  ;;  %1023 = vmatpush.bf16.msra.mxu3 %v3804_v12  ;;  %v3784_v21 = vor.u32 %v4357_v19, %v3783_v18  ;;  %v3785_v22 = vld [vmem:[#allocation5 + $0xd8] sm:$0xf0]  ;;  %v3759_v23 = vld [vmem:[#allocation5 + $0xa0] sm:$0xf] }
  0x76   : > { %v4352_v24 = vld [vmem:[#allocation5 + $0xac] sm:$0xf0]  ;;  %v3788_v25 = vor.u32 %v4355_v20, %v3785_v22  ;;  %v4350_v26 = vld [vmem:[#allocation5 + $0xa4] sm:$0xf]  ;;  %v3761_v27 = vld [vmem:[#allocation5 + $0xb0] sm:$0xf0] }
  0x77   : > { %v3767_v28 = vld [vmem:[#allocation5 + $0xa8] sm:$0xf]  ;;  %877 = vmatpush.bf16.msra.mxu0 %v3776_v16  ;;  %v3760_v29 = vor.u32 %v4352_v24, %v3759_v23  ;;  %v4353_v30 = vld [vmem:[#allocation5 + $0xb4] sm:$0xf0]  ;;  %v4351_v31 = vld [vmem:[#allocation5 + $0xac] sm:$0xf]  ;;  %v3764_v33 = vor.u32 %v4350_v26, %v3761_v27 }
  0x78   : > { %v3769_v32 = vld [vmem:[#allocation5 + $0xb8] sm:$0xf0]  ;;  %926 = vmatpush.bf16.msra.mxu1 %v3780_v17  ;;  %v3768_v34 = vor.u32 %v4353_v30, %v3767_v28  ;;  %v3743_v35 = vld [vmem:[#allocation5 + $0x80] sm:$0xf]  ;;  %v4348_v36 = vld [vmem:[#allocation5 + $0x8c] sm:$0xf0] }
  0x79   : > { %975 = vmatpush.bf16.msra.mxu2 %v3784_v21  ;;  %v4346_v37 = vld [vmem:[#allocation5 + $0x84] sm:$0xf]  ;;  %1024 = vmatpush.bf16.msra.mxu3 %v3788_v25  ;;  %v3772_v38 = vor.u32 %v4351_v31, %v3769_v32  ;;  %v3745_v39 = vld [vmem:[#allocation5 + $0x90] sm:$0xf0]  ;;  %v3751_v40 = vld [vmem:[#allocation5 + $0x88] sm:$0xf]  ;;  %v3744_v44 = vor.u32 %v4348_v36, %v3743_v35 }
  0x7a   : > { %v4349_v41 = vld [vmem:[#allocation5 + $0x94] sm:$0xf0]  ;;  %v4347_v42 = vld [vmem:[#allocation5 + $0x8c] sm:$0xf]  ;;  %v3753_v43 = vld [vmem:[#allocation5 + $0x98] sm:$0xf0]  ;;  %v3748_v45 = vor.u32 %v4346_v37, %v3745_v39 }
  0x7b   : > { %878 = vmatpush.bf16.msra.mxu0 %v3760_v29  ;;  %v3752_v46 = vor.u32 %v4349_v41, %v3751_v40  ;;  %v3727_v47 = vld [vmem:[#allocation5 + $0x60] sm:$0xf]  ;;  %v4344_v48 = vld [vmem:[#allocation5 + $0x6c] sm:$0xf0]  ;;  %v4342_v49 = vld [vmem:[#allocation5 + $0x64] sm:$0xf]  ;;  %v3756_v50 = vor.u32 %v4347_v42, %v3753_v43 }
  0x7c   : > { %927 = vmatpush.bf16.msra.mxu1 %v3764_v33  ;;  %v3729_v51 = vld [vmem:[#allocation5 + $0x70] sm:$0xf0]  ;;  %v3735_v52 = vld [vmem:[#allocation5 + $0x68] sm:$0xf]  ;;  %v4345_v53 = vld [vmem:[#allocation5 + $0x74] sm:$0xf0]  ;;  %v3728_v56 = vor.u32 %v4344_v48, %v3727_v47 }
  0x7d   : > { %976 = vmatpush.bf16.msra.mxu2 %v3768_v34  ;;  %1025 = vmatpush.bf16.msra.mxu3 %v3772_v38  ;;  %v4343_v54 = vld [vmem:[#allocation5 + $0x6c] sm:$0xf]  ;;  %v3737_v55 = vld [vmem:[#allocation5 + $0x78] sm:$0xf0]  ;;  %v3732_v57 = vor.u32 %v4342_v49, %v3729_v51  ;;  %v3736_v58 = vor.u32 %v4345_v53, %v3735_v52  ;;  %v3711_v59 = vld [vmem:[#allocation5 + $0x40] sm:$0xf] }
  0x7e   : > { %v4340_v60 = vld [vmem:[#allocation5 + $0x4c] sm:$0xf0]  ;;  %v4338_v61 = vld [vmem:[#allocation5 + $0x44] sm:$0xf]  ;;  %v3740_v62 = vor.u32 %v4343_v54, %v3737_v55  ;;  %v3713_v63 = vld [vmem:[#allocation5 + $0x50] sm:$0xf0] }
  0x7f   : > { %879 = vmatpush.bf16.msra.mxu0 %v3744_v44  ;;  %v3719_v0 = vld [vmem:[#allocation5 + $0x48] sm:$0xf]  ;;  %v4341_v1 = vld [vmem:[#allocation5 + $0x54] sm:$0xf0]  ;;  %v4339_v2 = vld [vmem:[#allocation5 + $0x4c] sm:$0xf]  ;;  %v3712_v4 = vor.u32 %v4340_v60, %v3711_v59  ;;  %v3716_v5 = vor.u32 %v4338_v61, %v3713_v63 }
  0x80   : > { %928 = vmatpush.bf16.msra.mxu1 %v3748_v45  ;;  %v3721_v3 = vld [vmem:[#allocation5 + $0x58] sm:$0xf0]  ;;  %v3720_v6 = vor.u32 %v4341_v1, %v3719_v0  ;;  %v3695_v7 = vld [vmem:[#allocation5 + $0x20] sm:$0xf]  ;;  %v4336_v8 = vld [vmem:[#allocation5 + $0x2c] sm:$0xf0] }
  0x81   : > { %977 = vmatpush.bf16.msra.mxu2 %v3752_v46  ;;  %1026 = vmatpush.bf16.msra.mxu3 %v3756_v50  ;;  %v4334_v9 = vld [vmem:[#allocation5 + $0x24] sm:$0xf]  ;;  %v3724_v10 = vor.u32 %v4339_v2, %v3721_v3  ;;  %v3697_v11 = vld [vmem:[#allocation5 + $0x30] sm:$0xf0]  ;;  %v3703_v12 = vld [vmem:[#allocation5 + $0x28] sm:$0xf]  ;;  %v3696_v16 = vor.u32 %v4336_v8, %v3695_v7 }
  0x82   : > { %v4337_v13 = vld [vmem:[#allocation5 + $0x34] sm:$0xf0]  ;;  %v4335_v14 = vld [vmem:[#allocation5 + $0x2c] sm:$0xf]  ;;  %v3705_v15 = vld [vmem:[#allocation5 + $0x38] sm:$0xf0]  ;;  %v3700_v20 = vor.u32 %v4334_v9, %v3697_v11 }
  0x83   : > { %880 = vmatpush.bf16.msra.mxu0 %v3728_v56  ;;  %v3679_v17 = vld [vmem:[#allocation5] sm:$0xf]  ;;  %v4332_v18 = vld [vmem:[#allocation5 + $0xc] sm:$0xf0]  ;;  %v4330_v19 = vld [vmem:[#allocation5 + $0x4] sm:$0xf]  ;;  %v3704_v21 = vor.u32 %v4337_v13, %v3703_v12  ;;  %v3708_v24 = vor.u32 %v4335_v14, %v3705_v15 }
  0x84   : > { %929 = vmatpush.bf16.msra.mxu1 %v3732_v57  ;;  %v3681_v22 = vld [vmem:[#allocation5 + $0x10] sm:$0xf0]  ;;  %v3687_v23 = vld [vmem:[#allocation5 + $0x8] sm:$0xf]  ;;  %v4333_v25 = vld [vmem:[#allocation5 + $0x14] sm:$0xf0]  ;;  %v3680_v28 = vor.u32 %v4332_v18, %v3679_v17 }
  0x85   : > { %978 = vmatpush.bf16.msra.mxu2 %v3736_v58  ;;  %1027 = vmatpush.bf16.msra.mxu3 %v3740_v62  ;;  %v4331_v26 = vld [vmem:[#allocation5 + $0xc] sm:$0xf]  ;;  %v3689_v27 = vld [vmem:[#allocation5 + $0x18] sm:$0xf0]  ;;  %v650_v29 = vld [vmem:[%s5362_s26] sm:$0xff]  ;;  %v3684_v31 = vor.u32 %v4330_v19, %v3681_v22  ;;  %v3688_v32 = vor.u32 %v4333_v25, %v3687_v23  ;;  %s5592_s13 = scalar_lea.vmem [#allocation17], %s5358_s12 }
  0x86   : > { %v651_v30 = vld [vmem:[%s5362_s26 + $0x8] sm:$0xff]  ;;  %v3692_v33 = vor.u32 %v4331_v26, %v3689_v27  ;;  %v4385_v34 = vld [vmem:[#allocation8 + $0xb8] sm:$0xff]  ;;  %v4384_v39 = vld [vmem:[#allocation8 + $0xb0] sm:$0xff]  ;;  %s5706_s5 = scalar_lea.vmem [#allocation19], %s5358_s12  ;;  %s6151_s25 = sld [smem:[#allocation35_spill]] }
  0x87   : > { %881 = vmatpush.bf16.msra.mxu0 %v3712_v4  ;;  %v666_v35 = vpack.c.bf16 %v651_v30, %v650_v29  ;;  %v4393_v36 = vld [vmem:[#allocation8 + $0xf8] sm:$0xff]  ;;  %v4368_v40 = vld [vmem:[#allocation8 + $0x30] sm:$0xff]  ;;  %v4383_v46 = vld [vmem:[#allocation8 + $0xa8] sm:$0xff]  ;;  %s6152_s8 = sld [smem:[#allocation37_spill]]  ;;  %s5979_s11 = sshll.u32 %s5223_s20, 7 }
  0x88   : > { %930 = vmatpush.bf16.msra.mxu1 %v3716_v5  ;;  %v4369_v37 = vld [vmem:[#allocation8 + $0x38] sm:$0xff]  ;;  %v4392_v41 = vld [vmem:[#allocation8 + $0xf0] sm:$0xff]  ;;  %v4367_v47 = vld [vmem:[#allocation8 + $0x28] sm:$0xff]  ;;  %s6153_s14 = sld [smem:[#allocation39_spill]]  ;;  %s3414_s1 = sshll.u32 %s5592_s13, 4  ;;  %s3415_s1 = int_to_ptr.vmem [resolvable:$true] %s3414_s1 }
  0x89   : > { %979 = vmatpush.bf16.msra.mxu2 %v3720_v6  ;;  %1028 = vmatpush.bf16.msra.mxu3 %v3724_v10  ;;  %v4377_v38 = vld [vmem:[#allocation8 + $0x78] sm:$0xff]  ;;  %v4376_v42 = vld [vmem:[#allocation8 + $0x70] sm:$0xff]  ;;  %v4391_v48 = vld [vmem:[#allocation8 + $0xe8] sm:$0xff]  ;;  %s6154_s17 = sld [smem:[#allocation40_spill]] }
  0x8a   : > { %v652_v43 = vld [vmem:[%s5362_s26 + $0x10] sm:$0xff]  ;;  %v653_v44 = vld [vmem:[%s5362_s26 + $0x18] sm:$0xff]  ;;  %v654_v50 = vld [vmem:[%s5362_s26 + $0x20] sm:$0xff] }
  0x8b   : > { %882 = vmatpush.bf16.msra.mxu0 %v3696_v16  ;;  %v667_v45 = vpack.c.bf16 %v653_v44, %v652_v43  ;;  %v4375_v49 = vld [vmem:[#allocation8 + $0x68] sm:$0xff]  ;;  %v4382_v53 = vld [vmem:[#allocation8 + $0xa0] sm:$0xff]  ;;  %v657_v58 = vld [vmem:[%s5362_s26 + $0x38] sm:$0xff] }
  0x8c   : > { %931 = vmatpush.bf16.msra.mxu1 %v3700_v20  ;;  %v655_v51 = vld [vmem:[%s5362_s26 + $0x28] sm:$0xff]  ;;  %v656_v57 = vld [vmem:[%s5362_s26 + $0x30] sm:$0xff]  ;;  %v4381_v60 = vld [vmem:[#allocation8 + $0x98] sm:$0xff] }
  0x8d   : > { %980 = vmatpush.bf16.msra.mxu2 %v3704_v21  ;;  %1029 = vmatpush.bf16.msra.mxu3 %v3708_v24  ;;  %v668_v52 = vpack.c.bf16 %v655_v51, %v654_v50  ;;  %v4366_v54 = vld [vmem:[#allocation8 + $0x20] sm:$0xff]  ;;  %v669_v59 = vpack.c.bf16 %v657_v58, %v656_v57  ;;  %v4365_v61 = vld [vmem:[#allocation8 + $0x18] sm:$0xff]  ;;  %v4380_v3 = vld [vmem:[#allocation8 + $0x90] sm:$0xff] }
  0x8e   : > { %v4390_v55 = vld [vmem:[#allocation8 + $0xe0] sm:$0xff]  ;;  %v4389_v62 = vld [vmem:[#allocation8 + $0xd8] sm:$0xff]  ;;  %v4364_v4 = vld [vmem:[#allocation8 + $0x10] sm:$0xff]  ;;  %s4982_s0 = scalar_lea.hbm %s6153_s14, 256 }
  0x8f   : > { %883 = vmatpush.bf16.msra.mxu0 %v3680_v28  ;;  %v4374_v56 = vld [vmem:[#allocation8 + $0x60] sm:$0xff]  ;;  %v4373_v63 = vld [vmem:[#allocation8 + $0x58] sm:$0xff]  ;;  %v4388_v5 = vld [vmem:[#allocation8 + $0xd0] sm:$0xff]  ;;  %s3430_s22 = scalar_lea.hbm %s6154_s17, %s5979_s11 }
  0x90   : > { %932 = vmatpush.bf16.msra.mxu1 %v3684_v31  ;;  %v658_v0 = vld [vmem:[%s5362_s26 + $0x40] sm:$0xff]  ;;  %v659_v1 = vld [vmem:[%s5362_s26 + $0x48] sm:$0xff]  ;;  %v4372_v6 = vld [vmem:[#allocation8 + $0x50] sm:$0xff] }
  0x91   : > { %981 = vmatpush.bf16.msra.mxu2 %v3688_v32  ;;  %1030 = vmatpush.bf16.msra.mxu3 %v3692_v33  ;;  %v670_v2 = vpack.c.bf16 %v659_v1, %v658_v0  ;;  %v660_v7 = vld [vmem:[%s5362_s26 + $0x50] sm:$0xff]  ;;  %v661_v8 = vld [vmem:[%s5362_s26 + $0x58] sm:$0xff]  ;;  %v662_v14 = vld [vmem:[%s5362_s26 + $0x60] sm:$0xff] }
  0x92   : > { %884 = vmatmul.bf16.vlgmr.msra.gmra.mxu0 %v666_v35  ;;  %v671_v9 = vpack.c.bf16 %v661_v8, %v660_v7  ;;  %v4379_v10 = vld [vmem:[#allocation8 + $0x88] sm:$0xff]  ;;  %v4378_v17 = vld [vmem:[#allocation8 + $0x80] sm:$0xff]  ;;  %v665_v21 = vld [vmem:[%s5362_s26 + $0x78] sm:$0xff] }
  0x93   : > { %933 = vmatmul.bf16.vlgmr.msra.gmra.mxu1 %v666_v35  ;;  %1428 = vmatpush.bf16.msrb.mxu0 %v4369_v37  ;;  %v4363_v11 = vld [vmem:[#allocation8 + $0x8] sm:$0xff]  ;;  %v4362_v18 = vld [vmem:[#allocation8] sm:$0xff]  ;;  %v4417_v24 = vld [vmem:[#allocation10 + $0xb8] sm:$0xff] }
  0x94   : > { %982 = vmatmul.bf16.vlgmr.msra.gmra.mxu2 %v666_v35  ;;  %1031 = vmatmul.bf16.vlgmr.msra.gmra.mxu3 %v666_v35  ;;  %v4387_v12 = vld [vmem:[#allocation8 + $0xc8] sm:$0xff]  ;;  %v4386_v19 = vld [vmem:[#allocation8 + $0xc0] sm:$0xff]  ;;  %v4401_v25 = vld [vmem:[#allocation10 + $0x38] sm:$0xff] }
  0x95   : > { %1526 = vmatpush.bf16.msrb.mxu2 %v4385_v34  ;;  %1575 = vmatpush.bf16.msrb.mxu3 %v4393_v36  ;;  %v4371_v13 = vld [vmem:[#allocation8 + $0x48] sm:$0xff]  ;;  %v4370_v22 = vld [vmem:[#allocation8 + $0x40] sm:$0xff]  ;;  %v4425_v26 = vld [vmem:[#allocation10 + $0xf8] sm:$0xff] }
  0x96   : > { %1477 = vmatpush.bf16.msrb.mxu1 %v4377_v38  ;;  %v663_v15 = vld [vmem:[%s5362_s26 + $0x68] sm:$0xff]  ;;  %v664_v20 = vld [vmem:[%s5362_s26 + $0x70] sm:$0xff]  ;;  %v4409_v27 = vld [vmem:[#allocation10 + $0x78] sm:$0xff] }
  0x97   : > { %1429 = vmatpush.bf16.msrb.mxu0 %v4368_v40  ;;  %v672_v16 = vpack.c.bf16 %v663_v15, %v662_v14  ;;  %v673_v23 = vpack.c.bf16 %v665_v21, %v664_v20  ;;  %v706_v28 = vld [vmem:[#allocation7] sm:$0xf]  ;;  %v4416_v36 = vld [vmem:[#allocation10 + $0xb0] sm:$0xff]  ;;  %v4399_v15 = vld [vmem:[#allocation10 + $0x28] sm:$0xff] }
  0x98   : > { %v5410_v30 = vperm.slane %v706_v28, 0  ;;  %v5412_v32 = vperm.slane %v706_v28, 1  ;;  %v5417_v43 = vperm.slane %v706_v28, 2  ;;  %v4408_v50 = vld [vmem:[#allocation10 + $0x70] sm:$0xff] }
  0x99   : > { %1527 = vmatpush.bf16.msrb.mxu2 %v4384_v39  ;;  %1576 = vmatpush.bf16.msrb.mxu3 %v4392_v41 }
  0x9a   : > { %1478 = vmatpush.bf16.msrb.mxu1 %v4376_v42 }
  0x9b   : > { %1430 = vmatpush.bf16.msrb.mxu0 %v4367_v47  ;;  %v4400_v47 = vld [vmem:[#allocation10 + $0x30] sm:$0xff] }
  0x9d   : > { %1528 = vmatpush.bf16.msrb.mxu2 %v4383_v46  ;;  %1577 = vmatpush.bf16.msrb.mxu3 %v4391_v48  ;;  %v4424_v48 = vld [vmem:[#allocation10 + $0xf0] sm:$0xff] }
  0x9e   : > { %1479 = vmatpush.bf16.msrb.mxu1 %v4375_v49 }
  0x9f   : > { %1431 = vmatpush.bf16.msrb.mxu0 %v4366_v54 }
  0xa1   : > { %1529 = vmatpush.bf16.msrb.mxu2 %v4382_v53  ;;  %1578 = vmatpush.bf16.msrb.mxu3 %v4390_v55 }
  0xa2   : > { %889 = vmatmul.bf16.gmra.mxu0 %v667_v45  ;;  %1480 = vmatpush.bf16.msrb.mxu1 %v4374_v56 }
  0xa3   : > { %938 = vmatmul.bf16.gmra.mxu1 %v667_v45  ;;  %1432 = vmatpush.bf16.msrb.mxu0 %v4365_v61 }
  0xa4   : > { %987 = vmatmul.bf16.gmra.mxu2 %v667_v45  ;;  %1036 = vmatmul.bf16.gmra.mxu3 %v667_v45  ;;  %v5420_v45 = vperm.slane %v706_v28, 3 }
  0xa5   : > { %1530 = vmatpush.bf16.msrb.mxu2 %v4381_v60  ;;  %1579 = vmatpush.bf16.msrb.mxu3 %v4389_v62 }
  0xa6   : > { %1481 = vmatpush.bf16.msrb.mxu1 %v4373_v63 }
  0xa7   : > { %1433 = vmatpush.bf16.msrb.mxu0 %v4364_v4 }
  0xa9   : > { %1531 = vmatpush.bf16.msrb.mxu2 %v4380_v3  ;;  %1580 = vmatpush.bf16.msrb.mxu3 %v4388_v5 }
  0xaa   : > { %1482 = vmatpush.bf16.msrb.mxu1 %v4372_v6  ;;  %v4415_v6 = vld [vmem:[#allocation10 + $0xa8] sm:$0xff] }
  0xab   : > { %1434 = vmatpush.bf16.msrb.mxu0 %v4363_v11 }
  0xad   : > { %1532 = vmatpush.bf16.msrb.mxu2 %v4379_v10  ;;  %1581 = vmatpush.bf16.msrb.mxu3 %v4387_v12 }
  0xae   : > { %1483 = vmatpush.bf16.msrb.mxu1 %v4371_v13 }
  0xaf   : > { %1435 = vmatpush.bf16.msrb.mxu0 %v4362_v18  ;;  %v4407_v18 = vld [vmem:[#allocation10 + $0x68] sm:$0xff] }
  0xb1   : > { %1533 = vmatpush.bf16.msrb.mxu2 %v4378_v17  ;;  %1582 = vmatpush.bf16.msrb.mxu3 %v4386_v19 }
  0xb2   : > { %894 = vmatmul.bf16.gmra.mxu0 %v668_v52  ;;  %1484 = vmatpush.bf16.msrb.mxu1 %v4370_v22 }
  0xb3   : > { %943 = vmatmul.bf16.gmra.mxu1 %v668_v52  ;;  %1884 = vmatpush.bf16.msra.mxu0 %v4401_v25 }
  0xb4   : > { %992 = vmatmul.bf16.gmra.mxu2 %v668_v52  ;;  %1041 = vmatmul.bf16.gmra.mxu3 %v668_v52 }
  0xb5   : > { %1982 = vmatpush.bf16.msra.mxu2 %v4417_v24  ;;  %2031 = vmatpush.bf16.msra.mxu3 %v4425_v26 }
  0xb6   : > { %1933 = vmatpush.bf16.msra.mxu1 %v4409_v27 }
  0xb7   : > { %1885 = vmatpush.bf16.msra.mxu0 %v4400_v47 }
  0xb9   : > { %1983 = vmatpush.bf16.msra.mxu2 %v4416_v36  ;;  %2032 = vmatpush.bf16.msra.mxu3 %v4424_v48 }
  0xba   : > { %1934 = vmatpush.bf16.msra.mxu1 %v4408_v50 }
  0xbb   : > { %1886 = vmatpush.bf16.msra.mxu0 %v4399_v15 }
  0xbd   : > { %1984 = vmatpush.bf16.msra.mxu2 %v4415_v6 }
  0xbe   : > { %1935 = vmatpush.bf16.msra.mxu1 %v4407_v18 }
  0xc2   : > { %899 = vmatmul.bf16.gmra.mxu0 %v669_v59 }
  0xc3   : > { %948 = vmatmul.bf16.gmra.mxu1 %v669_v59 }
  0xc4   : > { %997 = vmatmul.bf16.gmra.mxu2 %v669_v59  ;;  %1046 = vmatmul.bf16.gmra.mxu3 %v669_v59 }
  0xd2   : > { %904 = vmatmul.bf16.gmra.mxu0 %v670_v2 }
  0xd3   : > { %953 = vmatmul.bf16.gmra.mxu1 %v670_v2 }
  0xd4   : > { %1002 = vmatmul.bf16.gmra.mxu2 %v670_v2  ;;  %1051 = vmatmul.bf16.gmra.mxu3 %v670_v2 }
  0xe2   : > { %909 = vmatmul.bf16.gmra.mxu0 %v671_v9 }
  0xe3   : > { %958 = vmatmul.bf16.gmra.mxu1 %v671_v9 }
  0xe4   : > { %1007 = vmatmul.bf16.gmra.mxu2 %v671_v9  ;;  %1056 = vmatmul.bf16.gmra.mxu3 %v671_v9 }
  0xf2   : > { %914 = vmatmul.bf16.gmra.mxu0 %v672_v16 }
  0xf3   : > { %963 = vmatmul.bf16.gmra.mxu1 %v672_v16 }
  0xf4   : > { %1012 = vmatmul.bf16.gmra.mxu2 %v672_v16  ;;  %1061 = vmatmul.bf16.gmra.mxu3 %v672_v16  ;;  %v4423_v16 = vld [vmem:[#allocation10 + $0xe8] sm:$0xff] }
  0xf5   : > { %2033 = vmatpush.bf16.msra.mxu3 %v4423_v16 }
 0x102   : > { %919 = vmatmul.bf16.gmra.mxu0 %v673_v23 }
 0x103   : > { %968 = vmatmul.bf16.gmra.mxu1 %v673_v23 }
 0x104   : > { %1017 = vmatmul.bf16.gmra.mxu2 %v673_v23  ;;  %1066 = vmatmul.bf16.gmra.mxu3 %v673_v23 }
 0x10f   : > { %v885_v29 = vpop.f32.mrf.mxu0 }
 0x110   : > { %v934_v31 = vpop.f32.mrf.mxu1  ;;  %v886_v33 = vadd.f32 %v885_v29, %v5410_v30 }
 0x111   : > { %v935_v34 = vadd.f32 %v934_v31, %v5412_v32 }
 0x112   : > { %v1072_v39 = vmax.f32 %v886_v33, 0.0 }
 0x113   : > { %v1073_v42 = vmax.f32 %v935_v34, 0.0 }
 0x117   : > { %v983_v35 = vpop.f32.mrf.mxu2  ;;  %v1032_v37 = vpop.f32.mrf.mxu3 }
 0x118   : > { %v887_v38 = vpop.f32.mrf.mxu0  ;;  %v936_v41 = vpop.f32.mrf.mxu1  ;;  %v984_v52 = vadd.f32 %v983_v35, %v5417_v43  ;;  %v1033_v54 = vadd.f32 %v1032_v37, %v5420_v45 }
 0x119   : > { %v888_v40 = vadd.f32 %v887_v38, %v5410_v30  ;;  %v937_v44 = vadd.f32 %v936_v41, %v5412_v32 }
 0x11a   : > { %v1074_v61 = vmax.f32 %v984_v52, 0.0  ;;  %v1075_v63 = vmax.f32 %v1033_v54, 0.0  ;;  %v4398_v52 = vld [vmem:[#allocation10 + $0x20] sm:$0xff] }
 0x11b   : > { %v1076_v46 = vmax.f32 %v888_v40, 0.0  ;;  %v1077_v49 = vmax.f32 %v937_v44, 0.0  ;;  %v4414_v40 = vld [vmem:[#allocation10 + $0xa0] sm:$0xff]  ;;  %1887 = vmatpush.bf16.msra.mxu0 %v4398_v52 }
 0x11c   : > { %1985 = vmatpush.bf16.msra.mxu2 %v4414_v40  ;;  %v4422_v54 = vld [vmem:[#allocation10 + $0xe0] sm:$0xff] }
 0x11d   : > { %v5422_v51 = vpack.c.bf16 %v1076_v46, %v1072_v39  ;;  %v5425_v53 = vpack.c.bf16 %v1077_v49, %v1073_v42  ;;  %2034 = vmatpush.bf16.msra.mxu3 %v4422_v54 }
 0x11f   : > { %v985_v55 = vpop.f32.mrf.mxu2  ;;  %1436 = vmatmul.bf16.vlgmr.msrb.gmra.mxu0 %v5422_v51  ;;  %v1034_v57 = vpop.f32.mrf.mxu3  ;;  %1485 = vmatmul.bf16.vlgmr.msrb.gmra.mxu1 %v5425_v53 }
 0x120   : > { %v986_v56 = vadd.f32 %v985_v55, %v5417_v43  ;;  %v890_v58 = vpop.f32.mrf.mxu0  ;;  %v1035_v59 = vadd.f32 %v1034_v57, %v5420_v45  ;;  %v939_v60 = vpop.f32.mrf.mxu1 }
 0x121   : > { %v891_v2 = vadd.f32 %v890_v58, %v5410_v30  ;;  %v940_v4 = vadd.f32 %v939_v60, %v5412_v32 }
 0x122   : > { %v1078_v62 = vmax.f32 %v986_v56, 0.0  ;;  %v1079_v0 = vmax.f32 %v1035_v59, 0.0  ;;  %v4406_v56 = vld [vmem:[#allocation10 + $0x60] sm:$0xff] }
 0x123   : > { %v1080_v9 = vmax.f32 %v891_v2, 0.0  ;;  %v1081_v12 = vmax.f32 %v940_v4, 0.0  ;;  %1936 = vmatpush.bf16.msra.mxu1 %v4406_v56  ;;  %v4412_v56 = vld [vmem:[#allocation10 + $0x90] sm:$0xff] }
 0x124   : > { %v5432_v1 = vpack.c.bf16 %v1078_v62, %v1074_v61  ;;  %v5435_v3 = vpack.c.bf16 %v1079_v0, %v1075_v63 }
 0x126   : > { %1534 = vmatmul.bf16.vlgmr.msrb.gmra.mxu2 %v5432_v1  ;;  %1583 = vmatmul.bf16.vlgmr.msrb.gmra.mxu3 %v5435_v3 }
 0x127   : > { %v988_v5 = vpop.f32.mrf.mxu2  ;;  %v1037_v7 = vpop.f32.mrf.mxu3 }
 0x128   : > { %v892_v8 = vpop.f32.mrf.mxu0  ;;  %v941_v11 = vpop.f32.mrf.mxu1  ;;  %v989_v20 = vadd.f32 %v988_v5, %v5417_v43  ;;  %v1038_v22 = vadd.f32 %v1037_v7, %v5420_v45 }
 0x129   : > { %v893_v10 = vadd.f32 %v892_v8, %v5410_v30  ;;  %v942_v13 = vadd.f32 %v941_v11, %v5412_v32 }
 0x12a   : > { %v1082_v29 = vmax.f32 %v989_v20, 0.0  ;;  %v1083_v33 = vmax.f32 %v1038_v22, 0.0 }
 0x12b   : > { %v1084_v14 = vmax.f32 %v893_v10, 0.0  ;;  %v1085_v17 = vmax.f32 %v942_v13, 0.0 }
 0x12d   : > { %v5442_v19 = vpack.c.bf16 %v1084_v14, %v1080_v9  ;;  %v5445_v21 = vpack.c.bf16 %v1085_v17, %v1081_v12  ;;  %v4413_v14 = vld [vmem:[#allocation10 + $0x98] sm:$0xff] }
 0x12e   : > { %1986 = vmatpush.bf16.msra.mxu2 %v4413_v14 }
 0x12f   : > { %v990_v23 = vpop.f32.mrf.mxu2  ;;  %1441 = vmatmul.bf16.gmra.mxu0 %v5442_v19  ;;  %v1039_v25 = vpop.f32.mrf.mxu3  ;;  %1490 = vmatmul.bf16.gmra.mxu1 %v5445_v21 }
 0x130   : > { %v991_v24 = vadd.f32 %v990_v23, %v5417_v43  ;;  %v895_v26 = vpop.f32.mrf.mxu0  ;;  %v1040_v27 = vadd.f32 %v1039_v25, %v5420_v45  ;;  %v944_v28 = vpop.f32.mrf.mxu1  ;;  %v4397_v25 = vld [vmem:[#allocation10 + $0x18] sm:$0xff] }
 0x131   : > { %v896_v36 = vadd.f32 %v895_v26, %v5410_v30  ;;  %v945_v38 = vadd.f32 %v944_v28, %v5412_v32  ;;  %v4421_v26 = vld [vmem:[#allocation10 + $0xd8] sm:$0xff]  ;;  %1888 = vmatpush.bf16.msra.mxu0 %v4397_v25 }
 0x132   : > { %v1086_v31 = vmax.f32 %v991_v24, 0.0  ;;  %v1087_v34 = vmax.f32 %v1040_v27, 0.0  ;;  %v4405_v28 = vld [vmem:[#allocation10 + $0x58] sm:$0xff]  ;;  %2035 = vmatpush.bf16.msra.mxu3 %v4421_v26  ;;  %1987 = vmatpush.bf16.msra.mxu2 %v4412_v56  ;;  %v4403_v56 = vld [vmem:[#allocation10 + $0x48] sm:$0xff] }
 0x133   : > { %v1088_v44 = vmax.f32 %v896_v36, 0.0  ;;  %v1089_v48 = vmax.f32 %v945_v38, 0.0  ;;  %1937 = vmatpush.bf16.msra.mxu1 %v4405_v28 }
 0x134   : > { %v5452_v35 = vpack.c.bf16 %v1086_v31, %v1082_v29  ;;  %v5455_v37 = vpack.c.bf16 %v1087_v34, %v1083_v33 }
 0x136   : > { %1539 = vmatmul.bf16.gmra.mxu2 %v5452_v35  ;;  %1588 = vmatmul.bf16.gmra.mxu3 %v5455_v37 }
 0x137   : > { %v993_v39 = vpop.f32.mrf.mxu2  ;;  %v1042_v41 = vpop.f32.mrf.mxu3 }
 0x138   : > { %v897_v42 = vpop.f32.mrf.mxu0  ;;  %v946_v47 = vpop.f32.mrf.mxu1  ;;  %v994_v58 = vadd.f32 %v993_v39, %v5417_v43  ;;  %v1043_v60 = vadd.f32 %v1042_v41, %v5420_v45 }
 0x139   : > { %v898_v46 = vadd.f32 %v897_v42, %v5410_v30  ;;  %v947_v49 = vadd.f32 %v946_v47, %v5412_v32 }
 0x13a   : > { %v1090_v5 = vmax.f32 %v994_v58, 0.0  ;;  %v1091_v7 = vmax.f32 %v1043_v60, 0.0 }
 0x13b   : > { %v1092_v50 = vmax.f32 %v898_v46, 0.0  ;;  %v1093_v55 = vmax.f32 %v947_v49, 0.0 }
 0x13d   : > { %v5462_v57 = vpack.c.bf16 %v1092_v50, %v1088_v44  ;;  %v5465_v59 = vpack.c.bf16 %v1093_v55, %v1089_v48 }
 0x13f   : > { %v995_v61 = vpop.f32.mrf.mxu2  ;;  %1446 = vmatmul.bf16.gmra.mxu0 %v5462_v57  ;;  %v1044_v63 = vpop.f32.mrf.mxu3  ;;  %1495 = vmatmul.bf16.gmra.mxu1 %v5465_v59 }
 0x140   : > { %v996_v62 = vadd.f32 %v995_v61, %v5417_v43  ;;  %v900_v0 = vpop.f32.mrf.mxu0  ;;  %v1045_v2 = vadd.f32 %v1044_v63, %v5420_v45  ;;  %v949_v4 = vpop.f32.mrf.mxu1 }
 0x141   : > { %v901_v10 = vadd.f32 %v900_v0, %v5410_v30  ;;  %v950_v12 = vadd.f32 %v949_v4, %v5412_v32 }
 0x142   : > { %v1094_v6 = vmax.f32 %v996_v62, 0.0  ;;  %v1095_v8 = vmax.f32 %v1045_v2, 0.0 }
 0x143   : > { %v1096_v17 = vmax.f32 %v901_v10, 0.0  ;;  %v1097_v22 = vmax.f32 %v950_v12, 0.0 }
 0x144   : > { %v5472_v9 = vpack.c.bf16 %v1094_v6, %v1090_v5  ;;  %v5475_v11 = vpack.c.bf16 %v1095_v8, %v1091_v7  ;;  %v4396_v5 = vld [vmem:[#allocation10 + $0x10] sm:$0xff] }
 0x145   : > { %v4420_v6 = vld [vmem:[#allocation10 + $0xd0] sm:$0xff]  ;;  %1889 = vmatpush.bf16.msra.mxu0 %v4396_v5 }
 0x146   : > { %1544 = vmatmul.bf16.gmra.mxu2 %v5472_v9  ;;  %1593 = vmatmul.bf16.gmra.mxu3 %v5475_v11  ;;  %v4404_v8 = vld [vmem:[#allocation10 + $0x50] sm:$0xff] }
 0x147   : > { %v998_v13 = vpop.f32.mrf.mxu2  ;;  %v1047_v15 = vpop.f32.mrf.mxu3  ;;  %2036 = vmatpush.bf16.msra.mxu3 %v4420_v6  ;;  %1938 = vmatpush.bf16.msra.mxu1 %v4404_v8 }
 0x148   : > { %v902_v16 = vpop.f32.mrf.mxu0  ;;  %v951_v20 = vpop.f32.mrf.mxu1  ;;  %v999_v31 = vadd.f32 %v998_v13, %v5417_v43  ;;  %v1048_v34 = vadd.f32 %v1047_v15, %v5420_v45 }
 0x149   : > { %v903_v18 = vadd.f32 %v902_v16, %v5410_v30  ;;  %v952_v23 = vadd.f32 %v951_v20, %v5412_v32 }
 0x14a   : > { %v1098_v44 = vmax.f32 %v999_v31, 0.0  ;;  %v1099_v47 = vmax.f32 %v1048_v34, 0.0 }
 0x14b   : > { %v1100_v24 = vmax.f32 %v903_v18, 0.0  ;;  %v1101_v27 = vmax.f32 %v952_v23, 0.0  ;;  %1939 = vmatpush.bf16.msra.mxu1 %v4403_v56 }
 0x14d   : > { %v5482_v29 = vpack.c.bf16 %v1100_v24, %v1096_v17  ;;  %v5485_v33 = vpack.c.bf16 %v1101_v27, %v1097_v22 }
 0x14f   : > { %v1000_v36 = vpop.f32.mrf.mxu2  ;;  %1451 = vmatmul.bf16.gmra.mxu0 %v5482_v29  ;;  %v1049_v39 = vpop.f32.mrf.mxu3  ;;  %1500 = vmatmul.bf16.gmra.mxu1 %v5485_v33 }
 0x150   : > { %v1001_v38 = vadd.f32 %v1000_v36, %v5417_v43  ;;  %v905_v40 = vpop.f32.mrf.mxu0  ;;  %v1050_v41 = vadd.f32 %v1049_v39, %v5420_v45  ;;  %v954_v42 = vpop.f32.mrf.mxu1 }
 0x151   : > { %v906_v50 = vadd.f32 %v905_v40, %v5410_v30  ;;  %v955_v54 = vadd.f32 %v954_v42, %v5412_v32 }
 0x152   : > { %v1102_v46 = vmax.f32 %v1001_v38, 0.0  ;;  %v1103_v48 = vmax.f32 %v1050_v41, 0.0  ;;  %v4411_v38 = vld [vmem:[#allocation10 + $0x88] sm:$0xff] }
 0x153   : > { %v1104_v61 = vmax.f32 %v906_v50, 0.0  ;;  %v1105_v0 = vmax.f32 %v955_v54, 0.0  ;;  %1988 = vmatpush.bf16.msra.mxu2 %v4411_v38  ;;  %v4395_v50 = vld [vmem:[#allocation10 + $0x8] sm:$0xff] }
 0x154   : > { %v5492_v49 = vpack.c.bf16 %v1102_v46, %v1098_v44  ;;  %v5495_v52 = vpack.c.bf16 %v1103_v48, %v1099_v47  ;;  %v4419_v54 = vld [vmem:[#allocation10 + $0xc8] sm:$0xff]  ;;  %1890 = vmatpush.bf16.msra.mxu0 %v4395_v50 }
 0x155   : > { %2037 = vmatpush.bf16.msra.mxu3 %v4419_v54 }
 0x156   : > { %1549 = vmatmul.bf16.gmra.mxu2 %v5492_v49  ;;  %1598 = vmatmul.bf16.gmra.mxu3 %v5495_v52 }
 0x157   : > { %v1003_v55 = vpop.f32.mrf.mxu2  ;;  %v1052_v58 = vpop.f32.mrf.mxu3 }
 0x158   : > { %v907_v60 = vpop.f32.mrf.mxu0  ;;  %v956_v63 = vpop.f32.mrf.mxu1  ;;  %v1004_v12 = vadd.f32 %v1003_v55, %v5417_v43  ;;  %v1053_v14 = vadd.f32 %v1052_v58, %v5420_v45 }
 0x159   : > { %v908_v62 = vadd.f32 %v907_v60, %v5410_v30  ;;  %v957_v2 = vadd.f32 %v956_v63, %v5412_v32 }
 0x15a   : > { %v1106_v23 = vmax.f32 %v1004_v12, 0.0  ;;  %v1107_v25 = vmax.f32 %v1053_v14, 0.0 }
 0x15b   : > { %v1108_v4 = vmax.f32 %v908_v62, 0.0  ;;  %v1109_v7 = vmax.f32 %v957_v2, 0.0 }
 0x15d   : > { %v5502_v10 = vpack.c.bf16 %v1108_v4, %v1104_v61  ;;  %v5505_v13 = vpack.c.bf16 %v1109_v7, %v1105_v0 }
 0x15f   : > { %v1005_v15 = vpop.f32.mrf.mxu2  ;;  %1456 = vmatmul.bf16.gmra.mxu0 %v5502_v10  ;;  %v1054_v17 = vpop.f32.mrf.mxu3  ;;  %1505 = vmatmul.bf16.gmra.mxu1 %v5505_v13 }
 0x160   : > { %v1006_v16 = vadd.f32 %v1005_v15, %v5417_v43  ;;  %v910_v18 = vpop.f32.mrf.mxu0  ;;  %v1055_v20 = vadd.f32 %v1054_v17, %v5420_v45  ;;  %v959_v22 = vpop.f32.mrf.mxu1 }
 0x161   : > { %v911_v28 = vadd.f32 %v910_v18, %v5410_v30  ;;  %v960_v34 = vadd.f32 %v959_v22, %v5412_v32  ;;  %v4410_v22 = vld [vmem:[#allocation10 + $0x80] sm:$0xff] }
 0x162   : > { %v1110_v24 = vmax.f32 %v1006_v16, 0.0  ;;  %v1111_v26 = vmax.f32 %v1055_v20, 0.0  ;;  %1989 = vmatpush.bf16.msra.mxu2 %v4410_v22 }
 0x163   : > { %v1112_v41 = vmax.f32 %v911_v28, 0.0  ;;  %v1113_v46 = vmax.f32 %v960_v34, 0.0  ;;  %v4402_v28 = vld [vmem:[#allocation10 + $0x40] sm:$0xff] }
 0x164   : > { %v5512_v27 = vpack.c.bf16 %v1110_v24, %v1106_v23  ;;  %v5515_v31 = vpack.c.bf16 %v1111_v26, %v1107_v25  ;;  %v4394_v23 = vld [vmem:[#allocation10] sm:$0xff]  ;;  %1940 = vmatpush.bf16.msra.mxu1 %v4402_v28 }
 0x165   : > { %v4418_v24 = vld [vmem:[#allocation10 + $0xc0] sm:$0xff]  ;;  %1891 = vmatpush.bf16.msra.mxu0 %v4394_v23 }
 0x166   : > { %1554 = vmatmul.bf16.gmra.mxu2 %v5512_v27  ;;  %1603 = vmatmul.bf16.gmra.mxu3 %v5515_v31 }
 0x167   : > { %v1008_v36 = vpop.f32.mrf.mxu2  ;;  %v1057_v39 = vpop.f32.mrf.mxu3  ;;  %2038 = vmatpush.bf16.msra.mxu3 %v4418_v24 }
 0x168   : > { %v912_v40 = vpop.f32.mrf.mxu0  ;;  %v961_v44 = vpop.f32.mrf.mxu1  ;;  %v1009_v60 = vadd.f32 %v1008_v36, %v5417_v43  ;;  %v1058_v62 = vadd.f32 %v1057_v39, %v5420_v45 }
 0x169   : > { %v913_v42 = vadd.f32 %v912_v40, %v5410_v30  ;;  %v962_v47 = vadd.f32 %v961_v44, %v5412_v32 }
 0x16a   : > { %v1114_v7 = vmax.f32 %v1009_v60, 0.0  ;;  %v1115_v12 = vmax.f32 %v1058_v62, 0.0 }
 0x16b   : > { %v1116_v48 = vmax.f32 %v913_v42, 0.0  ;;  %v1117_v55 = vmax.f32 %v962_v47, 0.0 }
 0x16d   : > { %v5522_v58 = vpack.c.bf16 %v1116_v48, %v1112_v41  ;;  %v5525_v61 = vpack.c.bf16 %v1117_v55, %v1113_v46 }
 0x16f   : > { %v1010_v63 = vpop.f32.mrf.mxu2  ;;  %1461 = vmatmul.bf16.gmra.mxu0 %v5522_v58  ;;  %v1059_v2 = vpop.f32.mrf.mxu3  ;;  %1510 = vmatmul.bf16.gmra.mxu1 %v5525_v61 }
 0x170   : > { %v1011_v0 = vadd.f32 %v1010_v63, %v5417_v43  ;;  %v915_v4 = vpop.f32.mrf.mxu0  ;;  %v1060_v5 = vadd.f32 %v1059_v2, %v5420_v45  ;;  %v964_v6 = vpop.f32.mrf.mxu1 }
 0x171   : > { %v916_v16 = vadd.f32 %v915_v4, %v5410_v30  ;;  %v965_v18 = vadd.f32 %v964_v6, %v5412_v32 }
 0x172   : > { %v1118_v8 = vmax.f32 %v1011_v0, 0.0  ;;  %v1119_v14 = vmax.f32 %v1060_v5, 0.0 }
 0x173   : > { %v1120_v34 = vmax.f32 %v916_v16, 0.0  ;;  %v1121_v39 = vmax.f32 %v965_v18, 0.0 }
 0x174   : > { %v5532_v15 = vpack.c.bf16 %v1118_v8, %v1114_v7  ;;  %v5535_v17 = vpack.c.bf16 %v1119_v14, %v1115_v12 }
 0x176   : > { %1559 = vmatmul.bf16.gmra.mxu2 %v5532_v15  ;;  %1608 = vmatmul.bf16.gmra.mxu3 %v5535_v17 }
 0x177   : > { %v1013_v20 = vpop.f32.mrf.mxu2  ;;  %v1062_v25 = vpop.f32.mrf.mxu3 }
 0x178   : > { %v917_v26 = vpop.f32.mrf.mxu0  ;;  %v966_v38 = vpop.f32.mrf.mxu1  ;;  %v1014_v46 = vadd.f32 %v1013_v20, %v5417_v43  ;;  %v1063_v48 = vadd.f32 %v1062_v25, %v5420_v45 }
 0x179   : > { %v918_v36 = vadd.f32 %v917_v26, %v5410_v30  ;;  %v967_v40 = vadd.f32 %v966_v38, %v5412_v32 }
 0x17a   : > { %v1122_v63 = vmax.f32 %v1014_v46, 0.0  ;;  %v1123_v2 = vmax.f32 %v1063_v48, 0.0 }
 0x17b   : > { %v1124_v41 = vmax.f32 %v918_v36, 0.0  ;;  %v1125_v42 = vmax.f32 %v967_v40, 0.0 }
 0x17d   : > { %v5542_v44 = vpack.c.bf16 %v1124_v41, %v1120_v34  ;;  %v5545_v47 = vpack.c.bf16 %v1125_v42, %v1121_v39 }
 0x17f   : > { %v1015_v50 = vpop.f32.mrf.mxu2  ;;  %1466 = vmatmul.bf16.gmra.mxu0 %v5542_v44  ;;  %v1064_v55 = vpop.f32.mrf.mxu3  ;;  %1515 = vmatmul.bf16.gmra.mxu1 %v5545_v47 }
 0x180   : > { %v1016_v54 = vadd.f32 %v1015_v50, %v5417_v43  ;;  %v920_v56 = vpop.f32.mrf.mxu0  ;;  %v1065_v60 = vadd.f32 %v1064_v55, %v5420_v45  ;;  %v969_v62 = vpop.f32.mrf.mxu1 }
 0x181   : > { %v921_v6 = vadd.f32 %v920_v56, %v5410_v30  ;;  %v970_v8 = vadd.f32 %v969_v62, %v5412_v32 }
 0x182   : > { %v1126_v0 = vmax.f32 %v1016_v54, 0.0  ;;  %v1127_v4 = vmax.f32 %v1065_v60, 0.0 }
 0x183   : > { %v1128_v18 = vmax.f32 %v921_v6, 0.0  ;;  %v1129_v23 = vmax.f32 %v970_v8, 0.0 }
 0x184   : > { %v5552_v5 = vpack.c.bf16 %v1126_v0, %v1122_v63  ;;  %v5555_v7 = vpack.c.bf16 %v1127_v4, %v1123_v2  ;;  %v4183_v63 = vld [vmem:[#allocation13 + $0xe8] sm:$0xf]  ;;  %v4457_v0 = vld [vmem:[#allocation13 + $0xf4] sm:$0xf0] }
 0x186   : > { %1564 = vmatmul.bf16.gmra.mxu2 %v5552_v5  ;;  %1613 = vmatmul.bf16.gmra.mxu3 %v5555_v7 }
 0x187   : > { %v1018_v12 = vpop.f32.mrf.mxu2  ;;  %v1067_v14 = vpop.f32.mrf.mxu3 }
 0x188   : > { %v922_v16 = vpop.f32.mrf.mxu0  ;;  %v971_v22 = vpop.f32.mrf.mxu1  ;;  %v1019_v34 = vadd.f32 %v1018_v12, %v5417_v43  ;;  %v1068_v38 = vadd.f32 %v1067_v14, %v5420_v45 }
 0x189   : > { %v923_v20 = vadd.f32 %v922_v16, %v5410_v30  ;;  %v972_v24 = vadd.f32 %v971_v22, %v5412_v32  ;;  %v4456_v22 = vld [vmem:[#allocation13 + $0xec] sm:$0xf0] }
 0x18a   : > { %v1130_v41 = vmax.f32 %v1019_v34, 0.0  ;;  %v1131_v46 = vmax.f32 %v1068_v38, 0.0 }
 0x18b   : > { %v1132_v25 = vmax.f32 %v923_v20, 0.0  ;;  %v1133_v26 = vmax.f32 %v972_v24, 0.0  ;;  %v4175_v20 = vld [vmem:[#allocation13 + $0xe0] sm:$0xf] }
 0x18c   : > { %v4176_v24 = vor.u32 %v4456_v22, %v4175_v20  ;;  %v4161_v22 = vld [vmem:[#allocation13 + $0xd0] sm:$0xf0] }
 0x18d   : > { %v5562_v28 = vpack.c.bf16 %v1132_v25, %v1128_v18  ;;  %v5565_v36 = vpack.c.bf16 %v1133_v26, %v1129_v23 }
 0x18e   : > { %2386 = vmatpush.bf16.msrb.mxu0 %v4176_v24  ;;  %v4449_v24 = vld [vmem:[#allocation13 + $0xb4] sm:$0xf0] }
 0x18f   : > { %v1020_v39 = vpop.f32.mrf.mxu2  ;;  %1471 = vmatmul.bf16.gmra.mxu0 %v5562_v28  ;;  %v1069_v30 = vpop.f32.mrf.mxu3  ;;  %1520 = vmatmul.bf16.gmra.mxu1 %v5565_v36 }
 0x190   : > { %v1021_v40 = vadd.f32 %v1020_v39, %v5417_v43  ;;  %v1070_v32 = vadd.f32 %v1069_v30, %v5420_v45  ;;  %v5582_v43 = vld [vmem:[%s6107_s4] ss:$0 sm:$0xff] }
 0x192   : > { %v1134_v42 = vmax.f32 %v1021_v40, 0.0  ;;  %v1135_v48 = vmax.f32 %v1070_v32, 0.0  ;;  %v4177_v32 = vld [vmem:[#allocation13 + $0xf0] sm:$0xf0] }
 0x194   : > { %v5572_v50 = vpack.c.bf16 %v1134_v42, %v1130_v41  ;;  %v5574_v54 = vpack.c.bf16 %v1135_v48, %v1131_v46  ;;  %v4167_v41 = vld [vmem:[#allocation13 + $0xc8] sm:$0xf]  ;;  %v4453_v42 = vld [vmem:[#allocation13 + $0xd4] sm:$0xf0] }
 0x195   : > { %v4168_v48 = vor.u32 %v4453_v42, %v4167_v41  ;;  %v4143_v42 = vld [vmem:[#allocation13 + $0xa0] sm:$0xf] }
 0x196   : > { %1569 = vmatmul.bf16.gmra.mxu2 %v5572_v50  ;;  %1618 = vmatmul.bf16.gmra.mxu3 %v5574_v54 }
 0x19c   : > { %v1437_v55 = vpop.f32.mrf.mxu0  ;;  %v1486_v56 = vpop.f32.mrf.mxu1 }
 0x19d   : > { %v1438_v45 = vadd.f32 %v5582_v43, %v1437_v55 }
 0x19f   : > { %1892 = vmatmul.bf16.vlgmr.msra.gmra.mxu0 %v5422_v51  ;;  %1941 = vmatmul.bf16.vlgmr.msra.gmra.mxu1 %v5425_v53  ;;  %v1487_v2 = vadd.f32 %v1486_v56, %v1438_v45  ;;  %v4184_v51 = vor.u32 %v4457_v0, %v4183_v63  ;;  %v4451_v0 = vld [vmem:[#allocation13 + $0xcc] sm:$0xf] }
 0x1a1   : > { %2484 = vmatpush.bf16.msrb.mxu2 %v4184_v51  ;;  %v4159_v51 = vld [vmem:[#allocation13 + $0xc0] sm:$0xf] }
 0x1a4   : > { %v1439_v60 = vpop.f32.mrf.mxu0  ;;  %v1488_v62 = vpop.f32.mrf.mxu1 }
 0x1a5   : > { %v1440_v12 = vadd.f32 %v5582_v43, %v1439_v60  ;;  %2485 = vmatpush.bf16.msrb.mxu2 %v4168_v48 }
 0x1a6   : > { %1990 = vmatmul.bf16.vlgmr.msra.gmra.mxu2 %v5432_v1  ;;  %2039 = vmatmul.bf16.vlgmr.msra.gmra.mxu3 %v5435_v3  ;;  %v4455_v1 = vld [vmem:[#allocation13 + $0xec] sm:$0xf]  ;;  %v4185_v3 = vld [vmem:[#allocation13 + $0xf8] sm:$0xf0] }
 0x1a7   : > { %v4188_v18 = vor.u32 %v4455_v1, %v4185_v3  ;;  %v1489_v23 = vadd.f32 %v1488_v62, %v1440_v12 }
 0x1a9   : > { %v1535_v4 = vpop.f32.mrf.mxu2  ;;  %v1584_v8 = vpop.f32.mrf.mxu3  ;;  %2533 = vmatpush.bf16.msrb.mxu3 %v4188_v18 }
 0x1aa   : > { %v1536_v6 = vadd.f32 %v1535_v4, %v1487_v2  ;;  %v4452_v4 = vld [vmem:[#allocation13 + $0xcc] sm:$0xf0] }
 0x1ac   : > { %v5589_v53 = vadd.f32 %v1584_v8, %v1536_v6  ;;  %v1442_v14 = vpop.f32.mrf.mxu0  ;;  %v1491_v16 = vpop.f32.mrf.mxu1  ;;  %v4160_v8 = vor.u32 %v4452_v4, %v4159_v51  ;;  %v4135_v51 = vld [vmem:[#allocation13 + $0x88] sm:$0xf]  ;;  %v4445_v4 = vld [vmem:[#allocation13 + $0x94] sm:$0xf0] }
 0x1ad   : > { %v1443_v38 = vadd.f32 %v5582_v43, %v1442_v14 }
 0x1ae   : > { %3342 = vst [vmem:[%s5592_s13] sm:$0xff] %v5589_v53  ;;  %2387 = vmatpush.bf16.msrb.mxu0 %v4160_v8  ;;  %v4136_v8 = vor.u32 %v4445_v4, %v4135_v51 }
 0x1af   : > { %1897 = vmatmul.bf16.gmra.mxu0 %v5442_v19  ;;  %1946 = vmatmul.bf16.gmra.mxu1 %v5445_v21  ;;  %v4454_v19 = vld [vmem:[#allocation13 + $0xe4] sm:$0xf]  ;;  %v1492_v46 = vadd.f32 %v1491_v16, %v1443_v38 }
 0x1b0   : > { %v4180_v21 = vor.u32 %v4454_v19, %v4177_v32 }
 0x1b1   : > { %v1537_v25 = vpop.f32.mrf.mxu2  ;;  %v1586_v34 = vpop.f32.mrf.mxu3 }
 0x1b2   : > { %v1538_v26 = vadd.f32 %v1537_v25, %v1489_v23  ;;  %2435 = vmatpush.bf16.msrb.mxu1 %v4180_v21  ;;  %v4151_v23 = vld [vmem:[#allocation13 + $0xa8] sm:$0xf]  ;;  %v4447_v21 = vld [vmem:[#allocation13 + $0xac] sm:$0xf] }
 0x1b4   : > { %v5599_v39 = vadd.f32 %v1586_v34, %v1538_v26  ;;  %v1444_v40 = vpop.f32.mrf.mxu0  ;;  %v1493_v30 = vpop.f32.mrf.mxu1  ;;  %v4152_v26 = vor.u32 %v4449_v24, %v4151_v23  ;;  %v4444_v23 = vld [vmem:[#allocation13 + $0x8c] sm:$0xf0] }
 0x1b5   : > { %v1445_v60 = vadd.f32 %v5582_v43, %v1444_v40 }
 0x1b6   : > { %3343 = vst [vmem:[%s5592_s13 + $0x8] sm:$0xff] %v5599_v39  ;;  %1995 = vmatmul.bf16.gmra.mxu2 %v5452_v35  ;;  %2044 = vmatmul.bf16.gmra.mxu3 %v5455_v37  ;;  %v4169_v37 = vld [vmem:[#allocation13 + $0xd8] sm:$0xf0] }
 0x1b7   : > { %v4172_v2 = vor.u32 %v4451_v0, %v4169_v37  ;;  %v1494_v6 = vadd.f32 %v1493_v30, %v1445_v60  ;;  %2486 = vmatpush.bf16.msrb.mxu2 %v4152_v26 }
 0x1b9   : > { %v1540_v55 = vpop.f32.mrf.mxu2  ;;  %v1589_v45 = vpop.f32.mrf.mxu3  ;;  %2534 = vmatpush.bf16.msrb.mxu3 %v4172_v2  ;;  %v4145_v2 = vld [vmem:[#allocation13 + $0xb0] sm:$0xf0] }
 0x1ba   : > { %v1541_v56 = vadd.f32 %v1540_v55, %v1492_v46  ;;  %v4448_v46 = vld [vmem:[#allocation13 + $0xac] sm:$0xf0] }
 0x1bb   : > { %v4144_v55 = vor.u32 %v4448_v46, %v4143_v42  ;;  %2487 = vmatpush.bf16.msrb.mxu2 %v4136_v8 }
 0x1bc   : > { %v5606_v62 = vadd.f32 %v1589_v45, %v1541_v56  ;;  %v1447_v35 = vpop.f32.mrf.mxu0  ;;  %v1496_v63 = vpop.f32.mrf.mxu1 }
 0x1bd   : > { %v1448_v1 = vadd.f32 %v5582_v43, %v1447_v35  ;;  %2388 = vmatpush.bf16.msrb.mxu0 %v4144_v55 }
 0x1be   : > { %3344 = vst [vmem:[%s5592_s13 + $0x10] sm:$0xff] %v5606_v62 }
 0x1bf   : > { %1902 = vmatmul.bf16.gmra.mxu0 %v5462_v57  ;;  %1951 = vmatmul.bf16.gmra.mxu1 %v5465_v59  ;;  %v4450_v57 = vld [vmem:[#allocation13 + $0xc4] sm:$0xf]  ;;  %v1497_v25 = vadd.f32 %v1496_v63, %v1448_v1 }
 0x1c0   : > { %v4164_v59 = vor.u32 %v4450_v57, %v4161_v22  ;;  %v4443_v57 = vld [vmem:[#allocation13 + $0x8c] sm:$0xf] }
 0x1c1   : > { %v1542_v12 = vpop.f32.mrf.mxu2  ;;  %v1591_v16 = vpop.f32.mrf.mxu3 }
 0x1c2   : > { %v1543_v14 = vadd.f32 %v1542_v12, %v1494_v6  ;;  %2436 = vmatpush.bf16.msrb.mxu1 %v4164_v59  ;;  %v4127_v59 = vld [vmem:[#allocation13 + $0x80] sm:$0xf] }
 0x1c4   : > { %v5613_v3 = vadd.f32 %v1591_v16, %v1543_v14  ;;  %v1449_v18 = vpop.f32.mrf.mxu0  ;;  %v1498_v20 = vpop.f32.mrf.mxu1 }
 0x1c5   : > { %v1450_v30 = vadd.f32 %v5582_v43, %v1449_v18 }
 0x1c6   : > { %3345 = vst [vmem:[%s5592_s13 + $0x18] sm:$0xff] %v5613_v3  ;;  %2000 = vmatmul.bf16.gmra.mxu2 %v5472_v9  ;;  %2049 = vmatmul.bf16.gmra.mxu3 %v5475_v11  ;;  %v4153_v11 = vld [vmem:[#allocation13 + $0xb8] sm:$0xf0] }
 0x1c7   : > { %v4156_v41 = vor.u32 %v4447_v21, %v4153_v11  ;;  %v1499_v48 = vadd.f32 %v1498_v20, %v1450_v30  ;;  %v4129_v21 = vld [vmem:[#allocation13 + $0x90] sm:$0xf0]  ;;  %v4119_v11 = vld [vmem:[#allocation13 + $0x68] sm:$0xf] }
 0x1c9   : > { %v1545_v34 = vpop.f32.mrf.mxu2  ;;  %v1594_v40 = vpop.f32.mrf.mxu3  ;;  %2535 = vmatpush.bf16.msrb.mxu3 %v4156_v41  ;;  %v4441_v41 = vld [vmem:[#allocation13 + $0x74] sm:$0xf0] }
 0x1ca   : > { %v1546_v38 = vadd.f32 %v1545_v34, %v1497_v25  ;;  %v4128_v25 = vor.u32 %v4444_v23, %v4127_v59  ;;  %v4120_v46 = vor.u32 %v4441_v41, %v4119_v11 }
 0x1cc   : > { %v5620_v19 = vadd.f32 %v1594_v40, %v1546_v38  ;;  %v1452_v9 = vpop.f32.mrf.mxu0  ;;  %v1501_v32 = vpop.f32.mrf.mxu1  ;;  %2389 = vmatpush.bf16.msrb.mxu0 %v4128_v25  ;;  %2488 = vmatpush.bf16.msrb.mxu2 %v4120_v46 }
 0x1cd   : > { %v1453_v35 = vadd.f32 %v5582_v43, %v1452_v9 }
 0x1ce   : > { %3346 = vst [vmem:[%s5592_s13 + $0x20] sm:$0xff] %v5620_v19 }
 0x1cf   : > { %1907 = vmatmul.bf16.gmra.mxu0 %v5482_v29  ;;  %1956 = vmatmul.bf16.gmra.mxu1 %v5485_v33  ;;  %v4446_v29 = vld [vmem:[#allocation13 + $0xa4] sm:$0xf]  ;;  %v1502_v6 = vadd.f32 %v1501_v32, %v1453_v35 }
 0x1d0   : > { %v4148_v33 = vor.u32 %v4446_v29, %v4145_v2  ;;  %v4111_v29 = vld [vmem:[#allocation13 + $0x60] sm:$0xf]  ;;  %v4440_v2 = vld [vmem:[#allocation13 + $0x6c] sm:$0xf0] }
 0x1d1   : > { %v1547_v56 = vpop.f32.mrf.mxu2  ;;  %v1596_v60 = vpop.f32.mrf.mxu3  ;;  %v4112_v51 = vor.u32 %v4440_v2, %v4111_v29 }
 0x1d2   : > { %v1548_v45 = vadd.f32 %v1547_v56, %v1499_v48  ;;  %2437 = vmatpush.bf16.msrb.mxu1 %v4148_v33 }
 0x1d3   : > { %2390 = vmatpush.bf16.msrb.mxu0 %v4112_v51 }
 0x1d4   : > { %v5627_v63 = vadd.f32 %v1596_v60, %v1548_v45  ;;  %v1454_v0 = vpop.f32.mrf.mxu0  ;;  %v1503_v37 = vpop.f32.mrf.mxu1 }
 0x1d5   : > { %v1455_v1 = vadd.f32 %v5582_v43, %v1454_v0  ;;  %v4439_v0 = vld [vmem:[#allocation13 + $0x6c] sm:$0xf] }
 0x1d6   : > { %3347 = vst [vmem:[%s5592_s13 + $0x28] sm:$0xff] %v5627_v63  ;;  %2005 = vmatmul.bf16.gmra.mxu2 %v5492_v49  ;;  %2054 = vmatmul.bf16.gmra.mxu3 %v5495_v52  ;;  %v4137_v52 = vld [vmem:[#allocation13 + $0x98] sm:$0xf0] }
 0x1d7   : > { %v4140_v22 = vor.u32 %v4443_v57, %v4137_v52  ;;  %v1504_v24 = vadd.f32 %v1503_v37, %v1455_v1  ;;  %v4437_v57 = vld [vmem:[#allocation13 + $0x54] sm:$0xf0] }
 0x1d9   : > { %v1550_v12 = vpop.f32.mrf.mxu2  ;;  %v1599_v16 = vpop.f32.mrf.mxu3  ;;  %2536 = vmatpush.bf16.msrb.mxu3 %v4140_v22 }
 0x1da   : > { %v1551_v14 = vadd.f32 %v1550_v12, %v1502_v6 }
 0x1dc   : > { %v5634_v18 = vadd.f32 %v1599_v16, %v1551_v14  ;;  %v1457_v49 = vpop.f32.mrf.mxu0  ;;  %v1506_v20 = vpop.f32.mrf.mxu1 }
 0x1dd   : > { %v1458_v40 = vadd.f32 %v5582_v43, %v1457_v49  ;;  %v4113_v49 = vld [vmem:[#allocation13 + $0x70] sm:$0xf0] }
 0x1de   : > { %3348 = vst [vmem:[%s5592_s13 + $0x30] sm:$0xff] %v5634_v18 }
 0x1df   : > { %1912 = vmatmul.bf16.gmra.mxu0 %v5502_v10  ;;  %1961 = vmatmul.bf16.gmra.mxu1 %v5505_v13  ;;  %v4442_v10 = vld [vmem:[#allocation13 + $0x84] sm:$0xf]  ;;  %v1507_v42 = vadd.f32 %v1506_v20, %v1458_v40  ;;  %v4103_v20 = vld [vmem:[#allocation13 + $0x48] sm:$0xf] }
 0x1e0   : > { %v4132_v13 = vor.u32 %v4442_v10, %v4129_v21  ;;  %v4104_v22 = vor.u32 %v4437_v57, %v4103_v20  ;;  %v4431_v20 = vld [vmem:[#allocation13 + $0x2c] sm:$0xf]  ;;  %v4089_v57 = vld [vmem:[#allocation13 + $0x38] sm:$0xf0] }
 0x1e1   : > { %v1552_v26 = vpop.f32.mrf.mxu2  ;;  %v1601_v38 = vpop.f32.mrf.mxu3 }
 0x1e2   : > { %v1553_v34 = vadd.f32 %v1552_v26, %v1504_v24  ;;  %2438 = vmatpush.bf16.msrb.mxu1 %v4132_v13  ;;  %2489 = vmatpush.bf16.msrb.mxu2 %v4104_v22 }
 0x1e4   : > { %v5641_v30 = vadd.f32 %v1601_v38, %v1553_v34  ;;  %v1459_v9 = vpop.f32.mrf.mxu0  ;;  %v1508_v32 = vpop.f32.mrf.mxu1  ;;  %v4435_v38 = vld [vmem:[#allocation13 + $0x4c] sm:$0xf] }
 0x1e5   : > { %v1460_v45 = vadd.f32 %v5582_v43, %v1459_v9  ;;  %v4095_v9 = vld [vmem:[#allocation13 + $0x40] sm:$0xf] }
 0x1e6   : > { %3349 = vst [vmem:[%s5592_s13 + $0x38] sm:$0xff] %v5641_v30  ;;  %2010 = vmatmul.bf16.gmra.mxu2 %v5512_v27  ;;  %2059 = vmatmul.bf16.gmra.mxu3 %v5515_v31  ;;  %v4121_v31 = vld [vmem:[#allocation13 + $0x78] sm:$0xf0] }
 0x1e7   : > { %v4124_v37 = vor.u32 %v4439_v0, %v4121_v31  ;;  %v1509_v33 = vadd.f32 %v1508_v32, %v1460_v45  ;;  %v4436_v32 = vld [vmem:[#allocation13 + $0x4c] sm:$0xf0]  ;;  %v4087_v45 = vld [vmem:[#allocation13 + $0x28] sm:$0xf] }
 0x1e8   : > { %v4096_v21 = vor.u32 %v4436_v32, %v4095_v9 }
 0x1e9   : > { %v1555_v48 = vpop.f32.mrf.mxu2  ;;  %v1604_v56 = vpop.f32.mrf.mxu3  ;;  %2537 = vmatpush.bf16.msrb.mxu3 %v4124_v37 }
 0x1ea   : > { %v1556_v55 = vadd.f32 %v1555_v48, %v1507_v42  ;;  %2391 = vmatpush.bf16.msrb.mxu0 %v4096_v21  ;;  %v4429_v21 = vld [vmem:[#allocation13 + $0x14] sm:$0xf0] }
 0x1ec   : > { %v5648_v60 = vadd.f32 %v1604_v56, %v1556_v55  ;;  %v1462_v27 = vpop.f32.mrf.mxu0  ;;  %v1511_v35 = vpop.f32.mrf.mxu1  ;;  %v4097_v56 = vld [vmem:[#allocation13 + $0x50] sm:$0xf0] }
 0x1ed   : > { %v1463_v12 = vadd.f32 %v5582_v43, %v1462_v27  ;;  %v4433_v27 = vld [vmem:[#allocation13 + $0x34] sm:$0xf0] }
 0x1ee   : > { %3350 = vst [vmem:[%s5592_s13 + $0x40] sm:$0xff] %v5648_v60  ;;  %v4088_v0 = vor.u32 %v4433_v27, %v4087_v45  ;;  %v4426_v45 = vld [vmem:[#allocation13 + $0x4] sm:$0xf]  ;;  %v4065_v27 = vld [vmem:[#allocation13 + $0x10] sm:$0xf0] }
 0x1ef   : > { %1917 = vmatmul.bf16.gmra.mxu0 %v5522_v58  ;;  %1966 = vmatmul.bf16.gmra.mxu1 %v5525_v61  ;;  %v4438_v58 = vld [vmem:[#allocation13 + $0x64] sm:$0xf]  ;;  %v1512_v52 = vadd.f32 %v1511_v35, %v1463_v12 }
 0x1f0   : > { %v4116_v61 = vor.u32 %v4438_v58, %v4113_v49  ;;  %2490 = vmatpush.bf16.msrb.mxu2 %v4088_v0 }
 0x1f1   : > { %v1557_v4 = vpop.f32.mrf.mxu2  ;;  %v1606_v8 = vpop.f32.mrf.mxu3 }
 0x1f2   : > { %v1558_v6 = vadd.f32 %v1557_v4, %v1509_v33  ;;  %2439 = vmatpush.bf16.msrb.mxu1 %v4116_v61 }
 0x1f4   : > { %v5655_v14 = vadd.f32 %v1606_v8, %v1558_v6  ;;  %v1464_v16 = vpop.f32.mrf.mxu0  ;;  %v1513_v1 = vpop.f32.mrf.mxu1 }
 0x1f5   : > { %v1465_v25 = vadd.f32 %v5582_v43, %v1464_v16 }
 0x1f6   : > { %3351 = vst [vmem:[%s5592_s13 + $0x48] sm:$0xff] %v5655_v14  ;;  %2015 = vmatmul.bf16.gmra.mxu2 %v5532_v15  ;;  %2064 = vmatmul.bf16.gmra.mxu3 %v5535_v17  ;;  %v4105_v17 = vld [vmem:[#allocation13 + $0x58] sm:$0xf0] }
 0x1f7   : > { %v4108_v40 = vor.u32 %v4435_v38, %v4105_v17  ;;  %v1514_v10 = vadd.f32 %v1513_v1, %v1465_v25  ;;  %v4432_v25 = vld [vmem:[#allocation13 + $0x2c] sm:$0xf0] }
 0x1f9   : > { %v1560_v59 = vpop.f32.mrf.mxu2  ;;  %v1609_v24 = vpop.f32.mrf.mxu3  ;;  %2538 = vmatpush.bf16.msrb.mxu3 %v4108_v40  ;;  %v5697_v40 = vld [vmem:[%s6109_s6] ss:$0 sm:$0xff] }
 0x1fa   : > { %v1561_v23 = vadd.f32 %v1560_v59, %v1512_v52  ;;  %v4079_v52 = vld [vmem:[#allocation13 + $0x20] sm:$0xf] }
 0x1fc   : > { %v5662_v26 = vadd.f32 %v1609_v24, %v1561_v23  ;;  %v1467_v15 = vpop.f32.mrf.mxu0  ;;  %v1516_v34 = vpop.f32.mrf.mxu1  ;;  %v4092_v24 = vor.u32 %v4431_v20, %v4089_v57 }
 0x1fd   : > { %v1468_v42 = vadd.f32 %v5582_v43, %v1467_v15 }
 0x1fe   : > { %3352 = vst [vmem:[%s5592_s13 + $0x50] sm:$0xff] %v5662_v26  ;;  %2539 = vmatpush.bf16.msrb.mxu3 %v4092_v24 }
 0x1ff   : > { %1922 = vmatmul.bf16.gmra.mxu0 %v5542_v44  ;;  %1971 = vmatmul.bf16.gmra.mxu1 %v5545_v47  ;;  %v4434_v44 = vld [vmem:[#allocation13 + $0x44] sm:$0xf]  ;;  %v1517_v35 = vadd.f32 %v1516_v34, %v1468_v42  ;;  %v4080_v34 = vor.u32 %v4432_v25, %v4079_v52  ;;  %v4063_v42 = vld [vmem:[#allocation13] sm:$0xf] }
 0x200   : > { %v4100_v47 = vor.u32 %v4434_v44, %v4097_v56 }
 0x201   : > { %v1562_v13 = vpop.f32.mrf.mxu2  ;;  %v1611_v41 = vpop.f32.mrf.mxu3  ;;  %2392 = vmatpush.bf16.msrb.mxu0 %v4080_v34 }
 0x202   : > { %v1563_v11 = vadd.f32 %v1562_v13, %v1514_v10  ;;  %2440 = vmatpush.bf16.msrb.mxu1 %v4100_v47  ;;  %v4071_v10 = vld [vmem:[#allocation13 + $0x8] sm:$0xf]  ;;  %v4427_v13 = vld [vmem:[#allocation13 + $0xc] sm:$0xf]  ;;  %v4428_v47 = vld [vmem:[#allocation13 + $0xc] sm:$0xf0] }
 0x203   : > { %v4064_v0 = vor.u32 %v4428_v47, %v4063_v42 }
 0x204   : > { %v5669_v46 = vadd.f32 %v1611_v41, %v1563_v11  ;;  %v1469_v48 = vpop.f32.mrf.mxu0  ;;  %v1518_v55 = vpop.f32.mrf.mxu1  ;;  %v4072_v11 = vor.u32 %v4429_v21, %v4071_v10  ;;  %v4073_v41 = vld [vmem:[#allocation13 + $0x18] sm:$0xf0] }
 0x205   : > { %v1470_v2 = vadd.f32 %v5582_v43, %v1469_v48  ;;  %v4076_v56 = vor.u32 %v4427_v13, %v4073_v41  ;;  %2393 = vmatpush.bf16.msrb.mxu0 %v4064_v0 }
 0x206   : > { %3353 = vst [vmem:[%s5592_s13 + $0x58] sm:$0xff] %v5669_v46  ;;  %2020 = vmatmul.bf16.gmra.mxu2 %v5552_v5  ;;  %2069 = vmatmul.bf16.gmra.mxu3 %v5555_v7 }
 0x207   : > { %v1519_v7 = vadd.f32 %v1518_v55, %v1470_v2  ;;  %2491 = vmatpush.bf16.msrb.mxu2 %v4072_v11  ;;  %2540 = vmatpush.bf16.msrb.mxu3 %v4076_v56 }
 0x209   : > { %v1565_v31 = vpop.f32.mrf.mxu2  ;;  %v1614_v29 = vpop.f32.mrf.mxu3 }
 0x20a   : > { %v1566_v37 = vadd.f32 %v1565_v31, %v1517_v35  ;;  %v4068_v31 = vor.u32 %v4426_v45, %v4065_v27 }
 0x20c   : > { %v5676_v33 = vadd.f32 %v1614_v29, %v1566_v37  ;;  %v1472_v5 = vpop.f32.mrf.mxu0  ;;  %v1521_v51 = vpop.f32.mrf.mxu1 }
 0x20d   : > { %v1473_v12 = vadd.f32 %v5582_v43, %v1472_v5 }
 0x20e   : > { %3354 = vst [vmem:[%s5592_s13 + $0x60] sm:$0xff] %v5676_v33 }
 0x20f   : > { %1927 = vmatmul.bf16.gmra.mxu0 %v5562_v28  ;;  %1976 = vmatmul.bf16.gmra.mxu1 %v5565_v36  ;;  %v1522_v28 = vadd.f32 %v1521_v51, %v1473_v12 }
 0x211   : > { %v1567_v4 = vpop.f32.mrf.mxu2  ;;  %v1616_v8 = vpop.f32.mrf.mxu3 }
 0x212   : > { %v1568_v6 = vadd.f32 %v1567_v4, %v1519_v7 }
 0x214   : > { %v5683_v16 = vadd.f32 %v1616_v8, %v1568_v6  ;;  %v1474_v1 = vpop.f32.mrf.mxu0  ;;  %v1523_v58 = vpop.f32.mrf.mxu1 }
 0x215   : > { %v1475_v22 = vadd.f32 %v5582_v43, %v1474_v1 }
 0x216   : > { %3355 = vst [vmem:[%s5592_s13 + $0x68] sm:$0xff] %v5683_v16  ;;  %2025 = vmatmul.bf16.gmra.mxu2 %v5572_v50  ;;  %2074 = vmatmul.bf16.gmra.mxu3 %v5574_v54  ;;  %v4430_v50 = vld [vmem:[#allocation13 + $0x24] sm:$0xf]  ;;  %v4081_v54 = vld [vmem:[#allocation13 + $0x30] sm:$0xf0] }
 0x217   : > { %v4084_v38 = vor.u32 %v4430_v50, %v4081_v54  ;;  %v1524_v17 = vadd.f32 %v1523_v58, %v1475_v22  ;;  %v2128_v50 = vld [vmem:[%s5380_s23] sm:$0xff] }
 0x219   : > { %v1570_v49 = vpop.f32.mrf.mxu2  ;;  %v1619_v36 = vpop.f32.mrf.mxu3  ;;  %2441 = vmatpush.bf16.msrb.mxu1 %v4084_v38 }
 0x21a   : > { %v1571_v61 = vadd.f32 %v1570_v49, %v1522_v28 }
 0x21c   : > { %v5690_v59 = vadd.f32 %v1619_v36, %v1571_v61  ;;  %v1893_v23 = vpop.f32.mrf.mxu0  ;;  %v1942_v15 = vpop.f32.mrf.mxu1 }
 0x21d   : > { %v1894_v48 = vadd.f32 %v5697_v40, %v1893_v23  ;;  %2442 = vmatpush.bf16.msrb.mxu1 %v4068_v31 }
 0x21e   : > { %3356 = vst [vmem:[%s5592_s13 + $0x70] sm:$0xff] %v5690_v59 }
 0x21f   : > { %v1943_v37 = vadd.f32 %v1942_v15, %v1894_v48 }
 0x221   : > { %v1572_v43 = vpop.f32.mrf.mxu2  ;;  %v1621_v32 = vpop.f32.mrf.mxu3 }
 0x222   : > { %v1573_v9 = vadd.f32 %v1572_v43, %v1524_v17 }
 0x224   : > { %v5700_v55 = vadd.f32 %v1621_v32, %v1573_v9  ;;  %v1895_v44 = vpop.f32.mrf.mxu0  ;;  %v1944_v35 = vpop.f32.mrf.mxu1  ;;  %v2129_v9 = vld [vmem:[%s5380_s23 + $0x8] sm:$0xff] }
 0x225   : > { %v1896_v51 = vadd.f32 %v5697_v40, %v1895_v44 }
 0x226   : > { %3357 = vst [vmem:[%s5592_s13 + $0x78] sm:$0xff] %v5700_v55 }
 0x227   : > { %v1945_v12 = vadd.f32 %v1944_v35, %v1896_v51  ;;  %v4465_v51 = vld [vmem:[#allocation14 + $0x38] sm:$0xff] }
 0x228   : > { %2938 = vmatpush.bf16.msra.mxu0 %v4465_v51 }
 0x229   : > { %v1991_v29 = vpop.f32.mrf.mxu2  ;;  %v2040_v5 = vpop.f32.mrf.mxu3 }
 0x22a   : > { %v1992_v2 = vadd.f32 %v1991_v29, %v1943_v37 }
 0x22c   : > { %v2041_v7 = vadd.f32 %v2040_v5, %v1992_v2  ;;  %v1898_v4 = vpop.f32.mrf.mxu0  ;;  %v1947_v6 = vpop.f32.mrf.mxu1 }
 0x22d   : > { %v1899_v61 = vadd.f32 %v5697_v40, %v1898_v4 }
 0x22e   : > { %v2080_v8 = vmul.f32 0.5, %v2041_v7  ;;  %3358 = vst [vmem:[%s5706_s5] sm:$0xff] %v2041_v7 }
 0x22f   : > { %v1948_v22 = vadd.f32 %v1947_v6, %v1899_v61  ;;  %v4473_v6 = vld [vmem:[#allocation14 + $0x78] sm:$0xff] }
 0x230   : > { %v2096_v58 = vmul.f32 1.442695, %v2080_v8  ;;  %2987 = vmatpush.bf16.msra.mxu1 %v4473_v6 }
 0x231   : > { %v1993_v1 = vpop.f32.mrf.mxu2  ;;  %v2042_v49 = vpop.f32.mrf.mxu3 }
 0x232   : > { %v1994_v28 = vadd.f32 %v1993_v1, %v1945_v12  ;;  %4626 = vpow2.f32 %v2096_v58  ;;  %v2130_v12 = vld [vmem:[%s5380_s23 + $0x10] sm:$0xff] }
 0x234   : > { %v2043_v36 = vadd.f32 %v2042_v49, %v1994_v28  ;;  %v1900_v20 = vpop.f32.mrf.mxu0  ;;  %v1949_v57 = vpop.f32.mrf.mxu1 }
 0x235   : > { %v1901_v54 = vadd.f32 %v5697_v40, %v1900_v20 }
 0x236   : > { %v2081_v52 = vmul.f32 0.5, %v2043_v36  ;;  %3359 = vst [vmem:[%s5706_s5 + $0x8] sm:$0xff] %v2043_v36  ;;  %v2131_v36 = vld [vmem:[%s5380_s23 + $0x18] sm:$0xff] }
 0x237   : > { %v1950_v13 = vadd.f32 %v1949_v57, %v1901_v54 }
 0x238   : > { %v2098_v23 = vmul.f32 1.442695, %v2081_v52  ;;  %v4627_v34 = vpop.eup %4626 }
 0x239   : > { %v1996_v24 = vpop.f32.mrf.mxu2  ;;  %v2045_v15 = vpop.f32.mrf.mxu3  ;;  %v2144_v10 = vmul.f32 %v4627_v34, %v2128_v50 }
 0x23a   : > { %4628 = vpow2.f32 %v2098_v23  ;;  %v1997_v25 = vadd.f32 %v1996_v24, %v1948_v22 }
 0x23b   : > { %v2160_v56 = vadd.f32 %v2144_v10, %v5589_v53  ;;  %v4481_v53 = vld [vmem:[#allocation14 + $0xb8] sm:$0xff] }
 0x23c   : > { %v2046_v38 = vadd.f32 %v2045_v15, %v1997_v25  ;;  %v1903_v17 = vpop.f32.mrf.mxu0  ;;  %v1952_v43 = vpop.f32.mrf.mxu1  ;;  %3036 = vmatpush.bf16.msra.mxu2 %v4481_v53 }
 0x23d   : > { %v1904_v45 = vadd.f32 %v5697_v40, %v1903_v17 }
 0x23e   : > { %v2082_v32 = vmul.f32 0.5, %v2046_v38  ;;  %3360 = vst [vmem:[%s5706_s5 + $0x10] sm:$0xff] %v2046_v38 }
 0x23f   : > { %v1953_v29 = vadd.f32 %v1952_v43, %v1904_v45 }
 0x240   : > { %v4629_v21 = vpop.eup %4628  ;;  %v2100_v42 = vmul.f32 1.442695, %v2082_v32 }
 0x241   : > { %v2145_v11 = vmul.f32 %v4629_v21, %v2129_v9  ;;  %v1998_v41 = vpop.f32.mrf.mxu2  ;;  %v2047_v44 = vpop.f32.mrf.mxu3 }
 0x242   : > { %v1999_v48 = vadd.f32 %v1998_v41, %v1950_v13  ;;  %4630 = vpow2.f32 %v2100_v42 }
 0x243   : > { %v2161_v47 = vadd.f32 %v2145_v11, %v5599_v39  ;;  %v4489_v39 = vld [vmem:[#allocation14 + $0xf8] sm:$0xff]  ;;  %v4464_v11 = vld [vmem:[#allocation14 + $0x30] sm:$0xff] }
 0x244   : > { %v2048_v27 = vadd.f32 %v2047_v44, %v1999_v48  ;;  %v1905_v35 = vpop.f32.mrf.mxu0  ;;  %v1954_v0 = vpop.f32.mrf.mxu1  ;;  %3085 = vmatpush.bf16.msra.mxu3 %v4489_v39  ;;  %v4472_v48 = vld [vmem:[#allocation14 + $0x70] sm:$0xff]  ;;  %2939 = vmatpush.bf16.msra.mxu0 %v4464_v11 }
 0x245   : > { %v2176_v31 = vpack.c.bf16 %v2161_v47, %v2160_v56  ;;  %v1906_v1 = vadd.f32 %v5697_v40, %v1905_v35  ;;  %v2132_v56 = vld [vmem:[%s5380_s23 + $0x20] sm:$0xff]  ;;  %2988 = vmatpush.bf16.msra.mxu1 %v4472_v48 }
 0x246   : > { %v2083_v37 = vmul.f32 0.5, %v2048_v27  ;;  %3361 = vst [vmem:[%s5706_s5 + $0x18] sm:$0xff] %v2048_v27 }
 0x247   : > { %2394 = vmatmul.bf16.vlgmr.msrb.gmra.mxu0 %v2176_v31  ;;  %2443 = vmatmul.bf16.vlgmr.msrb.gmra.mxu1 %v2176_v31  ;;  %v1955_v52 = vadd.f32 %v1954_v0, %v1906_v1 }
 0x248   : > { %v2102_v2 = vmul.f32 1.442695, %v2083_v37  ;;  %2492 = vmatmul.bf16.vlgmr.msrb.gmra.mxu2 %v2176_v31  ;;  %2541 = vmatmul.bf16.vlgmr.msrb.gmra.mxu3 %v2176_v31  ;;  %v4631_v8 = vpop.eup %4630  ;;  %v2133_v31 = vld [vmem:[%s5380_s23 + $0x28] sm:$0xff] }
 0x249   : > { %v2001_v5 = vpop.f32.mrf.mxu2  ;;  %v2050_v4 = vpop.f32.mrf.mxu3  ;;  %v2146_v20 = vmul.f32 %v4631_v8, %v2130_v12 }
 0x24a   : > { %4632 = vpow2.f32 %v2102_v2  ;;  %v2002_v7 = vadd.f32 %v2001_v5, %v1953_v29 }
 0x24b   : > { %v2162_v34 = vadd.f32 %v2146_v20, %v5606_v62  ;;  %v4480_v62 = vld [vmem:[#allocation14 + $0xb0] sm:$0xff] }
 0x24c   : > { %v2051_v58 = vadd.f32 %v2050_v4, %v2002_v7  ;;  %v1908_v28 = vpop.f32.mrf.mxu0  ;;  %v1957_v49 = vpop.f32.mrf.mxu1  ;;  %3037 = vmatpush.bf16.msra.mxu2 %v4480_v62 }
 0x24d   : > { %v1909_v54 = vadd.f32 %v5697_v40, %v1908_v28 }
 0x24e   : > { %v2084_v61 = vmul.f32 0.5, %v2051_v58  ;;  %3362 = vst [vmem:[%s5706_s5 + $0x20] sm:$0xff] %v2051_v58 }
 0x24f   : > { %v1958_v10 = vadd.f32 %v1957_v49, %v1909_v54 }
 0x250   : > { %v4633_v57 = vpop.eup %4632  ;;  %v2104_v24 = vmul.f32 1.442695, %v2084_v61 }
 0x251   : > { %v2003_v22 = vpop.f32.mrf.mxu2  ;;  %v2147_v23 = vmul.f32 %v4633_v57, %v2131_v36  ;;  %v2052_v15 = vpop.f32.mrf.mxu3  ;;  %v4463_v57 = vld [vmem:[#allocation14 + $0x28] sm:$0xff] }
 0x252   : > { %v2004_v25 = vadd.f32 %v2003_v22, %v1955_v52  ;;  %4634 = vpow2.f32 %v2104_v24  ;;  %2940 = vmatpush.bf16.msra.mxu0 %v4463_v57 }
 0x253   : > { %v2163_v50 = vadd.f32 %v2147_v23, %v5613_v3  ;;  %v4488_v3 = vld [vmem:[#allocation14 + $0xf0] sm:$0xff]  ;;  %v4471_v23 = vld [vmem:[#allocation14 + $0x68] sm:$0xff] }
 0x254   : > { %v2053_v38 = vadd.f32 %v2052_v15, %v2004_v25  ;;  %v1910_v17 = vpop.f32.mrf.mxu0  ;;  %v1959_v43 = vpop.f32.mrf.mxu1  ;;  %3086 = vmatpush.bf16.msra.mxu3 %v4488_v3  ;;  %v2134_v25 = vld [vmem:[%s5380_s23 + $0x30] sm:$0xff]  ;;  %2989 = vmatpush.bf16.msra.mxu1 %v4471_v23 }
 0x255   : > { %v2177_v9 = vpack.c.bf16 %v2163_v50, %v2162_v34  ;;  %v1911_v47 = vadd.f32 %v5697_v40, %v1910_v17  ;;  %v2135_v17 = vld [vmem:[%s5380_s23 + $0x38] sm:$0xff] }
 0x256   : > { %v2085_v32 = vmul.f32 0.5, %v2053_v38  ;;  %3363 = vst [vmem:[%s5706_s5 + $0x28] sm:$0xff] %v2053_v38 }
 0x257   : > { %2399 = vmatmul.bf16.gmra.mxu0 %v2177_v9  ;;  %2448 = vmatmul.bf16.gmra.mxu1 %v2177_v9  ;;  %v1960_v2 = vadd.f32 %v1959_v43, %v1911_v47 }
 0x258   : > { %v2106_v21 = vmul.f32 1.442695, %v2085_v32  ;;  %2497 = vmatmul.bf16.gmra.mxu2 %v2177_v9  ;;  %2546 = vmatmul.bf16.gmra.mxu3 %v2177_v9  ;;  %v4635_v44 = vpop.eup %4634 }
 0x259   : > { %v2006_v13 = vpop.f32.mrf.mxu2  ;;  %v2055_v42 = vpop.f32.mrf.mxu3  ;;  %v2148_v37 = vmul.f32 %v4635_v44, %v2132_v56 }
 0x25a   : > { %4636 = vpow2.f32 %v2106_v21  ;;  %v2007_v41 = vadd.f32 %v2006_v13, %v1958_v10 }
 0x25b   : > { %v2164_v4 = vadd.f32 %v2148_v37, %v5620_v19  ;;  %v4479_v19 = vld [vmem:[#allocation14 + $0xa8] sm:$0xff] }
 0x25c   : > { %v2056_v45 = vadd.f32 %v2055_v42, %v2007_v41  ;;  %v1913_v27 = vpop.f32.mrf.mxu0  ;;  %v1962_v35 = vpop.f32.mrf.mxu1  ;;  %3038 = vmatpush.bf16.msra.mxu2 %v4479_v19 }
 0x25d   : > { %v1914_v8 = vadd.f32 %v5697_v40, %v1913_v27 }
 0x25e   : > { %v2086_v0 = vmul.f32 0.5, %v2056_v45  ;;  %3364 = vst [vmem:[%s5706_s5 + $0x30] sm:$0xff] %v2056_v45 }
 0x25f   : > { %v1963_v61 = vadd.f32 %v1962_v35, %v1914_v8 }
 0x260   : > { %v4637_v29 = vpop.eup %4636  ;;  %v2108_v51 = vmul.f32 1.442695, %v2086_v0 }
 0x261   : > { %v2008_v5 = vpop.f32.mrf.mxu2  ;;  %v2149_v53 = vmul.f32 %v4637_v29, %v2133_v31  ;;  %v2057_v7 = vpop.f32.mrf.mxu3  ;;  %v4462_v31 = vld [vmem:[#allocation14 + $0x20] sm:$0xff] }
 0x262   : > { %v2009_v39 = vadd.f32 %v2008_v5, %v1960_v2  ;;  %4638 = vpow2.f32 %v2108_v51  ;;  %v4470_v2 = vld [vmem:[#allocation14 + $0x60] sm:$0xff]  ;;  %2941 = vmatpush.bf16.msra.mxu0 %v4462_v31 }
 0x263   : > { %v2165_v6 = vadd.f32 %v2149_v53, %v5627_v63  ;;  %v4487_v63 = vld [vmem:[#allocation14 + $0xe8] sm:$0xff]  ;;  %v2136_v53 = vld [vmem:[%s5380_s23 + $0x40] sm:$0xff]  ;;  %2990 = vmatpush.bf16.msra.mxu1 %v4470_v2 }
 0x264   : > { %v2058_v12 = vadd.f32 %v2057_v7, %v2009_v39  ;;  %v1915_v1 = vpop.f32.mrf.mxu0  ;;  %v1964_v58 = vpop.f32.mrf.mxu1  ;;  %3087 = vmatpush.bf16.msra.mxu3 %v4487_v63 }
 0x265   : > { %v2178_v28 = vpack.c.bf16 %v2165_v6, %v2164_v4  ;;  %v1916_v15 = vadd.f32 %v5697_v40, %v1915_v1  ;;  %v2137_v6 = vld [vmem:[%s5380_s23 + $0x48] sm:$0xff] }
 0x266   : > { %v2087_v49 = vmul.f32 0.5, %v2058_v12  ;;  %3365 = vst [vmem:[%s5706_s5 + $0x38] sm:$0xff] %v2058_v12 }
 0x267   : > { %2404 = vmatmul.bf16.gmra.mxu0 %v2178_v28  ;;  %2453 = vmatmul.bf16.gmra.mxu1 %v2178_v28  ;;  %v1965_v32 = vadd.f32 %v1964_v58, %v1916_v15 }
 0x268   : > { %v2110_v36 = vmul.f32 1.442695, %v2087_v49  ;;  %2502 = vmatmul.bf16.gmra.mxu2 %v2178_v28  ;;  %2551 = vmatmul.bf16.gmra.mxu3 %v2178_v28  ;;  %v4639_v24 = vpop.eup %4638 }
 0x269   : > { %v2011_v20 = vpop.f32.mrf.mxu2  ;;  %v2060_v22 = vpop.f32.mrf.mxu3  ;;  %v2150_v43 = vmul.f32 %v4639_v24, %v2134_v25 }
 0x26a   : > { %4640 = vpow2.f32 %v2110_v36  ;;  %v2012_v52 = vadd.f32 %v2011_v20, %v1963_v61 }
 0x26b   : > { %v2166_v3 = vadd.f32 %v2150_v43, %v5634_v18  ;;  %v4478_v18 = vld [vmem:[#allocation14 + $0xa0] sm:$0xff] }
 0x26c   : > { %v2061_v34 = vadd.f32 %v2060_v22, %v2012_v52  ;;  %v1918_v50 = vpop.f32.mrf.mxu0  ;;  %v1967_v54 = vpop.f32.mrf.mxu1  ;;  %3039 = vmatpush.bf16.msra.mxu2 %v4478_v18 }
 0x26d   : > { %v1919_v42 = vadd.f32 %v5697_v40, %v1918_v50  ;;  %v4477_v50 = vld [vmem:[#allocation14 + $0x98] sm:$0xff] }
 0x26e   : > { %v2088_v38 = vmul.f32 0.5, %v2061_v34  ;;  %3366 = vst [vmem:[%s5706_s5 + $0x40] sm:$0xff] %v2061_v34 }
 0x26f   : > { %v1968_v27 = vadd.f32 %v1967_v54, %v1919_v42  ;;  %v4485_v54 = vld [vmem:[#allocation14 + $0xd8] sm:$0xff] }
 0x270   : > { %v4641_v9 = vpop.eup %4640  ;;  %v2112_v13 = vmul.f32 1.442695, %v2088_v38  ;;  %3040 = vmatpush.bf16.msra.mxu2 %v4477_v50  ;;  %v2139_v42 = vld [vmem:[%s5380_s23 + $0x58] sm:$0xff] }
 0x271   : > { %v2013_v10 = vpop.f32.mrf.mxu2  ;;  %v2151_v21 = vmul.f32 %v4641_v9, %v2135_v17  ;;  %v2062_v11 = vpop.f32.mrf.mxu3  ;;  %v4469_v17 = vld [vmem:[#allocation14 + $0x58] sm:$0xff]  ;;  %v4476_v9 = vld [vmem:[#allocation14 + $0x90] sm:$0xff] }
 0x272   : > { %v2014_v62 = vadd.f32 %v2013_v10, %v1965_v32  ;;  %4642 = vpow2.f32 %v2112_v13  ;;  %v4460_v32 = vld [vmem:[#allocation14 + $0x10] sm:$0xff]  ;;  %2991 = vmatpush.bf16.msra.mxu1 %v4469_v17 }
 0x273   : > { %v2167_v41 = vadd.f32 %v2151_v21, %v5641_v30  ;;  %v4486_v30 = vld [vmem:[#allocation14 + $0xe0] sm:$0xff]  ;;  %v2138_v21 = vld [vmem:[%s5380_s23 + $0x50] sm:$0xff] }
 0x274   : > { %v2063_v48 = vadd.f32 %v2062_v11, %v2014_v62  ;;  %v1920_v44 = vpop.f32.mrf.mxu0  ;;  %v1969_v45 = vpop.f32.mrf.mxu1  ;;  %3088 = vmatpush.bf16.msra.mxu3 %v4486_v30  ;;  %v4484_v11 = vld [vmem:[#allocation14 + $0xd0] sm:$0xff]  ;;  %3041 = vmatpush.bf16.msra.mxu2 %v4476_v9  ;;  %v4458_v9 = vld [vmem:[#allocation14] sm:$0xff] }
 0x275   : > { %v2179_v56 = vpack.c.bf16 %v2167_v41, %v2166_v3  ;;  %v1921_v51 = vadd.f32 %v5697_v40, %v1920_v44  ;;  %v4468_v3 = vld [vmem:[#allocation14 + $0x50] sm:$0xff] }
 0x276   : > { %v2089_v47 = vmul.f32 0.5, %v2063_v48  ;;  %3367 = vst [vmem:[%s5706_s5 + $0x48] sm:$0xff] %v2063_v48  ;;  %2992 = vmatpush.bf16.msra.mxu1 %v4468_v3 }
 0x277   : > { %2409 = vmatmul.bf16.gmra.mxu0 %v2179_v56  ;;  %2458 = vmatmul.bf16.gmra.mxu1 %v2179_v56  ;;  %v1970_v1 = vadd.f32 %v1969_v45, %v1921_v51 }
 0x278   : > { %v2114_v35 = vmul.f32 1.442695, %v2089_v47  ;;  %2507 = vmatmul.bf16.gmra.mxu2 %v2179_v56  ;;  %2556 = vmatmul.bf16.gmra.mxu3 %v2179_v56  ;;  %v4643_v5 = vpop.eup %4642 }
 0x279   : > { %v2016_v0 = vpop.f32.mrf.mxu2  ;;  %v2065_v29 = vpop.f32.mrf.mxu3  ;;  %v2152_v8 = vmul.f32 %v4643_v5, %v2136_v53  ;;  %3089 = vmatpush.bf16.msra.mxu3 %v4485_v54 }
 0x27a   : > { %4644 = vpow2.f32 %v2114_v35  ;;  %v2017_v37 = vadd.f32 %v2016_v0, %v1968_v27 }
 0x27b   : > { %v2168_v19 = vadd.f32 %v2152_v8, %v5648_v60  ;;  %v4461_v60 = vld [vmem:[#allocation14 + $0x18] sm:$0xff]  ;;  %v4467_v8 = vld [vmem:[#allocation14 + $0x48] sm:$0xff] }
 0x27c   : > { %v2066_v39 = vadd.f32 %v2065_v29, %v2017_v37  ;;  %v1923_v7 = vpop.f32.mrf.mxu0  ;;  %v1972_v58 = vpop.f32.mrf.mxu1  ;;  %2942 = vmatpush.bf16.msra.mxu0 %v4461_v60  ;;  %2993 = vmatpush.bf16.msra.mxu1 %v4467_v8 }
 0x27d   : > { %v1924_v63 = vadd.f32 %v5697_v40, %v1923_v7  ;;  %3090 = vmatpush.bf16.msra.mxu3 %v4484_v11  ;;  %v4475_v7 = vld [vmem:[#allocation14 + $0x88] sm:$0xff] }
 0x27e   : > { %v2090_v4 = vmul.f32 0.5, %v2066_v39  ;;  %3368 = vst [vmem:[%s5706_s5 + $0x50] sm:$0xff] %v2066_v39  ;;  %3042 = vmatpush.bf16.msra.mxu2 %v4475_v7 }
 0x27f   : > { %v1973_v25 = vadd.f32 %v1972_v58, %v1924_v63 }
 0x280   : > { %v4645_v12 = vpop.eup %4644  ;;  %v2116_v61 = vmul.f32 1.442695, %v2090_v4  ;;  %2943 = vmatpush.bf16.msra.mxu0 %v4460_v32  ;;  %v4459_v4 = vld [vmem:[#allocation14 + $0x8] sm:$0xff]  ;;  %v4482_v32 = vld [vmem:[#allocation14 + $0xc0] sm:$0xff] }
 0x281   : > { %v2018_v28 = vpop.f32.mrf.mxu2  ;;  %v2153_v49 = vmul.f32 %v4645_v12, %v2137_v6  ;;  %v2067_v20 = vpop.f32.mrf.mxu3 }
 0x282   : > { %v2019_v36 = vadd.f32 %v2018_v28, %v1970_v1  ;;  %4646 = vpow2.f32 %v2116_v61  ;;  %v2140_v28 = vld [vmem:[%s5380_s23 + $0x60] sm:$0xff] }
 0x283   : > { %v2169_v57 = vadd.f32 %v2153_v49, %v5655_v14 }
 0x284   : > { %v2068_v52 = vadd.f32 %v2067_v20, %v2019_v36  ;;  %v1925_v22 = vpop.f32.mrf.mxu0  ;;  %v1974_v43 = vpop.f32.mrf.mxu1  ;;  %2944 = vmatpush.bf16.msra.mxu0 %v4459_v4  ;;  %v2141_v20 = vld [vmem:[%s5380_s23 + $0x68] sm:$0xff] }
 0x285   : > { %v2180_v23 = vpack.c.bf16 %v2169_v57, %v2168_v19  ;;  %v1926_v13 = vadd.f32 %v5697_v40, %v1925_v22 }
 0x286   : > { %v2091_v24 = vmul.f32 0.5, %v2068_v52  ;;  %3369 = vst [vmem:[%s5706_s5 + $0x58] sm:$0xff] %v2068_v52 }
 0x287   : > { %2414 = vmatmul.bf16.gmra.mxu0 %v2180_v23  ;;  %2463 = vmatmul.bf16.gmra.mxu1 %v2180_v23  ;;  %v1975_v47 = vadd.f32 %v1974_v43, %v1926_v13  ;;  %v2142_v43 = vld [vmem:[%s5380_s23 + $0x70] sm:$0xff] }
 0x288   : > { %v2118_v15 = vmul.f32 1.442695, %v2091_v24  ;;  %2512 = vmatmul.bf16.gmra.mxu2 %v2180_v23  ;;  %2561 = vmatmul.bf16.gmra.mxu3 %v2180_v23  ;;  %v4647_v10 = vpop.eup %4646 }
 0x289   : > { %v2021_v34 = vpop.f32.mrf.mxu2  ;;  %v2070_v38 = vpop.f32.mrf.mxu3  ;;  %v2154_v48 = vmul.f32 %v4647_v10, %v2138_v21  ;;  %v4466_v10 = vld [vmem:[#allocation14 + $0x40] sm:$0xff]  ;;  %2945 = vmatpush.bf16.msra.mxu0 %v4458_v9 }
 0x28a   : > { %4648 = vpow2.f32 %v2118_v15  ;;  %v2022_v14 = vadd.f32 %v2021_v34, %v1973_v25  ;;  %2994 = vmatpush.bf16.msra.mxu1 %v4466_v10 }
 0x28b   : > { %v2170_v31 = vadd.f32 %v2154_v48, %v5662_v26  ;;  %v4483_v26 = vld [vmem:[#allocation14 + $0xc8] sm:$0xff] }
 0x28c   : > { %v2071_v62 = vadd.f32 %v2070_v38, %v2022_v14  ;;  %v1928_v44 = vpop.f32.mrf.mxu0  ;;  %v1977_v2 = vpop.f32.mrf.mxu1  ;;  %3091 = vmatpush.bf16.msra.mxu3 %v4483_v26  ;;  %v4474_v14 = vld [vmem:[#allocation14 + $0x80] sm:$0xff] }
 0x28d   : > { %v1929_v37 = vadd.f32 %v5697_v40, %v1928_v44  ;;  %3043 = vmatpush.bf16.msra.mxu2 %v4474_v14 }
 0x28e   : > { %v2092_v41 = vmul.f32 0.5, %v2071_v62  ;;  %3370 = vst [vmem:[%s5706_s5 + $0x60] sm:$0xff] %v2071_v62 }
 0x28f   : > { %v1978_v51 = vadd.f32 %v1977_v2, %v1929_v37 }
 0x290   : > { %v4649_v56 = vpop.eup %4648  ;;  %v2120_v35 = vmul.f32 1.442695, %v2092_v41  ;;  %3092 = vmatpush.bf16.msra.mxu3 %v4482_v32  ;;  %v2216_v41 = vld [vmem:[%s6151_s25] sm:$0xf]  ;;  %s5995_s25 = scalar_lea.sflag [#allocation18], %s570_s21 }
 0x291   : > { %v2023_v45 = vpop.f32.mrf.mxu2  ;;  %v2155_v27 = vmul.f32 %v4649_v56, %v2139_v42  ;;  %v2072_v18 = vpop.f32.mrf.mxu3  ;;  %v5773_v44 = vperm.slane %v2216_v41, 0  ;;  %v5775_v56 = vperm.slane %v2216_v41, 1 }
 0x292   : > { %v2024_v0 = vadd.f32 %v2023_v45, %v1975_v47  ;;  %4650 = vpow2.f32 %v2120_v35 }
 0x293   : > { %v2171_v30 = vadd.f32 %v2155_v27, %v5669_v46 }
 0x294   : > { %v2073_v29 = vadd.f32 %v2072_v18, %v2024_v0  ;;  %v1930_v46 = vpop.f32.mrf.mxu0  ;;  %v1979_v57 = vpop.f32.mrf.mxu1 }
 0x295   : > { %v2181_v5 = vpack.c.bf16 %v2171_v30, %v2170_v31  ;;  %v1931_v49 = vadd.f32 %v5697_v40, %v1930_v46  ;;  %v5781_v31 = vperm.slane %v2216_v41, 2  ;;  %v5783_v30 = vperm.slane %v2216_v41, 3 }
 0x296   : > { %v2093_v53 = vmul.f32 0.5, %v2073_v29  ;;  %3371 = vst [vmem:[%s5706_s5 + $0x68] sm:$0xff] %v2073_v29 }
 0x297   : > { %2419 = vmatmul.bf16.gmra.mxu0 %v2181_v5  ;;  %2468 = vmatmul.bf16.gmra.mxu1 %v2181_v5  ;;  %v1980_v52 = vadd.f32 %v1979_v57, %v1931_v49 }
 0x298   : > { %v2122_v39 = vmul.f32 1.442695, %v2093_v53  ;;  %2517 = vmatmul.bf16.gmra.mxu2 %v2181_v5  ;;  %2566 = vmatmul.bf16.gmra.mxu3 %v2181_v5  ;;  %v4651_v58 = vpop.eup %4650 }
 0x299   : > { %v2026_v6 = vpop.f32.mrf.mxu2  ;;  %v2075_v1 = vpop.f32.mrf.mxu3  ;;  %v2156_v19 = vmul.f32 %v4651_v58, %v2140_v28 }
 0x29a   : > { %4652 = vpow2.f32 %v2122_v39  ;;  %v2027_v12 = vadd.f32 %v2026_v6, %v1978_v51 }
 0x29b   : > { %v2172_v34 = vadd.f32 %v2156_v19, %v5676_v33  ;;  %v2143_v33 = vld [vmem:[%s5380_s23 + $0x78] sm:$0xff]  ;;  %s3413_s23 = scalar_lea.hbm %s6153_s14, %s5979_s11 }
 0x29c   : > { %v2076_v61 = vadd.f32 %v2075_v1, %v2027_v12  ;;  %s5986_s27 = sshll.u32 %s3413_s23, 4  ;;  %s3417_s27 = int_to_ptr.hbm [resolvable:$true] %s5986_s27 }
 0x29d   : > { %s4976_s9 = sshra.s32 %s3417_s27, 4  ;;  %s4977_s9 = int_to_ptr.hbm [resolvable:$true] %s4976_s9 }
 0x29e   : > { %v2094_v36 = vmul.f32 0.5, %v2076_v61  ;;  %3372 = vst [vmem:[%s5706_s5 + $0x70] sm:$0xff] %v2076_v61  ;;  %s4978_s13 = scalar_lea.hbm %s4977_s9, 128  ;;  %p4983_p7 = scmp.lt.s32.totalorder %s4977_s9, %s6153_s14 }
 0x29f   : > { %p4979_p1 = scmp.ne.s32.totalorder %s4977_s9, %s4978_s13  ;;  %p4984_p9 = scmp.lt.s32.totalorder %s4982_s0, %s4978_s13 }
 0x2a0   : > { %v4653_v63 = vpop.eup %4652  ;;  %v2124_v24 = vmul.f32 1.442695, %v2094_v36 }
 0x2a1   : > { %v2028_v22 = vpop.f32.mrf.mxu2  ;;  %v2157_v23 = vmul.f32 %v4653_v63, %v2141_v20  ;;  %v2077_v15 = vpop.f32.mrf.mxu3  ;;  %p4980_p3 = pnand %p4979_p1, %p5298_p4  ;;  %p4985_p5 = por %p4984_p9, %p4983_p7 }
 0x2a2   : > { %v2029_v25 = vadd.f32 %v2028_v22, %v1980_v52  ;;  %4654 = vpow2.f32 %v2124_v24 }
 0x2a3   : > { %v2173_v50 = vadd.f32 %v2157_v23, %v5683_v16  ;;  %p4981_p12 = pneg %p4980_p3 }
 0x2a4   : > { %v2078_v40 = vadd.f32 %v2077_v15, %v2029_v25 }
 0x2a5   : > { %v2182_v60 = vpack.c.bf16 %v2173_v50, %v2172_v34  ;;  %p4986_p8 = pnand %p4985_p5, %p4981_p12 }
 0x2a6   : > { %v2095_v54 = vmul.f32 0.5, %v2078_v40  ;;  %3373 = vst [vmem:[%s5706_s5 + $0x78] sm:$0xff] %v2078_v40 }
 0x2a7   : > { %2424 = vmatmul.bf16.gmra.mxu0 %v2182_v60  ;;  %2473 = vmatmul.bf16.gmra.mxu1 %v2182_v60 }
 0x2a8   : > { %v2126_v38 = vmul.f32 1.442695, %v2095_v54  ;;  %2522 = vmatmul.bf16.gmra.mxu2 %v2182_v60  ;;  %2571 = vmatmul.bf16.gmra.mxu3 %v2182_v60  ;;  %v4655_v17 = vpop.eup %4654 }
 0x2a9   : > { %v2158_v16 = vmul.f32 %v4655_v17, %v2142_v43 }
 0x2aa   : > { %4656 = vpow2.f32 %v2126_v38 }
 0x2ab   : > { %v2174_v62 = vadd.f32 %v2158_v16, %v5690_v59 }
 0x2b0   : > { %v4657_v21 = vpop.eup %4656 }
 0x2b1   : > { %v2159_v13 = vmul.f32 %v4657_v21, %v2143_v33 }
 0x2b3   : > { %v2175_v11 = vadd.f32 %v2159_v13, %v5700_v55 }
 0x2b5   : > { %v2183_v3 = vpack.c.bf16 %v2175_v11, %v2174_v62 }
 0x2b7   : > { %2429 = vmatmul.bf16.gmra.mxu0 %v2183_v3  ;;  %2478 = vmatmul.bf16.gmra.mxu1 %v2183_v3 }
 0x2b8   : > { %2527 = vmatmul.bf16.gmra.mxu2 %v2183_v3  ;;  %2576 = vmatmul.bf16.gmra.mxu3 %v2183_v3 }
 0x2c4   : > { %v2395_v42 = vpop.f32.mrf.mxu0  ;;  %v2444_v48 = vpop.f32.mrf.mxu1 }
 0x2c5   : > { %v2396_v47 = vadd.f32 %v2395_v42, %v5773_v44  ;;  %v2445_v59 = vadd.f32 %v2444_v48, %v5775_v56 }
 0x2c7   : > { %v2582_v37 = vmax.f32 %v2396_v47, 0.0  ;;  %v2583_v29 = vmax.f32 %v2445_v59, 0.0 }
 0x2cb   : > { %v2493_v55 = vpop.f32.mrf.mxu2  ;;  %v2542_v45 = vpop.f32.mrf.mxu3 }
 0x2cc   : > { %v2397_v27 = vpop.f32.mrf.mxu0  ;;  %v2446_v35 = vpop.f32.mrf.mxu1  ;;  %v2494_v39 = vadd.f32 %v2493_v55, %v5781_v31  ;;  %v2543_v7 = vadd.f32 %v2542_v45, %v5783_v30 }
 0x2cd   : > { %v2398_v0 = vadd.f32 %v2397_v27, %v5773_v44  ;;  %v2447_v18 = vadd.f32 %v2446_v35, %v5775_v56 }
 0x2ce   : > { %v2584_v1 = vmax.f32 %v2494_v39, 0.0  ;;  %v2585_v58 = vmax.f32 %v2543_v7, 0.0 }
 0x2cf   : > { %v2586_v2 = vmax.f32 %v2398_v0, 0.0  ;;  %v2587_v5 = vmax.f32 %v2447_v18, 0.0 }
 0x2d1   : > { %v2646_v53 = vpack.c.bf16 %v2586_v2, %v2582_v37  ;;  %v2647_v51 = vpack.c.bf16 %v2587_v5, %v2583_v29 }
 0x2d3   : > { %v2495_v4 = vpop.f32.mrf.mxu2  ;;  %v2544_v26 = vpop.f32.mrf.mxu3  ;;  %2946 = vmatmul.bf16.vlgmr.msra.gmra.mxu0 %v2646_v53  ;;  %2995 = vmatmul.bf16.vlgmr.msra.gmra.mxu1 %v2647_v51 }
 0x2d4   : > { %v2496_v46 = vadd.f32 %v2495_v4, %v5781_v31  ;;  %v2545_v6 = vadd.f32 %v2544_v26, %v5783_v30  ;;  %v2400_v8 = vpop.f32.mrf.mxu0  ;;  %v2449_v12 = vpop.f32.mrf.mxu1 }
 0x2d5   : > { %v2401_v20 = vadd.f32 %v2400_v8, %v5773_v44  ;;  %v2450_v19 = vadd.f32 %v2449_v12, %v5775_v56 }
 0x2d6   : > { %v2588_v28 = vmax.f32 %v2496_v46, 0.0  ;;  %v2589_v49 = vmax.f32 %v2545_v6, 0.0 }
 0x2d7   : > { %v2590_v25 = vmax.f32 %v2401_v20, 0.0  ;;  %v2591_v15 = vmax.f32 %v2450_v19, 0.0 }
 0x2d8   : > { %v2648_v61 = vpack.c.bf16 %v2588_v28, %v2584_v1  ;;  %v2649_v36 = vpack.c.bf16 %v2589_v49, %v2585_v58 }
 0x2da   : > { %3044 = vmatmul.bf16.vlgmr.msra.gmra.mxu2 %v2648_v61  ;;  %3093 = vmatmul.bf16.vlgmr.msra.gmra.mxu3 %v2649_v36 }
 0x2db   : > { %v2498_v57 = vpop.f32.mrf.mxu2  ;;  %v2547_v63 = vpop.f32.mrf.mxu3 }
 0x2dc   : > { %v2402_v52 = vpop.f32.mrf.mxu0  ;;  %v2451_v22 = vpop.f32.mrf.mxu1  ;;  %v2499_v54 = vadd.f32 %v2498_v57, %v5781_v31  ;;  %v2548_v14 = vadd.f32 %v2547_v63, %v5783_v30 }
 0x2dd   : > { %v2403_v23 = vadd.f32 %v2402_v52, %v5773_v44  ;;  %v2452_v24 = vadd.f32 %v2451_v22, %v5775_v56 }
 0x2de   : > { %v2592_v16 = vmax.f32 %v2499_v54, 0.0  ;;  %v2593_v10 = vmax.f32 %v2548_v14, 0.0 }
 0x2df   : > { %v2594_v34 = vmax.f32 %v2403_v23, 0.0  ;;  %v2595_v50 = vmax.f32 %v2452_v24, 0.0 }
 0x2e1   : > { %v2650_v40 = vpack.c.bf16 %v2594_v34, %v2590_v25  ;;  %v2651_v60 = vpack.c.bf16 %v2595_v50, %v2591_v15 }
 0x2e3   : > { %v2500_v38 = vpop.f32.mrf.mxu2  ;;  %v2549_v17 = vpop.f32.mrf.mxu3  ;;  %2951 = vmatmul.bf16.gmra.mxu0 %v2650_v40  ;;  %3000 = vmatmul.bf16.gmra.mxu1 %v2651_v60 }
 0x2e4   : > { %v2501_v43 = vadd.f32 %v2500_v38, %v5781_v31  ;;  %v2550_v33 = vadd.f32 %v2549_v17, %v5783_v30  ;;  %v2405_v9 = vpop.f32.mrf.mxu0  ;;  %v2454_v32 = vpop.f32.mrf.mxu1 }
 0x2e5   : > { %v2406_v3 = vadd.f32 %v2405_v9, %v5773_v44  ;;  %v2455_v41 = vadd.f32 %v2454_v32, %v5775_v56 }
 0x2e6   : > { %v2596_v21 = vmax.f32 %v2501_v43, 0.0  ;;  %v2597_v13 = vmax.f32 %v2550_v33, 0.0 }
 0x2e7   : > { %v2598_v27 = vmax.f32 %v2406_v3, 0.0  ;;  %v2599_v35 = vmax.f32 %v2455_v41, 0.0 }
 0x2e8   : > { %v2652_v62 = vpack.c.bf16 %v2596_v21, %v2592_v16  ;;  %v2653_v11 = vpack.c.bf16 %v2597_v13, %v2593_v10 }
 0x2ea   : > { %3049 = vmatmul.bf16.gmra.mxu2 %v2652_v62  ;;  %3098 = vmatmul.bf16.gmra.mxu3 %v2653_v11 }
 0x2eb   : > { %v2503_v42 = vpop.f32.mrf.mxu2  ;;  %v2552_v48 = vpop.f32.mrf.mxu3 }
 0x2ec   : > { %v2407_v47 = vpop.f32.mrf.mxu0  ;;  %v2456_v59 = vpop.f32.mrf.mxu1  ;;  %v2504_v2 = vadd.f32 %v2503_v42, %v5781_v31  ;;  %v2553_v5 = vadd.f32 %v2552_v48, %v5783_v30 }
 0x2ed   : > { %v2408_v55 = vadd.f32 %v2407_v47, %v5773_v44  ;;  %v2457_v45 = vadd.f32 %v2456_v59, %v5775_v56 }
 0x2ee   : > { %v2600_v46 = vmax.f32 %v2504_v2, 0.0  ;;  %v2601_v6 = vmax.f32 %v2553_v5, 0.0 }
 0x2ef   : > { %v2602_v0 = vmax.f32 %v2408_v55, 0.0  ;;  %v2603_v18 = vmax.f32 %v2457_v45, 0.0 }
 0x2f1   : > { %v2654_v37 = vpack.c.bf16 %v2602_v0, %v2598_v27  ;;  %v2655_v29 = vpack.c.bf16 %v2603_v18, %v2599_v35 }
 0x2f3   : > { %v2505_v53 = vpop.f32.mrf.mxu2  ;;  %v2554_v51 = vpop.f32.mrf.mxu3  ;;  %2956 = vmatmul.bf16.gmra.mxu0 %v2654_v37  ;;  %3005 = vmatmul.bf16.gmra.mxu1 %v2655_v29 }
 0x2f4   : > { %v2506_v39 = vadd.f32 %v2505_v53, %v5781_v31  ;;  %v2555_v7 = vadd.f32 %v2554_v51, %v5783_v30  ;;  %v2410_v4 = vpop.f32.mrf.mxu0  ;;  %v2459_v26 = vpop.f32.mrf.mxu1 }
 0x2f5   : > { %v2411_v28 = vadd.f32 %v2410_v4, %v5773_v44  ;;  %v2460_v49 = vadd.f32 %v2459_v26, %v5775_v56 }
 0x2f6   : > { %v2604_v8 = vmax.f32 %v2506_v39, 0.0  ;;  %v2605_v12 = vmax.f32 %v2555_v7, 0.0 }
 0x2f7   : > { %v2606_v52 = vmax.f32 %v2411_v28, 0.0  ;;  %v2607_v22 = vmax.f32 %v2460_v49, 0.0 }
 0x2f8   : > { %v2656_v1 = vpack.c.bf16 %v2604_v8, %v2600_v46  ;;  %v2657_v58 = vpack.c.bf16 %v2605_v12, %v2601_v6 }
 0x2fa   : > { %3054 = vmatmul.bf16.gmra.mxu2 %v2656_v1  ;;  %3103 = vmatmul.bf16.gmra.mxu3 %v2657_v58 }
 0x2fb   : > { %v2508_v61 = vpop.f32.mrf.mxu2  ;;  %v2557_v36 = vpop.f32.mrf.mxu3 }
 0x2fc   : > { %v2412_v20 = vpop.f32.mrf.mxu0  ;;  %v2461_v19 = vpop.f32.mrf.mxu1  ;;  %v2509_v34 = vadd.f32 %v2508_v61, %v5781_v31  ;;  %v2558_v50 = vadd.f32 %v2557_v36, %v5783_v30 }
 0x2fd   : > { %v2413_v57 = vadd.f32 %v2412_v20, %v5773_v44  ;;  %v2462_v63 = vadd.f32 %v2461_v19, %v5775_v56 }
 0x2fe   : > { %v2608_v43 = vmax.f32 %v2509_v34, 0.0  ;;  %v2609_v33 = vmax.f32 %v2558_v50, 0.0 }
 0x2ff   : > { %v2610_v23 = vmax.f32 %v2413_v57, 0.0  ;;  %v2611_v24 = vmax.f32 %v2462_v63, 0.0 }
 0x301   : > { %v2658_v25 = vpack.c.bf16 %v2610_v23, %v2606_v52  ;;  %v2659_v15 = vpack.c.bf16 %v2611_v24, %v2607_v22 }
 0x303   : > { %v2510_v40 = vpop.f32.mrf.mxu2  ;;  %v2559_v60 = vpop.f32.mrf.mxu3  ;;  %2961 = vmatmul.bf16.gmra.mxu0 %v2658_v25  ;;  %3010 = vmatmul.bf16.gmra.mxu1 %v2659_v15 }
 0x304   : > { %v2511_v54 = vadd.f32 %v2510_v40, %v5781_v31  ;;  %v2560_v14 = vadd.f32 %v2559_v60, %v5783_v30  ;;  %v2415_v38 = vpop.f32.mrf.mxu0  ;;  %v2464_v17 = vpop.f32.mrf.mxu1 }
 0x305   : > { %v2416_v21 = vadd.f32 %v2415_v38, %v5773_v44  ;;  %v2465_v13 = vadd.f32 %v2464_v17, %v5775_v56 }
 0x306   : > { %v2612_v9 = vmax.f32 %v2511_v54, 0.0  ;;  %v2613_v32 = vmax.f32 %v2560_v14, 0.0 }
 0x307   : > { %v2614_v47 = vmax.f32 %v2416_v21, 0.0  ;;  %v2615_v59 = vmax.f32 %v2465_v13, 0.0 }
 0x308   : > { %v2660_v16 = vpack.c.bf16 %v2612_v9, %v2608_v43  ;;  %v2661_v10 = vpack.c.bf16 %v2613_v32, %v2609_v33 }
 0x30a   : > { %3059 = vmatmul.bf16.gmra.mxu2 %v2660_v16  ;;  %3108 = vmatmul.bf16.gmra.mxu3 %v2661_v10 }
 0x30b   : > { %v2513_v62 = vpop.f32.mrf.mxu2  ;;  %v2562_v11 = vpop.f32.mrf.mxu3 }
 0x30c   : > { %v2417_v3 = vpop.f32.mrf.mxu0  ;;  %v2466_v41 = vpop.f32.mrf.mxu1  ;;  %v2514_v0 = vadd.f32 %v2513_v62, %v5781_v31  ;;  %v2563_v18 = vadd.f32 %v2562_v11, %v5783_v30 }
 0x30d   : > { %v2418_v42 = vadd.f32 %v2417_v3, %v5773_v44  ;;  %v2467_v48 = vadd.f32 %v2466_v41, %v5775_v56 }
 0x30e   : > { %v2616_v39 = vmax.f32 %v2514_v0, 0.0  ;;  %v2617_v7 = vmax.f32 %v2563_v18, 0.0 }
 0x30f   : > { %v2618_v55 = vmax.f32 %v2418_v42, 0.0  ;;  %v2619_v45 = vmax.f32 %v2467_v48, 0.0 }
 0x311   : > { %v2662_v27 = vpack.c.bf16 %v2618_v55, %v2614_v47  ;;  %v2663_v35 = vpack.c.bf16 %v2619_v45, %v2615_v59 }
 0x313   : > { %v2515_v37 = vpop.f32.mrf.mxu2  ;;  %v2564_v29 = vpop.f32.mrf.mxu3  ;;  %2966 = vmatmul.bf16.gmra.mxu0 %v2662_v27  ;;  %3015 = vmatmul.bf16.gmra.mxu1 %v2663_v35 }
 0x314   : > { %v2516_v2 = vadd.f32 %v2515_v37, %v5781_v31  ;;  %v2565_v5 = vadd.f32 %v2564_v29, %v5783_v30  ;;  %v2420_v53 = vpop.f32.mrf.mxu0  ;;  %v2469_v51 = vpop.f32.mrf.mxu1 }
 0x315   : > { %v2421_v8 = vadd.f32 %v2420_v53, %v5773_v44  ;;  %v2470_v12 = vadd.f32 %v2469_v51, %v5775_v56 }
 0x316   : > { %v2620_v4 = vmax.f32 %v2516_v2, 0.0  ;;  %v2621_v26 = vmax.f32 %v2565_v5, 0.0 }
 0x317   : > { %v2622_v20 = vmax.f32 %v2421_v8, 0.0  ;;  %v2623_v19 = vmax.f32 %v2470_v12, 0.0 }
 0x318   : > { %v2664_v46 = vpack.c.bf16 %v2620_v4, %v2616_v39  ;;  %v2665_v6 = vpack.c.bf16 %v2621_v26, %v2617_v7 }
 0x31a   : > { %3064 = vmatmul.bf16.gmra.mxu2 %v2664_v46  ;;  %3113 = vmatmul.bf16.gmra.mxu3 %v2665_v6 }
 0x31b   : > { %v2518_v1 = vpop.f32.mrf.mxu2  ;;  %v2567_v58 = vpop.f32.mrf.mxu3 }
 0x31c   : > { %v2422_v28 = vpop.f32.mrf.mxu0  ;;  %v2471_v49 = vpop.f32.mrf.mxu1  ;;  %v2519_v23 = vadd.f32 %v2518_v1, %v5781_v31  ;;  %v2568_v24 = vadd.f32 %v2567_v58, %v5783_v30 }
 0x31d   : > { %v2423_v61 = vadd.f32 %v2422_v28, %v5773_v44  ;;  %v2472_v36 = vadd.f32 %v2471_v49, %v5775_v56 }
 0x31e   : > { %v2624_v54 = vmax.f32 %v2519_v23, 0.0  ;;  %v2625_v14 = vmax.f32 %v2568_v24, 0.0 }
 0x31f   : > { %v2626_v57 = vmax.f32 %v2423_v61, 0.0  ;;  %v2627_v63 = vmax.f32 %v2472_v36, 0.0 }
 0x321   : > { %v2666_v52 = vpack.c.bf16 %v2626_v57, %v2622_v20  ;;  %v2667_v22 = vpack.c.bf16 %v2627_v63, %v2623_v19 }
 0x323   : > { %v2520_v25 = vpop.f32.mrf.mxu2  ;;  %v2569_v15 = vpop.f32.mrf.mxu3  ;;  %2971 = vmatmul.bf16.gmra.mxu0 %v2666_v52  ;;  %3020 = vmatmul.bf16.gmra.mxu1 %v2667_v22 }
 0x324   : > { %v2521_v34 = vadd.f32 %v2520_v25, %v5781_v31  ;;  %v2570_v50 = vadd.f32 %v2569_v15, %v5783_v30  ;;  %v2425_v40 = vpop.f32.mrf.mxu0  ;;  %v2474_v60 = vpop.f32.mrf.mxu1 }
 0x325   : > { %v2426_v9 = vadd.f32 %v2425_v40, %v5773_v44  ;;  %v2475_v32 = vadd.f32 %v2474_v60, %v5775_v56 }
 0x326   : > { %v2628_v38 = vmax.f32 %v2521_v34, 0.0  ;;  %v2629_v17 = vmax.f32 %v2570_v50, 0.0 }
 0x327   : > { %v2630_v3 = vmax.f32 %v2426_v9, 0.0  ;;  %v2631_v41 = vmax.f32 %v2475_v32, 0.0 }
 0x328   : > { %v2668_v43 = vpack.c.bf16 %v2628_v38, %v2624_v54  ;;  %v2669_v33 = vpack.c.bf16 %v2629_v17, %v2625_v14  ;;  %v5848_v54 = vld [vmem:[%s6152_s8] ss:$0 sm:$0xff] }
 0x32a   : > { %3069 = vmatmul.bf16.gmra.mxu2 %v2668_v43  ;;  %3118 = vmatmul.bf16.gmra.mxu3 %v2669_v33 }
 0x32b   : > { %v2523_v16 = vpop.f32.mrf.mxu2  ;;  %v2572_v10 = vpop.f32.mrf.mxu3 }
 0x32c   : > { %v2427_v21 = vpop.f32.mrf.mxu0  ;;  %v2476_v13 = vpop.f32.mrf.mxu1  ;;  %v2524_v55 = vadd.f32 %v2523_v16, %v5781_v31  ;;  %v2573_v45 = vadd.f32 %v2572_v10, %v5783_v30 }
 0x32d   : > { %v2428_v62 = vadd.f32 %v2427_v21, %v5773_v44  ;;  %v2477_v11 = vadd.f32 %v2476_v13, %v5775_v56 }
 0x32e   : > { %v2632_v2 = vmax.f32 %v2524_v55, 0.0  ;;  %v2633_v5 = vmax.f32 %v2573_v45, 0.0 }
 0x32f   : > { %v2634_v42 = vmax.f32 %v2428_v62, 0.0  ;;  %v2635_v48 = vmax.f32 %v2477_v11, 0.0 }
 0x331   : > { %v2670_v47 = vpack.c.bf16 %v2634_v42, %v2630_v3  ;;  %v2671_v59 = vpack.c.bf16 %v2635_v48, %v2631_v41 }
 0x333   : > { %v2525_v27 = vpop.f32.mrf.mxu2  ;;  %v2574_v35 = vpop.f32.mrf.mxu3  ;;  %2976 = vmatmul.bf16.gmra.mxu0 %v2670_v47  ;;  %3025 = vmatmul.bf16.gmra.mxu1 %v2671_v59 }
 0x334   : > { %v2526_v0 = vadd.f32 %v2525_v27, %v5781_v31  ;;  %v2575_v18 = vadd.f32 %v2574_v35, %v5783_v30  ;;  %v2430_v37 = vpop.f32.mrf.mxu0  ;;  %v2479_v29 = vpop.f32.mrf.mxu1 }
 0x335   : > { %v2431_v4 = vadd.f32 %v2430_v37, %v5773_v44  ;;  %v2480_v26 = vadd.f32 %v2479_v29, %v5775_v56 }
 0x336   : > { %v2636_v53 = vmax.f32 %v2526_v0, 0.0  ;;  %v2637_v51 = vmax.f32 %v2575_v18, 0.0 }
 0x337   : > { %v2638_v28 = vmax.f32 %v2431_v4, 0.0  ;;  %v2639_v49 = vmax.f32 %v2480_v26, 0.0 }
 0x338   : > { %v2672_v39 = vpack.c.bf16 %v2636_v53, %v2632_v2  ;;  %v2673_v7 = vpack.c.bf16 %v2637_v51, %v2633_v5 }
 0x33a   : > { %3074 = vmatmul.bf16.gmra.mxu2 %v2672_v39  ;;  %3123 = vmatmul.bf16.gmra.mxu3 %v2673_v7 }
 0x33b   : > { %v2528_v46 = vpop.f32.mrf.mxu2  ;;  %v2577_v6 = vpop.f32.mrf.mxu3 }
 0x33c   : > { %v2432_v8 = vpop.f32.mrf.mxu0  ;;  %v2481_v12 = vpop.f32.mrf.mxu1  ;;  %v2529_v57 = vadd.f32 %v2528_v46, %v5781_v31  ;;  %v2578_v63 = vadd.f32 %v2577_v6, %v5783_v30 }
 0x33d   : > { %v2433_v1 = vadd.f32 %v2432_v8, %v5773_v44  ;;  %v2482_v58 = vadd.f32 %v2481_v12, %v5775_v56 }
 0x33e   : > { %v2640_v24 = vmax.f32 %v2529_v57, 0.0  ;;  %v2641_v56 = vmax.f32 %v2578_v63, 0.0 }
 0x33f   : > { %v2642_v61 = vmax.f32 %v2433_v1, 0.0  ;;  %v2643_v36 = vmax.f32 %v2482_v58, 0.0 }
 0x341   : > { %v2674_v20 = vpack.c.bf16 %v2642_v61, %v2638_v28  ;;  %v2675_v19 = vpack.c.bf16 %v2643_v36, %v2639_v49 }
 0x343   : > { %v2530_v52 = vpop.f32.mrf.mxu2  ;;  %v2579_v22 = vpop.f32.mrf.mxu3  ;;  %2981 = vmatmul.bf16.gmra.mxu0 %v2674_v20  ;;  %3030 = vmatmul.bf16.gmra.mxu1 %v2675_v19 }
 0x344   : > { %v2531_v23 = vadd.f32 %v2530_v52, %v5781_v31  ;;  %v2580_v44 = vadd.f32 %v2579_v22, %v5783_v30 }
 0x346   : > { %v2644_v25 = vmax.f32 %v2531_v23, 0.0  ;;  %v2645_v15 = vmax.f32 %v2580_v44, 0.0 }
 0x348   : > { %v2676_v34 = vpack.c.bf16 %v2644_v25, %v2640_v24  ;;  %v2677_v50 = vpack.c.bf16 %v2645_v15, %v2641_v56 }
 0x34a   : > { %3079 = vmatmul.bf16.gmra.mxu2 %v2676_v34  ;;  %3128 = vmatmul.bf16.gmra.mxu3 %v2677_v50 }
 0x350   : > { %v2947_v40 = vpop.f32.mrf.mxu0  ;;  %v2996_v60 = vpop.f32.mrf.mxu1 }
 0x351   : > { %v2948_v14 = vadd.f32 %v5848_v54, %v2947_v40 }
 0x353   : > { %v2997_v30 = vadd.f32 %v2996_v60, %v2948_v14 }
 0x358   : > { %v2949_v31 = vpop.f32.mrf.mxu0  ;;  %v2998_v38 = vpop.f32.mrf.mxu1 }
 0x359   : > { %v2950_v9 = vadd.f32 %v5848_v54, %v2949_v31 }
 0x35b   : > { %v2999_v21 = vadd.f32 %v2998_v38, %v2950_v9 }
 0x35d   : > { %v3045_v17 = vpop.f32.mrf.mxu2  ;;  %v3094_v43 = vpop.f32.mrf.mxu3 }
 0x35e   : > { %v3046_v33 = vadd.f32 %v3045_v17, %v2997_v30 }
 0x360   : > { %v5852_v32 = vadd.f32 %v3094_v43, %v3046_v33  ;;  %v2952_v16 = vpop.f32.mrf.mxu0  ;;  %v3001_v10 = vpop.f32.mrf.mxu1 }
 0x361   : > { %v2953_v3 = vadd.f32 %v5848_v54, %v2952_v16 }
 0x362   : > { %3134 = vmax.xlane.f32.xlu0 %v5852_v32 }
 0x363   : > { %v3002_v47 = vadd.f32 %v3001_v10, %v2953_v3 }
 0x365   : > { %v3047_v13 = vpop.f32.mrf.mxu2  ;;  %v3096_v62 = vpop.f32.mrf.mxu3 }
 0x366   : > { %v3048_v11 = vadd.f32 %v3047_v13, %v2999_v21 }
 0x368   : > { %v5856_v41 = vadd.f32 %v3096_v62, %v3048_v11  ;;  %v2954_v42 = vpop.f32.mrf.mxu0  ;;  %v3003_v48 = vpop.f32.mrf.mxu1 }
 0x369   : > { %v2955_v27 = vadd.f32 %v5848_v54, %v2954_v42 }
 0x36a   : > { %3136 = vmax.xlane.f32.xlu0 %v5856_v41 }
 0x36b   : > { %v3004_v37 = vadd.f32 %v3003_v48, %v2955_v27 }
 0x36d   : > { %v3050_v59 = vpop.f32.mrf.mxu2  ;;  %v3099_v55 = vpop.f32.mrf.mxu3 }
 0x36e   : > { %v3051_v45 = vadd.f32 %v3050_v59, %v3002_v47 }
 0x370   : > { %v5860_v35 = vadd.f32 %v3099_v55, %v3051_v45  ;;  %v2957_v0 = vpop.f32.mrf.mxu0  ;;  %v3006_v18 = vpop.f32.mrf.mxu1 }
 0x371   : > { %v2958_v53 = vadd.f32 %v5848_v54, %v2957_v0 }
 0x372   : > { %3138 = vmax.xlane.f32.xlu1 %v5860_v35 }
 0x373   : > { %v3007_v4 = vadd.f32 %v3006_v18, %v2958_v53 }
 0x375   : > { %v3052_v29 = vpop.f32.mrf.mxu2  ;;  %v3101_v2 = vpop.f32.mrf.mxu3 }
 0x376   : > { %v3053_v5 = vadd.f32 %v3052_v29, %v3004_v37 }
 0x378   : > { %v5864_v51 = vadd.f32 %v3101_v2, %v3053_v5  ;;  %v2959_v39 = vpop.f32.mrf.mxu0  ;;  %v3008_v7 = vpop.f32.mrf.mxu1 }
 0x379   : > { %v2960_v8 = vadd.f32 %v5848_v54, %v2959_v39 }
 0x37a   : > { %3140 = vmax.xlane.f32.xlu1 %v5864_v51 }
 0x37b   : > { %v3009_v28 = vadd.f32 %v3008_v7, %v2960_v8 }
 0x37d   : > { %v3055_v26 = vpop.f32.mrf.mxu2  ;;  %v3104_v46 = vpop.f32.mrf.mxu3 }
 0x37e   : > { %v3056_v6 = vadd.f32 %v3055_v26, %v3007_v4 }
 0x380   : > { %v5868_v12 = vadd.f32 %v3104_v46, %v3056_v6  ;;  %v2962_v1 = vpop.f32.mrf.mxu0  ;;  %v3011_v58 = vpop.f32.mrf.mxu1 }
 0x381   : > { %v2963_v20 = vadd.f32 %v5848_v54, %v2962_v1 }
 0x382   : > { %3142 = vmax.xlane.f32.xlu2 %v5868_v12 }
 0x383   : > { %v3012_v52 = vadd.f32 %v3011_v58, %v2963_v20 }
 0x385   : > { %v3057_v49 = vpop.f32.mrf.mxu2  ;;  %v3106_v61 = vpop.f32.mrf.mxu3 }
 0x386   : > { %v3058_v36 = vadd.f32 %v3057_v49, %v3009_v28 }
 0x388   : > { %v5872_v19 = vadd.f32 %v3106_v61, %v3058_v36  ;;  %v2964_v57 = vpop.f32.mrf.mxu0  ;;  %v3013_v63 = vpop.f32.mrf.mxu1 }
 0x389   : > { %v2965_v24 = vadd.f32 %v5848_v54, %v2964_v57 }
 0x38a   : > { %3144 = vmax.xlane.f32.xlu2 %v5872_v19 }
 0x38b   : > { %v3014_v34 = vadd.f32 %v3013_v63, %v2965_v24 }
 0x38d   : > { %v3060_v22 = vpop.f32.mrf.mxu2  ;;  %v3109_v23 = vpop.f32.mrf.mxu3 }
 0x38e   : > { %v3061_v44 = vadd.f32 %v3060_v22, %v3012_v52 }
 0x390   : > { %v5876_v56 = vadd.f32 %v3109_v23, %v3061_v44  ;;  %v2967_v25 = vpop.f32.mrf.mxu0  ;;  %v3016_v15 = vpop.f32.mrf.mxu1 }
 0x391   : > { %v2968_v14 = vadd.f32 %v5848_v54, %v2967_v25 }
 0x392   : > { %3146 = vmax.xlane.f32.xlu0 %v5876_v56 }
 0x393   : > { %v3017_v17 = vadd.f32 %v3016_v15, %v2968_v14 }
 0x395   : > { %v3062_v50 = vpop.f32.mrf.mxu2  ;;  %v3111_v40 = vpop.f32.mrf.mxu3 }
 0x396   : > { %v3063_v60 = vadd.f32 %v3062_v50, %v3014_v34 }
 0x398   : > { %v5880_v31 = vadd.f32 %v3111_v40, %v3063_v60  ;;  %v2969_v38 = vpop.f32.mrf.mxu0  ;;  %v3018_v30 = vpop.f32.mrf.mxu1 }
 0x399   : > { %v2970_v16 = vadd.f32 %v5848_v54, %v2969_v38 }
 0x39a   : > { %3148 = vmax.xlane.f32.xlu1 %v5880_v31 }
 0x39b   : > { %v3019_v62 = vadd.f32 %v3018_v30, %v2970_v16 }
 0x39d   : > { %v3065_v43 = vpop.f32.mrf.mxu2  ;;  %v3114_v33 = vpop.f32.mrf.mxu3 }
 0x39e   : > { %v3066_v9 = vadd.f32 %v3065_v43, %v3017_v17 }
 0x3a0   : > { %v5884_v10 = vadd.f32 %v3114_v33, %v3066_v9  ;;  %v2972_v21 = vpop.f32.mrf.mxu0  ;;  %v3021_v13 = vpop.f32.mrf.mxu1 }
 0x3a1   : > { %v2973_v48 = vadd.f32 %v5848_v54, %v2972_v21 }
 0x3a2   : > { %3150 = vmax.xlane.f32.xlu2 %v5884_v10 }
 0x3a3   : > { %v3022_v45 = vadd.f32 %v3021_v13, %v2973_v48 }
 0x3a5   : > { %v3067_v11 = vpop.f32.mrf.mxu2  ;;  %v3116_v3 = vpop.f32.mrf.mxu3 }
 0x3a6   : > { %v3068_v42 = vadd.f32 %v3067_v11, %v3019_v62 }
 0x3a8   : > { %v5888_v47 = vadd.f32 %v3116_v3, %v3068_v42  ;;  %v2974_v59 = vpop.f32.mrf.mxu0  ;;  %v3023_v55 = vpop.f32.mrf.mxu1 }
 0x3a9   : > { %v2975_v37 = vadd.f32 %v5848_v54, %v2974_v59 }
 0x3aa   : > { %3152 = vmax.xlane.f32.xlu0 %v5888_v47 }
 0x3ab   : > { %v3024_v5 = vadd.f32 %v3023_v55, %v2975_v37 }
 0x3ad   : > { %v3070_v27 = vpop.f32.mrf.mxu2  ;;  %v3119_v0 = vpop.f32.mrf.mxu3 }
 0x3ae   : > { %v3071_v18 = vadd.f32 %v3070_v27, %v3022_v45 }
 0x3b0   : > { %v5892_v29 = vadd.f32 %v3119_v0, %v3071_v18  ;;  %v2977_v2 = vpop.f32.mrf.mxu0  ;;  %v3026_v53 = vpop.f32.mrf.mxu1 }
 0x3b1   : > { %v2978_v26 = vadd.f32 %v5848_v54, %v2977_v2 }
 0x3b2   : > { %3154 = vmax.xlane.f32.xlu1 %v5892_v29 }
 0x3b3   : > { %v3027_v8 = vadd.f32 %v3026_v53, %v2978_v26 }
 0x3b5   : > { %v3072_v39 = vpop.f32.mrf.mxu2  ;;  %v3121_v7 = vpop.f32.mrf.mxu3 }
 0x3b6   : > { %v3073_v4 = vadd.f32 %v3072_v39, %v3024_v5 }
 0x3b8   : > { %v5896_v46 = vadd.f32 %v3121_v7, %v3073_v4  ;;  %v2979_v6 = vpop.f32.mrf.mxu0  ;;  %v3028_v49 = vpop.f32.mrf.mxu1 }
 0x3b9   : > { %v2980_v61 = vadd.f32 %v5848_v54, %v2979_v6 }
 0x3ba   : > { %3156 = vmax.xlane.f32.xlu2 %v5896_v46 }
 0x3bb   : > { %v3029_v57 = vadd.f32 %v3028_v49, %v2980_v61 }
 0x3bd   : > { %v3075_v1 = vpop.f32.mrf.mxu2  ;;  %v3124_v58 = vpop.f32.mrf.mxu3 }
 0x3be   : > { %v3076_v28 = vadd.f32 %v3075_v1, %v3027_v8 }
 0x3c0   : > { %v5900_v36 = vadd.f32 %v3124_v58, %v3076_v28  ;;  %v2982_v20 = vpop.f32.mrf.mxu0  ;;  %v3031_v24 = vpop.f32.mrf.mxu1 }
 0x3c1   : > { %v2983_v23 = vadd.f32 %v5848_v54, %v2982_v20 }
 0x3c2   : > { %3158 = vmax.xlane.f32.xlu0 %v5900_v36 }
 0x3c3   : > { %v3032_v25 = vadd.f32 %v3031_v24, %v2983_v23 }
 0x3c5   : > { %v3077_v63 = vpop.f32.mrf.mxu2  ;;  %v3126_v52 = vpop.f32.mrf.mxu3 }
 0x3c6   : > { %v3078_v22 = vadd.f32 %v3077_v63, %v3029_v57 }
 0x3c8   : > { %v5904_v44 = vadd.f32 %v3126_v52, %v3078_v22  ;;  %v2984_v15 = vpop.f32.mrf.mxu0  ;;  %v3033_v38 = vpop.f32.mrf.mxu1 }
 0x3c9   : > { %v2985_v60 = vadd.f32 %v5848_v54, %v2984_v15 }
 0x3ca   : > { %3160 = vmax.xlane.f32.xlu1 %v5904_v44 }
 0x3cb   : > { %v3034_v30 = vadd.f32 %v3033_v38, %v2985_v60 }
 0x3cd   : > { %v3080_v34 = vpop.f32.mrf.mxu2  ;;  %v3129_v50 = vpop.f32.mrf.mxu3 }
 0x3ce   : > { %v3081_v40 = vadd.f32 %v3080_v34, %v3032_v25 }
 0x3d0   : > { %v5908_v14 = vadd.f32 %v3129_v50, %v3081_v40 }
 0x3d2   : > { %3162 = vmax.xlane.f32.xlu2 %v5908_v14 }
 0x3d5   : > { %v3082_v17 = vpop.f32.mrf.mxu2  ;;  %v3135_v33 = vpop.xlane.xlu0 %3134 }
 0x3d6   : > { %v3083_v43 = vadd.f32 %v3082_v17, %v3034_v30  ;;  %v3131_v9 = vpop.f32.mrf.mxu3  ;;  %v3166_v16 = vsub.f32 %v5852_v32, %v3135_v33 }
 0x3d8   : > { %v5912_v21 = vadd.f32 %v3131_v9, %v3083_v43  ;;  %v3182_v13 = vmul.f32 1.442695, %v3166_v16 }
 0x3da   : > { %3164 = vmax.xlane.f32.xlu0 %v5912_v21  ;;  %4658 = vpow2.f32 %v3182_v13 }
 0x3dd   : > { %v3137_v62 = vpop.xlane.xlu0 %3136 }
 0x3de   : > { %v3167_v54 = vsub.f32 %v5856_v41, %v3137_v62 }
 0x3e0   : > { %v5916_v11 = vpop.eup %4658  ;;  %v3184_v3 = vmul.f32 1.442695, %v3167_v54 }
 0x3e1   : > { %3214 = vadd.xlane.f32.xlu1 %v5916_v11 }
 0x3e2   : > { %4660 = vpow2.f32 %v3184_v3 }
 0x3e5   : > { %v3139_v42 = vpop.xlane.xlu1 %3138 }
 0x3e6   : > { %v3168_v48 = vsub.f32 %v5860_v35, %v3139_v42 }
 0x3e8   : > { %v3186_v59 = vmul.f32 1.442695, %v3168_v48  ;;  %v5920_v32 = vpop.eup %4660 }
 0x3e9   : > { %3216 = vadd.xlane.f32.xlu2 %v5920_v32 }
 0x3ea   : > { %4662 = vpow2.f32 %v3186_v59 }
 0x3ed   : > { %v3141_v55 = vpop.xlane.xlu1 %3140 }
 0x3ee   : > { %v3169_v45 = vsub.f32 %v5864_v51, %v3141_v55 }
 0x3f0   : > { %v5924_v27 = vpop.eup %4662  ;;  %v3188_v41 = vmul.f32 1.442695, %v3169_v45 }
 0x3f1   : > { %3218 = vadd.xlane.f32.xlu0 %v5924_v27 }
 0x3f2   : > { %4664 = vpow2.f32 %v3188_v41 }
 0x3f5   : > { %v3143_v0 = vpop.xlane.xlu2 %3142 }
 0x3f6   : > { %v3170_v18 = vsub.f32 %v5868_v12, %v3143_v0 }
 0x3f8   : > { %v5928_v37 = vpop.eup %4664  ;;  %v3190_v35 = vmul.f32 1.442695, %v3170_v18 }
 0x3f9   : > { %3220 = vadd.xlane.f32.xlu1 %v5928_v37 }
 0x3fa   : > { %4666 = vpow2.f32 %v3190_v35 }
 0x3fd   : > { %v3145_v2 = vpop.xlane.xlu2 %3144 }
 0x3fe   : > { %v3171_v5 = vsub.f32 %v5872_v19, %v3145_v2 }
 0x400   : > { %v5932_v53 = vpop.eup %4666  ;;  %v3192_v51 = vmul.f32 1.442695, %v3171_v5 }
 0x401   : > { %3222 = vadd.xlane.f32.xlu2 %v5932_v53 }
 0x402   : > { %4668 = vpow2.f32 %v3192_v51 }
 0x405   : > { %v3147_v39 = vpop.xlane.xlu0 %3146 }
 0x406   : > { %v3172_v7 = vsub.f32 %v5876_v56, %v3147_v39 }
 0x408   : > { %v5936_v4 = vpop.eup %4668  ;;  %v3194_v12 = vmul.f32 1.442695, %v3172_v7 }
 0x409   : > { %3224 = vadd.xlane.f32.xlu0 %v5936_v4 }
 0x40a   : > { %4670 = vpow2.f32 %v3194_v12 }
 0x40d   : > { %v3149_v26 = vpop.xlane.xlu1 %3148 }
 0x40e   : > { %v3173_v6 = vsub.f32 %v5880_v31, %v3149_v26 }
 0x410   : > { %v5940_v8 = vpop.eup %4670  ;;  %v3196_v19 = vmul.f32 1.442695, %v3173_v6 }
 0x411   : > { %3226 = vadd.xlane.f32.xlu1 %v5940_v8 }
 0x412   : > { %4672 = vpow2.f32 %v3196_v19 }
 0x415   : > { %v3151_v1 = vpop.xlane.xlu2 %3150 }
 0x416   : > { %v3174_v58 = vsub.f32 %v5884_v10, %v3151_v1 }
 0x418   : > { %v5944_v28 = vpop.eup %4672  ;;  %v3198_v56 = vmul.f32 1.442695, %v3174_v58 }
 0x419   : > { %3228 = vadd.xlane.f32.xlu2 %v5944_v28 }
 0x41a   : > { %4674 = vpow2.f32 %v3198_v56 }
 0x41d   : > { %v3153_v49 = vpop.xlane.xlu0 %3152 }
 0x41e   : > { %v3175_v61 = vsub.f32 %v5888_v47, %v3153_v49 }
 0x420   : > { %v5948_v20 = vpop.eup %4674  ;;  %v3200_v31 = vmul.f32 1.442695, %v3175_v61 }
 0x421   : > { %3230 = vadd.xlane.f32.xlu0 %v5948_v20 }
 0x422   : > { %4676 = vpow2.f32 %v3200_v31 }
 0x425   : > { %v3155_v57 = vpop.xlane.xlu1 %3154 }
 0x426   : > { %v3176_v63 = vsub.f32 %v5892_v29, %v3155_v57 }
 0x428   : > { %v5952_v52 = vpop.eup %4676  ;;  %v3202_v10 = vmul.f32 1.442695, %v3176_v63 }
 0x429   : > { %3232 = vadd.xlane.f32.xlu1 %v5952_v52 }
 0x42a   : > { %4678 = vpow2.f32 %v3202_v10 }
 0x42d   : > { %v3157_v22 = vpop.xlane.xlu2 %3156 }
 0x42e   : > { %v3177_v23 = vsub.f32 %v5896_v46, %v3157_v22 }
 0x430   : > { %v5956_v24 = vpop.eup %4678  ;;  %v3204_v47 = vmul.f32 1.442695, %v3177_v23 }
 0x431   : > { %3234 = vadd.xlane.f32.xlu2 %v5956_v24 }
 0x432   : > { %4680 = vpow2.f32 %v3204_v47 }
 0x435   : > { %v3159_v25 = vpop.xlane.xlu0 %3158 }
 0x436   : > { %v3178_v15 = vsub.f32 %v5900_v36, %v3159_v25 }
 0x438   : > { %v5960_v34 = vpop.eup %4680  ;;  %v3206_v29 = vmul.f32 1.442695, %v3178_v15 }
 0x439   : > { %3236 = vadd.xlane.f32.xlu0 %v5960_v34 }
 0x43a   : > { %4682 = vpow2.f32 %v3206_v29 }
 0x43d   : > { %v3161_v50 = vpop.xlane.xlu1 %3160 }
 0x43e   : > { %v3179_v40 = vsub.f32 %v5904_v44, %v3161_v50 }
 0x440   : > { %v5964_v60 = vpop.eup %4682  ;;  %v3208_v46 = vmul.f32 1.442695, %v3179_v40 }
 0x441   : > { %3238 = vadd.xlane.f32.xlu1 %v5964_v60 }
 0x442   : > { %4684 = vpow2.f32 %v3208_v46 }
 0x445   : > { %v3163_v38 = vpop.xlane.xlu2 %3162 }
 0x446   : > { %v3180_v30 = vsub.f32 %v5908_v14, %v3163_v38 }
 0x448   : > { %v5968_v36 = vpop.eup %4684  ;;  %v3210_v17 = vmul.f32 1.442695, %v3180_v30 }
 0x449   : > { %3240 = vadd.xlane.f32.xlu2 %v5968_v36 }
 0x44a   : > { %4686 = vpow2.f32 %v3210_v17 }
 0x44d   : > { %v3165_v43 = vpop.xlane.xlu0 %3164 }
 0x44e   : > { %v3181_v44 = vsub.f32 %v5912_v21, %v3165_v43 }
 0x450   : > { %v5972_v33 = vpop.eup %4686  ;;  %v3212_v9 = vmul.f32 1.442695, %v3181_v44 }
 0x451   : > { %3242 = vadd.xlane.f32.xlu0 %v5972_v33 }
 0x452   : > { %4688 = vpow2.f32 %v3212_v9 }
 0x454   : > { %v3215_v16 = vpop.xlane.xlu1 %3214 }
 0x455   : > { %4690 = vrcp.f32 %v3215_v16 }
 0x458   : > { %v5975_v14 = vpop.eup %4688 }
 0x459   : > { %3244 = vadd.xlane.f32.xlu1 %v5975_v14 }
 0x45b   : > { %v4691_v21 = vpop.eup %4690 }
 0x45c   : > { %v3262_v13 = vmul.f32 %v4691_v21, %v3215_v16  ;;  %v3217_v62 = vpop.xlane.xlu2 %3216 }
 0x45d   : > { %4692 = vrcp.f32 %v3217_v62 }
 0x45e   : > { %v3278_v54 = vsub.f32 2.0, %v3262_v13 }
 0x45f   : > { %4989 = shalt.err (!%p4986_p8)
}
 0x460   : > { %s5122_s20 = smov 128   ;;  %s5123_s21 = smov 8   ;;  %v3294_v3 = vmul.f32 %v4691_v21, %v3278_v54 }
 0x461   : > { %4522 = dma.vmem_to_hbm [thread:$0]  (%p5298_p4), %s3415_s1, 2048, %s3417_s27, %s5995_s25, %s5122_s20, %s5122_s20, %s5123_s21  }
 0x462   : > { %s6011_s18 = sshll.u32 %s3430_s22, 4  ;;  %v3310_v42 = vmul.f32 %v5916_v11, %v3294_v3  ;;  %s3431_s2 = sshll.u32 %s5706_s5, 4  ;;  %s3434_s18 = int_to_ptr.hbm [resolvable:$true] %s6011_s18  ;;  %s3432_s2 = int_to_ptr.vmem [resolvable:$true] %s3431_s2 }
 0x463   : > { %v4693_v48 = vpop.eup %4692  ;;  %s6017_s9 = scalar_lea.vmem [#allocation16], %s5358_s12  ;;  %s5004_s13 = sshra.s32 %s3434_s18, 4  ;;  %s5005_s13 = int_to_ptr.hbm [resolvable:$true] %s5004_s13 }
 0x464   : > { %v3219_v59 = vpop.xlane.xlu0 %3218  ;;  %3326 = vst [vmem:[%s6017_s9] sm:$0xff] %v3310_v42  ;;  %v3263_v55 = vmul.f32 %v4693_v48, %v3217_v62  ;;  %s5006_s1 = scalar_lea.hbm %s5005_s13, 128  ;;  %s5010_s19 = scalar_lea.hbm %s6154_s17, 256 }
 0x465   : > { %4694 = vrcp.f32 %v3219_v59  ;;  %p5007_p10 = scmp.ne.s32.totalorder %s5005_s13, %s5006_s1  ;;  %p5011_p0 = scmp.lt.s32.totalorder %s5005_s13, %s6154_s17 }
 0x466   : > { %p5012_p2 = scmp.lt.s32.totalorder %s5010_s19, %s5006_s1 }
 0x467   : > { %p5008_p13 = pnand %p5007_p10, %p5298_p4 }
 0x468   : > { %p5013_p1 = por %p5012_p2, %p5011_p0 }
 0x469   : > { %p5009_p11 = pneg %p5008_p13 }
 0x46b   : > { %p5014_p3 = pnand %p5013_p1, %p5009_p11 }
 0x46d   : > { %5017 = shalt.err (!%p5014_p3)
}
 0x46e   : > { %4523 = dma.vmem_to_hbm [thread:$0]  (%p5298_p4), %s3432_s2, 2048, %s3434_s18, %s5995_s25, %s5122_s20, %s5122_s20, %s5123_s21   ;;  %v3279_v11 = vsub.f32 2.0, %v3263_v55  ;;  %v4695_v41 = vpop.eup %4694  ;;  %v3221_v35 = vpop.xlane.xlu1 %3220 }
 0x46f   : > { %v3264_v18 = vmul.f32 %v4695_v41, %v3219_v59  ;;  %4696 = vrcp.f32 %v3221_v35  ;;  %s6155_s0 = sld [smem:[#allocation38_spill]]  ;;  %s3397_s23 = sshll.u32 %s6017_s9, 4  ;;  %s3398_s23 = int_to_ptr.vmem [resolvable:$true] %s3397_s23 }
 0x470   : > { %v3295_v45 = vmul.f32 %v4693_v48, %v3279_v11  ;;  %s3375_s2 = scalar_lea.sflag [#allocation4], %s5355_s10 }
 0x471   : > { %v3280_v2 = vsub.f32 2.0, %v3264_v18 }
 0x472   : > { %v3311_v0 = vmul.f32 %v5920_v32, %v3295_v45 }
 0x473   : > { %v3296_v5 = vmul.f32 %v4695_v41, %v3280_v2 }
 0x474   : > { %3327 = vst [vmem:[%s6017_s9 + $0x8] sm:$0xff] %v3311_v0  ;;  %v3223_v12 = vpop.xlane.xlu2 %3222 }
 0x475   : > { %v3312_v51 = vmul.f32 %v5924_v27, %v3296_v5  ;;  %v4697_v39 = vpop.eup %4696  ;;  %4698 = vrcp.f32 %v3223_v12  ;;  %s3396_s26 = scalar_lea.hbm %s6155_s0, %s5979_s11  ;;  %s5038_s11 = scalar_lea.hbm %s6155_s0, 256 }
 0x476   : > { %v3265_v7 = vmul.f32 %v4697_v39, %v3221_v35  ;;  %s3399_s18 = sshll.u32 %s3396_s26, 4  ;;  %s3400_s18 = int_to_ptr.hbm [resolvable:$true] %s3399_s18 }
 0x477   : > { %3328 = vst [vmem:[%s6017_s9 + $0x10] sm:$0xff] %v3312_v51  ;;  %s5032_s13 = sshra.s32 %s3400_s18, 4  ;;  %s5033_s13 = int_to_ptr.hbm [resolvable:$true] %s5032_s13 }
 0x478   : > { %v3281_v26 = vsub.f32 2.0, %v3265_v7  ;;  %s5034_s1 = scalar_lea.hbm %s5033_s13, 128  ;;  %p5039_p5 = scmp.lt.s32.totalorder %s5033_s13, %s6155_s0 }
 0x479   : > { %p5035_p12 = scmp.ne.s32.totalorder %s5033_s13, %s5034_s1  ;;  %p5040_p8 = scmp.lt.s32.totalorder %s5038_s11, %s5034_s1 }
 0x47a   : > { %v3297_v6 = vmul.f32 %v4697_v39, %v3281_v26 }
 0x47b   : > { %v4699_v32 = vpop.eup %4698  ;;  %p5036_p7 = pnand %p5035_p12, %p5298_p4  ;;  %p5041_p10 = por %p5040_p8, %p5039_p5 }
 0x47c   : > { %v3313_v19 = vmul.f32 %v5928_v37, %v3297_v6  ;;  %v3266_v1 = vmul.f32 %v4699_v32, %v3223_v12  ;;  %v3225_v58 = vpop.xlane.xlu0 %3224 }
 0x47d   : > { %4700 = vrcp.f32 %v3225_v58  ;;  %p5037_p9 = pneg %p5036_p7 }
 0x47e   : > { %3329 = vst [vmem:[%s6017_s9 + $0x18] sm:$0xff] %v3313_v19  ;;  %v3282_v56 = vsub.f32 2.0, %v3266_v1 }
 0x47f   : > { %p5042_p13 = pnand %p5041_p10, %p5037_p9 }
 0x480   : > { %v3298_v49 = vmul.f32 %v4699_v32, %v3282_v56 }
 0x482   : > { %v3314_v27 = vmul.f32 %v5932_v53, %v3298_v49 }
 0x483   : > { %v4701_v61 = vpop.eup %4700 }
 0x484   : > { %3330 = vst [vmem:[%s6017_s9 + $0x20] sm:$0xff] %v3314_v27  ;;  %v3267_v31 = vmul.f32 %v4701_v61, %v3225_v58  ;;  %v3227_v57 = vpop.xlane.xlu1 %3226 }
 0x485   : > { %4702 = vrcp.f32 %v3227_v57 }
 0x486   : > { %v3283_v63 = vsub.f32 2.0, %v3267_v31 }
 0x488   : > { %v3299_v10 = vmul.f32 %v4701_v61, %v3283_v63 }
 0x48a   : > { %v3315_v37 = vmul.f32 %v5936_v4, %v3299_v10 }
 0x48b   : > { %v4703_v22 = vpop.eup %4702 }
 0x48c   : > { %3331 = vst [vmem:[%s6017_s9 + $0x28] sm:$0xff] %v3315_v37  ;;  %v3268_v23 = vmul.f32 %v4703_v22, %v3227_v57  ;;  %v3229_v47 = vpop.xlane.xlu2 %3228 }
 0x48d   : > { %4704 = vrcp.f32 %v3229_v47 }
 0x48e   : > { %v3284_v25 = vsub.f32 2.0, %v3268_v23 }
 0x490   : > { %v3300_v15 = vmul.f32 %v4703_v22, %v3284_v25 }
 0x492   : > { %v3316_v53 = vmul.f32 %v5940_v8, %v3300_v15 }
 0x493   : > { %v4705_v29 = vpop.eup %4704 }
 0x494   : > { %3332 = vst [vmem:[%s6017_s9 + $0x30] sm:$0xff] %v3316_v53  ;;  %v3269_v50 = vmul.f32 %v4705_v29, %v3229_v47  ;;  %v3231_v40 = vpop.xlane.xlu0 %3230 }
 0x495   : > { %4706 = vrcp.f32 %v3231_v40 }
 0x496   : > { %v3285_v46 = vsub.f32 2.0, %v3269_v50 }
 0x498   : > { %v3301_v38 = vmul.f32 %v4705_v29, %v3285_v46 }
 0x49a   : > { %v3317_v4 = vmul.f32 %v5944_v28, %v3301_v38 }
 0x49b   : > { %v4707_v30 = vpop.eup %4706 }
 0x49c   : > { %3333 = vst [vmem:[%s6017_s9 + $0x38] sm:$0xff] %v3317_v4  ;;  %v3270_v17 = vmul.f32 %v4707_v30, %v3231_v40  ;;  %v3233_v43 = vpop.xlane.xlu1 %3232 }
 0x49d   : > { %4708 = vrcp.f32 %v3233_v43 }
 0x49e   : > { %v3286_v44 = vsub.f32 2.0, %v3270_v17 }
 0x4a0   : > { %v3302_v9 = vmul.f32 %v4707_v30, %v3286_v44 }
 0x4a2   : > { %v3318_v8 = vmul.f32 %v5948_v20, %v3302_v9 }
 0x4a3   : > { %v4709_v16 = vpop.eup %4708 }
 0x4a4   : > { %3334 = vst [vmem:[%s6017_s9 + $0x40] sm:$0xff] %v3318_v8  ;;  %v3271_v21 = vmul.f32 %v4709_v16, %v3233_v43  ;;  %v3235_v13 = vpop.xlane.xlu2 %3234 }
 0x4a5   : > { %4710 = vrcp.f32 %v3235_v13 }
 0x4a6   : > { %v3287_v62 = vsub.f32 2.0, %v3271_v21 }
 0x4a8   : > { %v3303_v54 = vmul.f32 %v4709_v16, %v3287_v62 }
 0x4aa   : > { %v3319_v28 = vmul.f32 %v5952_v52, %v3303_v54 }
 0x4ab   : > { %v4711_v3 = vpop.eup %4710 }
 0x4ac   : > { %3335 = vst [vmem:[%s6017_s9 + $0x48] sm:$0xff] %v3319_v28  ;;  %v3272_v42 = vmul.f32 %v4711_v3, %v3235_v13  ;;  %v3237_v48 = vpop.xlane.xlu0 %3236 }
 0x4ad   : > { %4712 = vrcp.f32 %v3237_v48 }
 0x4ae   : > { %v3288_v59 = vsub.f32 2.0, %v3272_v42 }
 0x4b0   : > { %v3304_v55 = vmul.f32 %v4711_v3, %v3288_v59 }
 0x4b2   : > { %v3320_v20 = vmul.f32 %v5956_v24, %v3304_v55 }
 0x4b3   : > { %v4713_v11 = vpop.eup %4712 }
 0x4b4   : > { %3336 = vst [vmem:[%s6017_s9 + $0x50] sm:$0xff] %v3320_v20  ;;  %v3273_v45 = vmul.f32 %v4713_v11, %v3237_v48  ;;  %v3239_v41 = vpop.xlane.xlu1 %3238 }
 0x4b5   : > { %4714 = vrcp.f32 %v3239_v41 }
 0x4b6   : > { %v3289_v0 = vsub.f32 2.0, %v3273_v45 }
 0x4b8   : > { %v3305_v18 = vmul.f32 %v4713_v11, %v3289_v0 }
 0x4ba   : > { %v3321_v52 = vmul.f32 %v5960_v34, %v3305_v18 }
 0x4bb   : > { %v4715_v35 = vpop.eup %4714 }
 0x4bc   : > { %3337 = vst [vmem:[%s6017_s9 + $0x58] sm:$0xff] %v3321_v52  ;;  %v3274_v2 = vmul.f32 %v4715_v35, %v3239_v41  ;;  %v3241_v5 = vpop.xlane.xlu2 %3240 }
 0x4bd   : > { %4716 = vrcp.f32 %v3241_v5 }
 0x4be   : > { %v3290_v51 = vsub.f32 2.0, %v3274_v2 }
 0x4c0   : > { %v3306_v39 = vmul.f32 %v4715_v35, %v3290_v51 }
 0x4c2   : > { %v3322_v24 = vmul.f32 %v5964_v60, %v3306_v39 }
 0x4c3   : > { %v4717_v7 = vpop.eup %4716 }
 0x4c4   : > { %3338 = vst [vmem:[%s6017_s9 + $0x60] sm:$0xff] %v3322_v24  ;;  %v3275_v12 = vmul.f32 %v4717_v7, %v3241_v5  ;;  %v3243_v26 = vpop.xlane.xlu0 %3242 }
 0x4c5   : > { %4718 = vrcp.f32 %v3243_v26 }
 0x4c6   : > { %v3291_v6 = vsub.f32 2.0, %v3275_v12 }
 0x4c8   : > { %v3307_v34 = vmul.f32 %v4717_v7, %v3291_v6 }
 0x4ca   : > { %v3323_v19 = vmul.f32 %v5968_v36, %v3307_v34 }
 0x4cb   : > { %v4719_v32 = vpop.eup %4718 }
 0x4cc   : > { %3339 = vst [vmem:[%s6017_s9 + $0x68] sm:$0xff] %v3323_v19  ;;  %v3276_v1 = vmul.f32 %v4719_v32, %v3243_v26  ;;  %v3245_v58 = vpop.xlane.xlu1 %3244 }
 0x4cd   : > { %4720 = vrcp.f32 %v3245_v58 }
 0x4ce   : > { %v3292_v60 = vsub.f32 2.0, %v3276_v1 }
 0x4d0   : > { %v3308_v56 = vmul.f32 %v4719_v32, %v3292_v60 }
 0x4d2   : > { %v3324_v49 = vmul.f32 %v5972_v33, %v3308_v56 }
 0x4d3   : > { %v4721_v27 = vpop.eup %4720 }
 0x4d4   : > { %3340 = vst [vmem:[%s6017_s9 + $0x70] sm:$0xff] %v3324_v49  ;;  %v3277_v61 = vmul.f32 %v4721_v27, %v3245_v58 }
 0x4d6   : > { %v3293_v36 = vsub.f32 2.0, %v3277_v61 }
 0x4d8   : > { %v3309_v31 = vmul.f32 %v4721_v27, %v3293_v36 }
 0x4da   : > { %v3325_v57 = vmul.f32 %v5975_v14, %v3309_v31 }
 0x4dc   : > { %3341 = vst [vmem:[%s6017_s9 + $0x78] sm:$0xff] %v3325_v57 }
 0x4dd   : > { %5045 = shalt.err (!%p5042_p13)
}
 0x4de   : > { %4521 = dma.vmem_to_hbm [thread:$0]  (%p5298_p4), %s3398_s23, 2048, %s3400_s18, %s3375_s2, %s5122_s20, %s5122_s20, %s5123_s21  }
 0x4df PF: > { %s3448_s10 = sand.u32 1, %s5096_s29   ;;  %p6156_p11 = scmp.ge.s32.totalorder %s5108_s16, 2 }
 0x4e0   : > { %s3449_s9 = scalar_lea.sflag [#allocation4], %s3448_s10 }
 0x4e1   : > { %p4554_p0 = pnand %p6156_p11, %p5302_p6 }
 0x4e3   : > { %p4555_p2 = pneg %p4554_p0 }
 0x4e5   : > { %5087 = dma.done.wait (%p4555_p2), %s3449_s9, 2048  }
 0x4e6   : > { %5089 = vsyncadd (%p4555_p2), %s3449_s9, 4294965248  ;;  %s6157_s5 = sadd.s32 4294967294, %s5108_s16  }
 0x4e7   : > { %s3458_s12 = sand.u32 1, %s6157_s5  }
 0x4e8   : > { %s3459_s24 = scalar_lea.sflag [#allocation18], %s3458_s12 }
 0x4e9   : > { %5091 = dma.done.wait (%p4555_p2), %s3459_s24, 4096  }
 0x4ea   : > { %5093 = vsyncadd (%p4555_p2), %s3459_s24, 4294963200  ;;  %s6158_s20 = sld [smem:[#allocation28_spill]]  ;;  %p37_p4 = scmp.ge.s32.totalorder %s5270_s28, 4  }
 0x4eb   : > { %s6159_s29 = smov %s5100_s30  ;;  %s6160_s30 = smov %s5104_s15 }
 0x4ec   : > { %s6162_s16 = smov %s5270_s28  ;;  %39 = sbr.rel (!%p37_p4) target bundleno = 25 (0x19), region = 182 }
 0x4f0   : > { %s6161_s15 = smov %s6158_s20 }
 0x4f1   :  { %3475 = vsyncpa [#allocation3], 1 }
 0x4f2   :  { %3477 = vsyncpa [#allocation3 + $0x1], 1 }
 0x4f3   :  { %3478 = vsyncpa [#allocation6], 1 }
 0x4f4   :  { %3479 = vsyncpa [#allocation9], 1 }
 0x4f5   :  { %3480 = vsyncpa [#allocation12], 1 }
 0x4f6   :  { %3482 = vsyncpa [#allocation12 + $0x1], 1 }
 0x4f7   :  { %3483 = vsyncpa [#allocation15], 1 }
 0x4f8   :  { %3484 = vsyncpa [#allocation4], 1 }
 0x4f9   :  { %3486 = vsyncpa [#allocation4 + $0x1], 1 }
 0x4fa   :  { %3487 = vsyncpa [#allocation18], 1 }
 0x4fb   :  { %3489 = vsyncpa [#allocation18 + $0x1], 1 }

</bundles_post_ra>
